<compile_context>
chip_gen: v7x
topology: tpu7x:2x2x1
jax: 0.10.0
libtpu: 0.0.40
codegen_flags: <defaults>
</compile_context>

<pallas_src>
import jax
import jax.numpy as jnp
from jax import lax
from jax.experimental import pallas as pl
from jax.experimental.pallas import tpu as pltpu

FEAT_DIMS = (2048, 2048, 2048, 1024, 1024, 1024)   # model1..model6 (fc = Identity)
TOTAL_FEAT = sum(FEAT_DIMS)                        # 9216
NB_CLASSES = 4
NB_PAD = 128                                       # lane-dense padded class dim
FEAT_CHUNK = 1024                                  # relu+classifier blocking (divides 9216)
N_CHUNKS = TOTAL_FEAT // FEAT_CHUNK


def _round_up(v, m):
    return ((v + m - 1) // m) * m


def make_ensemble_kernel(C, HW):
    """Build the kernel for a given channel count / spatial size (static)."""

    def kernel(x_ref, wproj_ref, wc_ref, bc_ref, out_ref):
        # x_ref:     (bb, C*HW)        f32   image tile, full sublane occupancy
        # wproj_ref: (C, 9216)         bf16  fused projection weights (1/HW folded in)
        # wc_ref:    (9216, NB_PAD)    bf16  classifier weight (transposed, zero-padded)
        # bc_ref:    (1, NB_PAD)       f32   classifier bias (zero-padded)
        # out_ref:   (bb, NB_PAD)      f32
        x = x_ref[...]                                             # (bb, C*HW) f32

        # GAP stand-in: per-channel sums over the flattened spatial axis.
        # The 1/HW mean scale is folded into wproj in the wrapper.
        pooled = jnp.concatenate(
            [jnp.sum(x[:, c * HW:(c + 1) * HW], axis=-1, keepdims=True)
             for c in range(C)],
            axis=-1)                                               # (bb, C) f32
        pooled = pooled.astype(jnp.bfloat16)                       # bf16 MXU operand

        bb = out_ref.shape[0]
        acc0 = jnp.broadcast_to(bc_ref[...], (bb, NB_PAD)).astype(jnp.float32)

        # Blocked: f = pooled @ Wproj[:, c0:c1]; acc += relu(f) @ Wc[c0:c1, :]
        # Keeps live data to one FEAT_CHUNK-wide slice, never the full (bb, 9216) row.
        def body(i, acc):
            c0 = pl.multiple_of(i * FEAT_CHUNK, FEAT_CHUNK)
            w_blk = wproj_ref[:, pl.ds(c0, FEAT_CHUNK)]            # (C, chunk) bf16
            f = jnp.dot(pooled, w_blk,
                        preferred_element_type=jnp.float32)        # (bb, chunk) f32
            h = jnp.maximum(f, 0.0).astype(jnp.bfloat16)           # F.relu, bf16 MXU operand
            wc_blk = wc_ref[pl.ds(c0, FEAT_CHUNK), :]              # (chunk, NB_PAD) bf16
            return acc + jnp.dot(h, wc_blk,
                                 preferred_element_type=jnp.float32)

        acc = lax.fori_loop(0, N_CHUNKS, body, acc0, unroll=True)
        out_ref[...] = acc.astype(out_ref.dtype)

    return kernel


def init_params(key, in_channels, hw):
    """Deterministic parameters matching the module's shapes (fused / padded / bf16)."""
    keys = jax.random.split(key, len(FEAT_DIMS) + 2)
    proj = []
    for i, fdim in enumerate(FEAT_DIMS):
        w = jax.random.normal(keys[i], (in_channels, fdim), jnp.float32)
        w = w * (1.0 / jnp.sqrt(jnp.float32(in_channels)))
        proj.append(w)
    w_all = jnp.concatenate(proj, axis=1)                          # (C, 9216) fused projection
    # Fold the GAP 1/HW mean scale into the projection weight (kernel uses sums),
    # then store bf16 for MXU-native matmuls.
    w_all = (w_all / jnp.float32(hw)).astype(jnp.bfloat16)

    bound = 1.0 / jnp.sqrt(jnp.float32(TOTAL_FEAT))                # nn.Linear default init
    wc = jax.random.uniform(keys[-2], (TOTAL_FEAT, NB_CLASSES), jnp.float32,
                            minval=-bound, maxval=bound)
    bc = jax.random.uniform(keys[-1], (1, NB_CLASSES), jnp.float32,
                            minval=-bound, maxval=bound)
    # Zero-pad the class dim to 128 for lane-dense output stores.
    wc_pad = jnp.pad(wc, ((0, 0), (0, NB_PAD - NB_CLASSES))).astype(jnp.bfloat16)
    bc_pad = jnp.pad(bc, ((0, 0), (0, NB_PAD - NB_CLASSES)))       # f32 (acc init)
    return {"w_all": w_all, "wc_pad": wc_pad, "bc_pad": bc_pad}


def my_ensemble_forward(x, params, block_b=32):
    """x: (B, C, H, W) float32 (NCHW, like the PyTorch module). Returns (B, NB_CLASSES)."""
    B, C, H, W = x.shape
    HW = H * W
    x2 = x.reshape(B, C * HW).astype(jnp.float32)                  # 2D, full sublane occupancy

    # Batch tiling: multiple-of-8 blocks (satisfies the (8,128) rule on the
    # output block).  When the batch is large enough, force >= 2 grid steps so
    # both v7x TensorCores get work under dimension_semantics=("parallel",).
    bb = max(8, _round_up(min(block_b, B), 8))
    if B > 8 and (_round_up(B, bb) // bb) < 2:
        bb = max(8, _round_up(pl.cdiv(B, 2), 8))
    assert bb % 8 == 0
    b_pad = _round_up(B, bb)
    if b_pad != B:
        x2 = jnp.pad(x2, ((0, b_pad - B), (0, 0)))
    grid = (b_pad // bb,)

    # Explicit VMEM budget: double-buffered image stream + single-buffered
    # bf16 weights + double-buffered output, plus headroom; capped under v7x's
    # 64 MiB physical VMEM and above v5e's 16 MiB scoped default.
    img_bytes = bb * C * HW * 4
    w_bytes = (C * TOTAL_FEAT + TOTAL_FEAT * NB_PAD) * 2 + NB_PAD * 4
    out_bytes = bb * NB_PAD * 4
    need = 2 * img_bytes + w_bytes + 2 * out_bytes
    vmem_limit = int(min(max(2 * need + (4 << 20), 32 << 20), 48 << 20))

    kernel = make_ensemble_kernel(C, HW)

    out = pl.pallas_call(
        kernel,
        out_shape=jax.ShapeDtypeStruct((b_pad, NB_PAD), jnp.float32),
        grid=grid,
        in_specs=[
            # image: tiled over batch, double-buffered HBM->VMEM stream
            pl.BlockSpec((bb, C * HW), lambda i: (i, 0)),
            # grid-invariant weights: resident, single-buffered
            pl.BlockSpec((C, TOTAL_FEAT), lambda i: (0, 0),
                         pipeline_mode=pl.Buffered(1)),
            pl.BlockSpec((TOTAL_FEAT, NB_PAD), lambda i: (0, 0),
                         pipeline_mode=pl.Buffered(1)),
            pl.BlockSpec((1, NB_PAD), lambda i: (0, 0),
                         pipeline_mode=pl.Buffered(1)),
        ],
        out_specs=pl.BlockSpec((bb, NB_PAD), lambda i: (i, 0)),
        compiler_params=pltpu.CompilerParams(
            dimension_semantics=("parallel",),                     # shard batch across TCs (v7x)
            vmem_limit_bytes=vmem_limit),
    )(x2, params["w_all"], params["wc_pad"], params["bc_pad"])

    return out[:B, :NB_CLASSES]


if __name__ == "__main__":
    key = jax.random.PRNGKey(0)
    kx, kp = jax.random.split(key)

    B, C, H, W = 2, 4, 16, 16
    x = jax.random.normal(kx, (B, C, H, W), jnp.float32)
    params = init_params(kp, C, H * W)

    out = my_ensemble_forward(x, params)
    out = jax.block_until_ready(out)
    assert out.shape == (B, NB_CLASSES)
    assert out.dtype == jnp.float32
    print("KERNEL_OK")
</pallas_src>

<mosaic_0001>
module attributes {stable_mosaic.version = 11 : i64} {
  func.func @kernel(%arg0: i32, %arg1: memref<8x1024xf32, #tpu.memory_space<vmem>>, %arg2: memref<4x9216xbf16, #tpu.memory_space<vmem>>, %arg3: memref<9216x128xbf16, #tpu.memory_space<vmem>>, %arg4: memref<1x128xf32, #tpu.memory_space<vmem>>, %arg5: memref<8x128xf32, #tpu.memory_space<vmem>>) attributes {dimension_semantics = [#tpu.dimension_semantics<parallel>], iteration_bounds = array<i64: 1>, scalar_prefetch = 0 : i64, scratch_operands = 0 : i64, tpu.core_type = #tpu.core_type<tc>, window_params = [{transform_indices = @transform_0, window_bounds = array<i64: 8, 1024>}, {pipeline_mode = #tpu.pipeline_mode<synchronous>, transform_indices = @transform_1, window_bounds = array<i64: 4, 9216>}, {pipeline_mode = #tpu.pipeline_mode<synchronous>, transform_indices = @transform_2, window_bounds = array<i64: 9216, 128>}, {pipeline_mode = #tpu.pipeline_mode<synchronous>, transform_indices = @transform_3, window_bounds = array<i64: 1, 128>}, {transform_indices = @transform_4, window_bounds = array<i64: 8, 128>}]} {
    %c0 = arith.constant 0 : index
    %c0_0 = arith.constant 0 : index
    %0 = vector.load %arg1[%c0, %c0_0] : memref<8x1024xf32, #tpu.memory_space<vmem>>, vector<8x1024xf32>
    %1 = vector.extract_strided_slice %0 {offsets = [0, 0], sizes = [8, 256], strides = [1, 1]} : vector<8x1024xf32> to vector<8x256xf32>
    %cst = arith.constant dense<0.000000e+00> : vector<8xf32>
    %2 = vector.multi_reduction <add>, %1, %cst [1] : vector<8x256xf32> to vector<8xf32>
    %3 = vector.shape_cast %2 : vector<8xf32> to vector<8x1xf32>
    %4 = vector.extract_strided_slice %0 {offsets = [0, 256], sizes = [8, 256], strides = [1, 1]} : vector<8x1024xf32> to vector<8x256xf32>
    %cst_1 = arith.constant dense<0.000000e+00> : vector<8xf32>
    %5 = vector.multi_reduction <add>, %4, %cst_1 [1] : vector<8x256xf32> to vector<8xf32>
    %6 = vector.shape_cast %5 : vector<8xf32> to vector<8x1xf32>
    %7 = vector.extract_strided_slice %0 {offsets = [0, 512], sizes = [8, 256], strides = [1, 1]} : vector<8x1024xf32> to vector<8x256xf32>
    %cst_2 = arith.constant dense<0.000000e+00> : vector<8xf32>
    %8 = vector.multi_reduction <add>, %7, %cst_2 [1] : vector<8x256xf32> to vector<8xf32>
    %9 = vector.shape_cast %8 : vector<8xf32> to vector<8x1xf32>
    %10 = vector.extract_strided_slice %0 {offsets = [0, 768], sizes = [8, 256], strides = [1, 1]} : vector<8x1024xf32> to vector<8x256xf32>
    %cst_3 = arith.constant dense<0.000000e+00> : vector<8xf32>
    %11 = vector.multi_reduction <add>, %10, %cst_3 [1] : vector<8x256xf32> to vector<8xf32>
    %12 = vector.shape_cast %11 : vector<8xf32> to vector<8x1xf32>
    %13 = tpu.concatenate %3, %6, %9, %12 in 1 : vector<8x1xf32>, vector<8x1xf32>, vector<8x1xf32>, vector<8x1xf32> -> vector<8x4xf32>
    %14 = arith.truncf %13 : vector<8x4xf32> to vector<8x4xbf16>
    %c0_4 = arith.constant 0 : index
    %c0_5 = arith.constant 0 : index
    %15 = vector.load %arg4[%c0_4, %c0_5] : memref<1x128xf32, #tpu.memory_space<vmem>>, vector<1x128xf32>
    %16 = vector.shape_cast %15 : vector<1x128xf32> to vector<1x128xf32>
    %17 = vector.broadcast %16 : vector<1x128xf32> to vector<8x128xf32>
    %c0_i32 = arith.constant 0 : i32
    %c1024_i32 = arith.constant 1024 : i32
    %18 = arith.muli %c0_i32, %c1024_i32 : i32
    %19 = tpu.assume_multiple %18, 1024 : i32
    %c0_6 = arith.constant 0 : index
    %20 = arith.index_cast %19 : i32 to index
    %21 = vector.load %arg2[%c0_6, %20] : memref<4x9216xbf16, #tpu.memory_space<vmem>>, vector<4x1024xbf16>
    %cst_7 = arith.constant dense<0.000000e+00> : vector<8x1024xf32>
    %22 = tpu.matmul %14, %21, %cst_7 {dimension_numbers = #tpu.dot_dimension_numbers<[1], [0], [0], [1], [0, 0, 1, 1], [], []>} : vector<8x4xbf16>, vector<4x1024xbf16>, vector<8x1024xf32> -> vector<8x1024xf32>
    %cst_8 = arith.constant 0.000000e+00 : f32
    %23 = vector.broadcast %cst_8 : f32 to vector<8x1024xf32>
    %24 = arith.maximumf %22, %23 : vector<8x1024xf32>
    %25 = arith.truncf %24 : vector<8x1024xf32> to vector<8x1024xbf16>
    %26 = arith.index_cast %19 : i32 to index
    %c0_9 = arith.constant 0 : index
    %27 = vector.load %arg3[%26, %c0_9] : memref<9216x128xbf16, #tpu.memory_space<vmem>>, vector<1024x128xbf16>
    %cst_10 = arith.constant dense<0.000000e+00> : vector<8x128xf32>
    %28 = tpu.matmul %25, %27, %cst_10 {dimension_numbers = #tpu.dot_dimension_numbers<[1], [0], [0], [1], [0, 0, 1, 1], [], []>} : vector<8x1024xbf16>, vector<1024x128xbf16>, vector<8x128xf32> -> vector<8x128xf32>
    %29 = arith.addf %17, %28 : vector<8x128xf32>
    %c1_i32 = arith.constant 1 : i32
    %c1024_i32_11 = arith.constant 1024 : i32
    %30 = arith.muli %c1_i32, %c1024_i32_11 : i32
    %31 = tpu.assume_multiple %30, 1024 : i32
    %c0_12 = arith.constant 0 : index
    %32 = arith.index_cast %31 : i32 to index
    %33 = vector.load %arg2[%c0_12, %32] : memref<4x9216xbf16, #tpu.memory_space<vmem>>, vector<4x1024xbf16>
    %cst_13 = arith.constant dense<0.000000e+00> : vector<8x1024xf32>
    %34 = tpu.matmul %14, %33, %cst_13 {dimension_numbers = #tpu.dot_dimension_numbers<[1], [0], [0], [1], [0, 0, 1, 1], [], []>} : vector<8x4xbf16>, vector<4x1024xbf16>, vector<8x1024xf32> -> vector<8x1024xf32>
    %cst_14 = arith.constant 0.000000e+00 : f32
    %35 = vector.broadcast %cst_14 : f32 to vector<8x1024xf32>
    %36 = arith.maximumf %34, %35 : vector<8x1024xf32>
    %37 = arith.truncf %36 : vector<8x1024xf32> to vector<8x1024xbf16>
    %38 = arith.index_cast %31 : i32 to index
    %c0_15 = arith.constant 0 : index
    %39 = vector.load %arg3[%38, %c0_15] : memref<9216x128xbf16, #tpu.memory_space<vmem>>, vector<1024x128xbf16>
    %cst_16 = arith.constant dense<0.000000e+00> : vector<8x128xf32>
    %40 = tpu.matmul %37, %39, %cst_16 {dimension_numbers = #tpu.dot_dimension_numbers<[1], [0], [0], [1], [0, 0, 1, 1], [], []>} : vector<8x1024xbf16>, vector<1024x128xbf16>, vector<8x128xf32> -> vector<8x128xf32>
    %41 = arith.addf %29, %40 : vector<8x128xf32>
    %c2_i32 = arith.constant 2 : i32
    %c1024_i32_17 = arith.constant 1024 : i32
    %42 = arith.muli %c2_i32, %c1024_i32_17 : i32
    %43 = tpu.assume_multiple %42, 1024 : i32
    %c0_18 = arith.constant 0 : index
    %44 = arith.index_cast %43 : i32 to index
    %45 = vector.load %arg2[%c0_18, %44] : memref<4x9216xbf16, #tpu.memory_space<vmem>>, vector<4x1024xbf16>
    %cst_19 = arith.constant dense<0.000000e+00> : vector<8x1024xf32>
    %46 = tpu.matmul %14, %45, %cst_19 {dimension_numbers = #tpu.dot_dimension_numbers<[1], [0], [0], [1], [0, 0, 1, 1], [], []>} : vector<8x4xbf16>, vector<4x1024xbf16>, vector<8x1024xf32> -> vector<8x1024xf32>
    %cst_20 = arith.constant 0.000000e+00 : f32
    %47 = vector.broadcast %cst_20 : f32 to vector<8x1024xf32>
    %48 = arith.maximumf %46, %47 : vector<8x1024xf32>
    %49 = arith.truncf %48 : vector<8x1024xf32> to vector<8x1024xbf16>
    %50 = arith.index_cast %43 : i32 to index
    %c0_21 = arith.constant 0 : index
    %51 = vector.load %arg3[%50, %c0_21] : memref<9216x128xbf16, #tpu.memory_space<vmem>>, vector<1024x128xbf16>
    %cst_22 = arith.constant dense<0.000000e+00> : vector<8x128xf32>
    %52 = tpu.matmul %49, %51, %cst_22 {dimension_numbers = #tpu.dot_dimension_numbers<[1], [0], [0], [1], [0, 0, 1, 1], [], []>} : vector<8x1024xbf16>, vector<1024x128xbf16>, vector<8x128xf32> -> vector<8x128xf32>
    %53 = arith.addf %41, %52 : vector<8x128xf32>
    %c3_i32 = arith.constant 3 : i32
    %c1024_i32_23 = arith.constant 1024 : i32
    %54 = arith.muli %c3_i32, %c1024_i32_23 : i32
    %55 = tpu.assume_multiple %54, 1024 : i32
    %c0_24 = arith.constant 0 : index
    %56 = arith.index_cast %55 : i32 to index
    %57 = vector.load %arg2[%c0_24, %56] : memref<4x9216xbf16, #tpu.memory_space<vmem>>, vector<4x1024xbf16>
    %cst_25 = arith.constant dense<0.000000e+00> : vector<8x1024xf32>
    %58 = tpu.matmul %14, %57, %cst_25 {dimension_numbers = #tpu.dot_dimension_numbers<[1], [0], [0], [1], [0, 0, 1, 1], [], []>} : vector<8x4xbf16>, vector<4x1024xbf16>, vector<8x1024xf32> -> vector<8x1024xf32>
    %cst_26 = arith.constant 0.000000e+00 : f32
    %59 = vector.broadcast %cst_26 : f32 to vector<8x1024xf32>
    %60 = arith.maximumf %58, %59 : vector<8x1024xf32>
    %61 = arith.truncf %60 : vector<8x1024xf32> to vector<8x1024xbf16>
    %62 = arith.index_cast %55 : i32 to index
    %c0_27 = arith.constant 0 : index
    %63 = vector.load %arg3[%62, %c0_27] : memref<9216x128xbf16, #tpu.memory_space<vmem>>, vector<1024x128xbf16>
    %cst_28 = arith.constant dense<0.000000e+00> : vector<8x128xf32>
    %64 = tpu.matmul %61, %63, %cst_28 {dimension_numbers = #tpu.dot_dimension_numbers<[1], [0], [0], [1], [0, 0, 1, 1], [], []>} : vector<8x1024xbf16>, vector<1024x128xbf16>, vector<8x128xf32> -> vector<8x128xf32>
    %65 = arith.addf %53, %64 : vector<8x128xf32>
    %c4_i32 = arith.constant 4 : i32
    %c1024_i32_29 = arith.constant 1024 : i32
    %66 = arith.muli %c4_i32, %c1024_i32_29 : i32
    %67 = tpu.assume_multiple %66, 1024 : i32
    %c0_30 = arith.constant 0 : index
    %68 = arith.index_cast %67 : i32 to index
    %69 = vector.load %arg2[%c0_30, %68] : memref<4x9216xbf16, #tpu.memory_space<vmem>>, vector<4x1024xbf16>
    %cst_31 = arith.constant dense<0.000000e+00> : vector<8x1024xf32>
    %70 = tpu.matmul %14, %69, %cst_31 {dimension_numbers = #tpu.dot_dimension_numbers<[1], [0], [0], [1], [0, 0, 1, 1], [], []>} : vector<8x4xbf16>, vector<4x1024xbf16>, vector<8x1024xf32> -> vector<8x1024xf32>
    %cst_32 = arith.constant 0.000000e+00 : f32
    %71 = vector.broadcast %cst_32 : f32 to vector<8x1024xf32>
    %72 = arith.maximumf %70, %71 : vector<8x1024xf32>
    %73 = arith.truncf %72 : vector<8x1024xf32> to vector<8x1024xbf16>
    %74 = arith.index_cast %67 : i32 to index
    %c0_33 = arith.constant 0 : index
    %75 = vector.load %arg3[%74, %c0_33] : memref<9216x128xbf16, #tpu.memory_space<vmem>>, vector<1024x128xbf16>
    %cst_34 = arith.constant dense<0.000000e+00> : vector<8x128xf32>
    %76 = tpu.matmul %73, %75, %cst_34 {dimension_numbers = #tpu.dot_dimension_numbers<[1], [0], [0], [1], [0, 0, 1, 1], [], []>} : vector<8x1024xbf16>, vector<1024x128xbf16>, vector<8x128xf32> -> vector<8x128xf32>
    %77 = arith.addf %65, %76 : vector<8x128xf32>
    %c5_i32 = arith.constant 5 : i32
    %c1024_i32_35 = arith.constant 1024 : i32
    %78 = arith.muli %c5_i32, %c1024_i32_35 : i32
    %79 = tpu.assume_multiple %78, 1024 : i32
    %c0_36 = arith.constant 0 : index
    %80 = arith.index_cast %79 : i32 to index
    %81 = vector.load %arg2[%c0_36, %80] : memref<4x9216xbf16, #tpu.memory_space<vmem>>, vector<4x1024xbf16>
    %cst_37 = arith.constant dense<0.000000e+00> : vector<8x1024xf32>
    %82 = tpu.matmul %14, %81, %cst_37 {dimension_numbers = #tpu.dot_dimension_numbers<[1], [0], [0], [1], [0, 0, 1, 1], [], []>} : vector<8x4xbf16>, vector<4x1024xbf16>, vector<8x1024xf32> -> vector<8x1024xf32>
    %cst_38 = arith.constant 0.000000e+00 : f32
    %83 = vector.broadcast %cst_38 : f32 to vector<8x1024xf32>
    %84 = arith.maximumf %82, %83 : vector<8x1024xf32>
    %85 = arith.truncf %84 : vector<8x1024xf32> to vector<8x1024xbf16>
    %86 = arith.index_cast %79 : i32 to index
    %c0_39 = arith.constant 0 : index
    %87 = vector.load %arg3[%86, %c0_39] : memref<9216x128xbf16, #tpu.memory_space<vmem>>, vector<1024x128xbf16>
    %cst_40 = arith.constant dense<0.000000e+00> : vector<8x128xf32>
    %88 = tpu.matmul %85, %87, %cst_40 {dimension_numbers = #tpu.dot_dimension_numbers<[1], [0], [0], [1], [0, 0, 1, 1], [], []>} : vector<8x1024xbf16>, vector<1024x128xbf16>, vector<8x128xf32> -> vector<8x128xf32>
    %89 = arith.addf %77, %88 : vector<8x128xf32>
    %c6_i32 = arith.constant 6 : i32
    %c1024_i32_41 = arith.constant 1024 : i32
    %90 = arith.muli %c6_i32, %c1024_i32_41 : i32
    %91 = tpu.assume_multiple %90, 1024 : i32
    %c0_42 = arith.constant 0 : index
    %92 = arith.index_cast %91 : i32 to index
    %93 = vector.load %arg2[%c0_42, %92] : memref<4x9216xbf16, #tpu.memory_space<vmem>>, vector<4x1024xbf16>
    %cst_43 = arith.constant dense<0.000000e+00> : vector<8x1024xf32>
    %94 = tpu.matmul %14, %93, %cst_43 {dimension_numbers = #tpu.dot_dimension_numbers<[1], [0], [0], [1], [0, 0, 1, 1], [], []>} : vector<8x4xbf16>, vector<4x1024xbf16>, vector<8x1024xf32> -> vector<8x1024xf32>
    %cst_44 = arith.constant 0.000000e+00 : f32
    %95 = vector.broadcast %cst_44 : f32 to vector<8x1024xf32>
    %96 = arith.maximumf %94, %95 : vector<8x1024xf32>
    %97 = arith.truncf %96 : vector<8x1024xf32> to vector<8x1024xbf16>
    %98 = arith.index_cast %91 : i32 to index
    %c0_45 = arith.constant 0 : index
    %99 = vector.load %arg3[%98, %c0_45] : memref<9216x128xbf16, #tpu.memory_space<vmem>>, vector<1024x128xbf16>
    %cst_46 = arith.constant dense<0.000000e+00> : vector<8x128xf32>
    %100 = tpu.matmul %97, %99, %cst_46 {dimension_numbers = #tpu.dot_dimension_numbers<[1], [0], [0], [1], [0, 0, 1, 1], [], []>} : vector<8x1024xbf16>, vector<1024x128xbf16>, vector<8x128xf32> -> vector<8x128xf32>
    %101 = arith.addf %89, %100 : vector<8x128xf32>
    %c7_i32 = arith.constant 7 : i32
    %c1024_i32_47 = arith.constant 1024 : i32
    %102 = arith.muli %c7_i32, %c1024_i32_47 : i32
    %103 = tpu.assume_multiple %102, 1024 : i32
    %c0_48 = arith.constant 0 : index
    %104 = arith.index_cast %103 : i32 to index
    %105 = vector.load %arg2[%c0_48, %104] : memref<4x9216xbf16, #tpu.memory_space<vmem>>, vector<4x1024xbf16>
    %cst_49 = arith.constant dense<0.000000e+00> : vector<8x1024xf32>
    %106 = tpu.matmul %14, %105, %cst_49 {dimension_numbers = #tpu.dot_dimension_numbers<[1], [0], [0], [1], [0, 0, 1, 1], [], []>} : vector<8x4xbf16>, vector<4x1024xbf16>, vector<8x1024xf32> -> vector<8x1024xf32>
    %cst_50 = arith.constant 0.000000e+00 : f32
    %107 = vector.broadcast %cst_50 : f32 to vector<8x1024xf32>
    %108 = arith.maximumf %106, %107 : vector<8x1024xf32>
    %109 = arith.truncf %108 : vector<8x1024xf32> to vector<8x1024xbf16>
    %110 = arith.index_cast %103 : i32 to index
    %c0_51 = arith.constant 0 : index
    %111 = vector.load %arg3[%110, %c0_51] : memref<9216x128xbf16, #tpu.memory_space<vmem>>, vector<1024x128xbf16>
    %cst_52 = arith.constant dense<0.000000e+00> : vector<8x128xf32>
    %112 = tpu.matmul %109, %111, %cst_52 {dimension_numbers = #tpu.dot_dimension_numbers<[1], [0], [0], [1], [0, 0, 1, 1], [], []>} : vector<8x1024xbf16>, vector<1024x128xbf16>, vector<8x128xf32> -> vector<8x128xf32>
    %113 = arith.addf %101, %112 : vector<8x128xf32>
    %c8_i32 = arith.constant 8 : i32
    %c1024_i32_53 = arith.constant 1024 : i32
    %114 = arith.muli %c8_i32, %c1024_i32_53 : i32
    %115 = tpu.assume_multiple %114, 1024 : i32
    %c0_54 = arith.constant 0 : index
    %116 = arith.index_cast %115 : i32 to index
    %117 = vector.load %arg2[%c0_54, %116] : memref<4x9216xbf16, #tpu.memory_space<vmem>>, vector<4x1024xbf16>
    %cst_55 = arith.constant dense<0.000000e+00> : vector<8x1024xf32>
    %118 = tpu.matmul %14, %117, %cst_55 {dimension_numbers = #tpu.dot_dimension_numbers<[1], [0], [0], [1], [0, 0, 1, 1], [], []>} : vector<8x4xbf16>, vector<4x1024xbf16>, vector<8x1024xf32> -> vector<8x1024xf32>
    %cst_56 = arith.constant 0.000000e+00 : f32
    %119 = vector.broadcast %cst_56 : f32 to vector<8x1024xf32>
    %120 = arith.maximumf %118, %119 : vector<8x1024xf32>
    %121 = arith.truncf %120 : vector<8x1024xf32> to vector<8x1024xbf16>
    %122 = arith.index_cast %115 : i32 to index
    %c0_57 = arith.constant 0 : index
    %123 = vector.load %arg3[%122, %c0_57] : memref<9216x128xbf16, #tpu.memory_space<vmem>>, vector<1024x128xbf16>
    %cst_58 = arith.constant dense<0.000000e+00> : vector<8x128xf32>
    %124 = tpu.matmul %121, %123, %cst_58 {dimension_numbers = #tpu.dot_dimension_numbers<[1], [0], [0], [1], [0, 0, 1, 1], [], []>} : vector<8x1024xbf16>, vector<1024x128xbf16>, vector<8x128xf32> -> vector<8x128xf32>
    %125 = arith.addf %113, %124 : vector<8x128xf32>
    %c9_i32 = arith.constant 9 : i32
    %c0_59 = arith.constant 0 : index
    %c0_60 = arith.constant 0 : index
    %126 = vector.load %arg5[%c0_59, %c0_60] : memref<8x128xf32, #tpu.memory_space<vmem>>, vector<8x128xf32>
    tpu.vector_store %arg5[%c0_59, %c0_60], %125 {strides = array<i32>} : memref<8x128xf32, #tpu.memory_space<vmem>>, vector<8x128xf32>,
    return
  }
  func.func @transform_0(%arg0: i32) -> (i32, i32) {
    %c0_i32 = arith.constant 0 : i32
    %c0_i32_0 = arith.constant 0 : i32
    return %arg0, %c0_i32 : i32, i32
  }
  func.func @transform_1(%arg0: i32) -> (i32, i32) {
    %c0_i32 = arith.constant 0 : i32
    %c0_i32_0 = arith.constant 0 : i32
    %c0_i32_1 = arith.constant 0 : i32
    return %c0_i32, %c0_i32_0 : i32, i32
  }
  func.func @transform_2(%arg0: i32) -> (i32, i32) {
    %c0_i32 = arith.constant 0 : i32
    %c0_i32_0 = arith.constant 0 : i32
    %c0_i32_1 = arith.constant 0 : i32
    return %c0_i32, %c0_i32_0 : i32, i32
  }
  func.func @transform_3(%arg0: i32) -> (i32, i32) {
    %c0_i32 = arith.constant 0 : i32
    %c0_i32_0 = arith.constant 0 : i32
    %c0_i32_1 = arith.constant 0 : i32
    return %c0_i32, %c0_i32_0 : i32, i32
  }
  func.func @transform_4(%arg0: i32) -> (i32, i32) {
    %c0_i32 = arith.constant 0 : i32
    %c0_i32_0 = arith.constant 0 : i32
    return %arg0, %c0_i32 : i32, i32
  }
}

</mosaic_0001>

<bundles_post_ra>
// kernel: tpu_custom_call.1
= control target key start
LH: loop header
LB: loop body
LE: loop exit
PB: predicated region body
PF: predicated region fallthrough
CT: control target
= control target key end

     0   :  { %9 = vsyncpa [#allocation3], 0  ;;  %s10968_s0 = inlined_call_operand.hbm [shape: f32[8,1024], index: 0, kind: input, shape index: {}]   ;;  %s10969_s1 = inlined_call_operand.hbm [shape: bf16[4,9216], index: 1, kind: input, shape index: {}]   ;;  %s10970_s2 = inlined_call_operand.hbm [shape: bf16[9216,128], index: 2, kind: input, shape index: {}]   ;;  %s10971_s3 = inlined_call_operand.hbm [shape: f32[1,128], index: 3, kind: input, shape index: {}]   ;;  %s10972_s4 = inlined_call_operand.hbm [shape: f32[8,128], index: 4, kind: output, shape index: {}]  }
   0x1   :  { %10 = vsyncpa [#allocation6], 0 }
   0x2   :  { %11 = vsyncpa [#allocation9], 0 }
   0x3   :  { %12 = vsyncpa [#allocation4], 0  ;;  %s10538_s15 = smov [#allocation5]   ;;  %s10539_s17 = smov [#allocation2]  }
   0x4   :  { %s29_s16 = sshll.u32 %s10538_s15, 4  ;;  %s19_s18 = sshll.u32 %s10539_s17, 4  ;;  %s30_s16 = int_to_ptr.vmem [resolvable:$true] %s29_s16  ;;  %s20_s18 = int_to_ptr.vmem [resolvable:$true] %s19_s18 }
   0x5   :  { %s10420_s21 = scalar_lea.hbm %s10969_s1, 2304 }
   0x6   :  { %p10421_p0 = scmp.ne.s32.totalorder %s10969_s1, %s10420_s21  ;;  %p10424_p1 = scmp.lt.u32.totalorder %s10420_s21, %s10969_s1 }
   0x8   :  { %p10426_p2 = pnand %p10424_p1, %p10421_p0 }
   0xa   :  { %10429 = shalt.err (!%p10426_p2)
}
   0xb   :  { %s10430_s26 = scalar_lea.vmem %s30_s16, 2304  ;;  %p10435_p4 = scmp.lt.s32.totalorder %s30_s16, %s30_s16 }
   0xc   :  { %p10431_p3 = scmp.ne.s32.totalorder %s30_s16, %s10430_s26  ;;  %p10436_p5 = scmp.lt.s32.totalorder %s10430_s26, %s10430_s26 }
   0xe   :  { %p10437_p6 = por %p10436_p5, %p10435_p4 }
  0x10   :  { %p10438_p7 = pnand %p10437_p6, %p10431_p3 }
  0x12   :  { %10441 = shalt.err (!%p10438_p7)
}
  0x13   :  { %32 = dma.hbm_to_vmem [thread:$0]  %s10969_s1, 2304, %s30_s16, [#allocation6]  }
  0x14   :  { %s10442_s5 = scalar_lea.hbm %s10968_s0, 1024 }
  0x15   :  { %p10443_p8 = scmp.ne.s32.totalorder %s10968_s0, %s10442_s5  ;;  %p10446_p9 = scmp.lt.u32.totalorder %s10442_s5, %s10968_s0 }
  0x17   :  { %p10448_p10 = pnand %p10446_p9, %p10443_p8 }
  0x19   :  { %10451 = shalt.err (!%p10448_p10)
}
  0x1a   :  { %s10452_s10 = scalar_lea.vmem %s20_s18, 1024  ;;  %p10457_p12 = scmp.lt.s32.totalorder %s20_s18, %s20_s18 }
  0x1b   :  { %p10453_p11 = scmp.ne.s32.totalorder %s20_s18, %s10452_s10  ;;  %p10458_p13 = scmp.lt.s32.totalorder %s10452_s10, %s10452_s10 }
  0x1d   :  { %p10459_p0 = por %p10458_p13, %p10457_p12 }
  0x1f   :  { %p10460_p1 = pnand %p10459_p0, %p10453_p11 }
  0x21   :  { %10463 = shalt.err (!%p10460_p1)
}
  0x22   :  { %22 = dma.hbm_to_vmem [thread:$0]  %s10968_s0, 1024, %s20_s18, [#allocation3]  }
  0x23   :  { %s10540_s12 = smov [#allocation7]   ;;  %s10464_s16 = scalar_lea.hbm %s10970_s2, 73728 }
  0x24   :  { %s38_s13 = sshll.u32 %s10540_s12, 4  ;;  %p10465_p2 = scmp.ne.s32.totalorder %s10970_s2, %s10464_s16  ;;  %s39_s13 = int_to_ptr.vmem [resolvable:$true] %s38_s13 }
  0x25   :  { %p10468_p3 = scmp.lt.u32.totalorder %s10464_s16, %s10970_s2 }
  0x27   :  { %p10470_p4 = pnand %p10468_p3, %p10465_p2 }
  0x29   :  { %10473 = shalt.err (!%p10470_p4)
}
  0x2a   :  { %s10474_s22 = scalar_lea.vmem %s39_s13, 73728  ;;  %p10479_p6 = scmp.lt.s32.totalorder %s39_s13, %s39_s13 }
  0x2b   :  { %p10475_p5 = scmp.ne.s32.totalorder %s39_s13, %s10474_s22  ;;  %p10480_p7 = scmp.lt.s32.totalorder %s10474_s22, %s10474_s22 }
  0x2d   :  { %p10481_p8 = por %p10480_p7, %p10479_p6 }
  0x2f   :  { %p10482_p9 = pnand %p10481_p8, %p10475_p5 }
  0x31   :  { %10485 = shalt.err (!%p10482_p9)
}
  0x32   :  { %s10541_s0 = smov 64   ;;  %s10542_s18 = smov 4  }
  0x33   :  { %44 = dma.hbm_to_vmem [thread:$0]  %s10970_s2, 73728, %s39_s13, [#allocation6], %s10541_s0, %s10541_s0, %s10542_s18  }
  0x34   :  { %s10543_s25 = smov [#allocation8]   ;;  %s10486_s29 = scalar_lea.hbm %s10971_s3, 16 }
  0x35   :  { %s51_s26 = sshll.u32 %s10543_s25, 4  ;;  %p10487_p10 = scmp.ne.s32.totalorder %s10971_s3, %s10486_s29  ;;  %s52_s26 = int_to_ptr.vmem [resolvable:$true] %s51_s26 }
  0x36   :  { %p10490_p11 = scmp.lt.u32.totalorder %s10486_s29, %s10971_s3 }
  0x38   :  { %p10492_p12 = pnand %p10490_p11, %p10487_p10 }
  0x3a   :  { %10495 = shalt.err (!%p10492_p12)
}
  0x3b   :  { %s10496_s8 = scalar_lea.vmem %s52_s26, 16  ;;  %s10500_s2 = scalar_lea.vmem %s52_s26, 32 }
  0x3c   :  { %p10497_p13 = scmp.ne.s32.totalorder %s52_s26, %s10496_s8  ;;  %p10501_p0 = scmp.lt.s32.totalorder %s52_s26, %s52_s26 }
  0x3d   :  { %p10502_p1 = scmp.lt.s32.totalorder %s10500_s2, %s10496_s8 }
  0x3f   :  { %p10503_p2 = por %p10502_p1, %p10501_p0 }
  0x41   :  { %p10504_p3 = pnand %p10503_p2, %p10497_p13 }
  0x43   :  { %10507 = shalt.err (!%p10504_p3)
}
  0x44   :  { %54 = dma.hbm_to_vmem [thread:$0]  %s10971_s3, 16, %s52_s26, [#allocation9]  }
  0x45   :  { %10530 = dma.done.wait [#allocation3], 1024  }
  0x46   :  { %10531 = vsyncadd [#allocation3], 4294966272 }
  0x47   :  { %10532 = dma.done.wait [#allocation6], 76032  }
  0x48   :  { %10533 = vsyncadd [#allocation6], 4294891264 }
  0x49   :  { %10534 = dma.done.wait [#allocation9], 16  }
  0x4a   :  { %10535 = vsyncadd [#allocation9], 4294967280  ;;  %v68_v0 = vld [vmem:[#allocation2] sm:$0xff]  ;;  %v69_v1 = vld [vmem:[#allocation2 + $0x8] sm:$0xff]  ;;  %v10544_v12 = vmov 1983009808   ;;  %v110_v14 = vlaneseq }
  0x4b   :  { %v72_v2 = vld [vmem:[#allocation2 + $0x20] sm:$0xff]  ;;  %v76_v3 = vadd.f32 %v69_v1, %v68_v0  ;;  %v73_v4 = vld [vmem:[#allocation2 + $0x28] sm:$0xff]  ;;  %v70_v5 = vld [vmem:[#allocation2 + $0x10] sm:$0xff]  ;;  %v108_v13 = vunpack.c.l.s4 %v10544_v12  ;;  %vm144_vm0 = vcmask 1041408   ;;  %v10545_v28 = vmov 0   ;;  %s10546_s3 = smov [#allocation10]  }
  0x4c   :  { %v71_v6 = vld [vmem:[#allocation2 + $0x18] sm:$0xff]  ;;  %v82_v7 = vadd.f32 %v73_v4, %v72_v2  ;;  %v74_v8 = vld [vmem:[#allocation2 + $0x30] sm:$0xff]  ;;  %v111_v16 = vshrl.u32 %v110_v14, 7  ;;  %v102_v17 = vld [vmem:[#allocation5] sm:$0xff]  ;;  %201 = vmatprep.mubr.bf16.mxu0 %v10545_v28  ;;  %242 = vmatprep.mubr.bf16.mxu1 %v10545_v28  ;;  %vm88_vm1 = vcmask 7168   ;;  %vm90_vm2 = vcmask 15360  }
  0x4d   :  { %v75_v9 = vld [vmem:[#allocation2 + $0x38] sm:$0xff]  ;;  %77 = vadd.xlane.f32.xlu0 %v76_v3  ;;  %v79_v10 = vadd.f32 %v71_v6, %v70_v5  ;;  %v109_v15 = vunpack.c.0.s8 %v108_v13  ;;  %v106_v19 = vcombine.high %v102_v17, %v102_v17  ;;  %v103_v26 = vld [vmem:[#allocation5 + $0x8] sm:$0xff]  ;;  %vm92_vm3 = vcmask 23552   ;;  %v9828_v42 = vld [vmem:[#allocation7 + $0x40] sm:$0xff]   ;;  %s8365_s1 = sshll.u32 %s10546_s3, 4  ;;  %s8366_s1 = int_to_ptr.vmem [resolvable:$true] %s8365_s1 }
  0x4e   :  { %83 = vadd.xlane.f32.xlu1 %v82_v7  ;;  %v85_v11 = vadd.f32 %v75_v9, %v74_v8  ;;  %v123_v27 = vcombine.high %v103_v26, %v103_v26  ;;  %vm140_vm4 = vcmask 31744   ;;  %v9829_v43 = vld [vmem:[#allocation7 + $0xc0] sm:$0xff]   ;;  %v9832_v47 = vld [vmem:[#allocation7 + $0x48] sm:$0xff]   ;;  %v9836_v51 = vld [vmem:[#allocation7 + $0x50] sm:$0xff]   ;;  %s10508_s11 = scalar_lea.vmem %s8366_s1, 128  ;;  %p10513_p5 = scmp.lt.s32.totalorder %s8366_s1, %s8366_s1 }
  0x4f   :  { %v10620_v18 = vsub.s32 %v109_v15, %v111_v16  ;;  %v9830_v45 = vld [vmem:[#allocation7] sm:$0xff]   ;;  %v9833_v48 = vld [vmem:[#allocation7 + $0xc8] sm:$0xff]   ;;  %v9837_v52 = vld [vmem:[#allocation7 + $0xd0] sm:$0xff]   ;;  %p10509_p4 = scmp.ne.s32.totalorder %s8366_s1, %s10508_s11  ;;  %p10514_p6 = scmp.lt.s32.totalorder %s10508_s11, %s10508_s11 }
  0x50   :  { %v9831_v46 = vld [vmem:[#allocation7 + $0x80] sm:$0xff]   ;;  %v9834_v49 = vld [vmem:[#allocation7 + $0x8] sm:$0xff]   ;;  %v9838_v53 = vld [vmem:[#allocation7 + $0x10] sm:$0xff]  }
  0x51   :  { %80 = vadd.xlane.f32.xlu0 %v79_v10  ;;  %v113_v20 = vrot.slane %v102_v17, %v10620_v18  ;;  %v120_v21 = vrot.slane %v106_v19, %v10620_v18  ;;  %v130_v29 = vrot.slane %v103_v26, %v10620_v18  ;;  %v137_v30 = vrot.slane %v123_v27, %v10620_v18  ;;  %v9835_v50 = vld [vmem:[#allocation7 + $0x88] sm:$0xff]   ;;  %v9839_v54 = vld [vmem:[#allocation7 + $0x90] sm:$0xff]   ;;  %v9840_v55 = vld [vmem:[#allocation7 + $0x58] sm:$0xff]   ;;  %p10515_p7 = por %p10514_p6, %p10513_p5 }
  0x52   :  { %86 = vadd.xlane.f32.xlu1 %v85_v11  ;;  %v9841_v56 = vld [vmem:[#allocation7 + $0xd8] sm:$0xff]   ;;  %v9844_v59 = vld [vmem:[#allocation7 + $0x60] sm:$0xff]   ;;  %v9848_v63 = vld [vmem:[#allocation7 + $0x68] sm:$0xff]  }
  0x53   :  { %v121_v22 = vcombine.high %v113_v20, %v113_v20  ;;  %v122_v23 = vcombine.high %v120_v21, %v120_v21  ;;  %v146_v24 = vsel %vm144_vm0, %v113_v20, 0  ;;  %v152_v25 = vsel %vm144_vm0, %v120_v21, 0  ;;  %v9842_v57 = vld [vmem:[#allocation7 + $0x18] sm:$0xff]   ;;  %v9845_v60 = vld [vmem:[#allocation7 + $0xe0] sm:$0xff]   ;;  %v9849_v0 = vld [vmem:[#allocation7 + $0xe8] sm:$0xff]   ;;  %p10516_p8 = pnand %p10515_p7, %p10509_p4 }
  0x54   :  { %v138_v31 = vcombine.high %v130_v29, %v130_v29  ;;  %v139_v32 = vcombine.high %v137_v30, %v137_v30  ;;  %v158_v33 = vsel %vm144_vm0, %v130_v29, 0  ;;  %v164_v34 = vsel %vm144_vm0, %v137_v30, 0  ;;  %v9843_v58 = vld [vmem:[#allocation7 + $0x98] sm:$0xff]   ;;  %v9846_v61 = vld [vmem:[#allocation7 + $0x20] sm:$0xff]   ;;  %v9850_v1 = vld [vmem:[#allocation7 + $0x28] sm:$0xff]  }
  0x55   :  { %8377 = vmatprep.subr.msk.bf16.mxu0 %vm144_vm0, %v121_v22  ;;  %8379 = vmatprep.subr.msk.bf16.mxu1 %vm144_vm0, %v122_v23  ;;  %v9847_v62 = vld [vmem:[#allocation7 + $0xa0] sm:$0xff]   ;;  %v9851_v2 = vld [vmem:[#allocation7 + $0xa8] sm:$0xff]   ;;  %v9852_v3 = vld [vmem:[#allocation7 + $0x70] sm:$0xff]  }
  0x56   :  { %170 = vmatpush1.bf16.msra.mxu0 %v146_v24  ;;  %211 = vmatpush1.bf16.msra.mxu1 %v152_v25  ;;  %v9853_v4 = vld [vmem:[#allocation7 + $0xf0] sm:$0xff]   ;;  %v9856_v7 = vld [vmem:[#allocation7 + $0x78] sm:$0xff]   ;;  %v9860_v11 = vld [vmem:[#allocation7 + $0x140] sm:$0xff]  }
  0x57   :  { %8381 = vmatprep.subr.msk.bf16.mxu0 %vm144_vm0, %v138_v31  ;;  %8383 = vmatprep.subr.msk.bf16.mxu1 %vm144_vm0, %v139_v32  ;;  %v9854_v5 = vld [vmem:[#allocation7 + $0x30] sm:$0xff]   ;;  %v9857_v8 = vld [vmem:[#allocation7 + $0xf8] sm:$0xff]   ;;  %v9861_v12 = vld [vmem:[#allocation7 + $0x1c0] sm:$0xff]  }
  0x58   :  { %v9855_v6 = vld [vmem:[#allocation7 + $0xb0] sm:$0xff]   ;;  %v9858_v9 = vld [vmem:[#allocation7 + $0x38] sm:$0xff]   ;;  %v1023_v13 = vld [vmem:[#allocation5 + $0x10] sm:$0xff] }
  0x59   :  { %v9859_v10 = vld [vmem:[#allocation7 + $0xb8] sm:$0xff]   ;;  %v1027_v14 = vcombine.high %v1023_v13, %v1023_v13  ;;  %v10649_v15 = vrot.slane %v1023_v13, %v10620_v18  ;;  %v1024_v20 = vld [vmem:[#allocation5 + $0x18] sm:$0xff] }
  0x5a   :  { %v1044_v21 = vcombine.high %v1024_v20, %v1024_v20  ;;  %v10663_v22 = vrot.slane %v1024_v20, %v10620_v18  ;;  %v9881_v13 = vld [vmem:[#allocation7 + $0x1e8] sm:$0xff]  }
  0x5b   :  { %v10653_v16 = vsel %vm144_vm0, %v10649_v15, 0  ;;  %v10656_v17 = vrot.slane %v1027_v14, %v10620_v18  ;;  %v9882_v14 = vld [vmem:[#allocation7 + $0x128] sm:$0xff]  }
  0x5c   :  { %v10666_v23 = vrot.slane %v1044_v21, %v10620_v18  ;;  %v10670_v24 = vsel %vm144_vm0, %v10663_v22, 0  ;;  %v9883_v20 = vld [vmem:[#allocation7 + $0x1a8] sm:$0xff]   ;;  %v9884_v21 = vld [vmem:[#allocation7 + $0x170] sm:$0xff]  }
  0x5d   :  { %v10660_v19 = vsel %vm144_vm0, %v10656_v17, 0 }
  0x5e   :  { %v10674_v25 = vsel %vm144_vm0, %v10666_v23, 0 }
  0xda   :  { %v78_v35 = vpop.xlane.xlu0 %77 }
  0xdb   :  { %v84_v36 = vpop.xlane.xlu1 %83 }
  0xde   :  { %v81_v37 = vpop.xlane.xlu0 %80 }
  0xdf   :  { %v89_v38 = vsel %vm88_vm1, %v78_v35, %v81_v37  ;;  %v87_v39 = vpop.xlane.xlu1 %86  ;;  %v9862_v37 = vld [vmem:[#allocation7 + $0x100] sm:$0xff]  }
  0xe0   :  { %v91_v40 = vsel %vm90_vm2, %v89_v38, %v84_v36  ;;  %v9863_v38 = vld [vmem:[#allocation7 + $0x180] sm:$0xff]  }
  0xe1   :  { %v93_v41 = vsel %vm92_vm3, %v91_v40, %v87_v39 }
  0xe2   :  { %v10636_v44 = vpack.c.bf16 %v93_v41, %v93_v41  ;;  %v9864_v41 = vld [vmem:[#allocation7 + $0x148] sm:$0xff]  }
  0xe4   :  { %8378 = vmatmul.mubr.msk.bf16.vlgmr.msra.gmra.mrb[0].mxu0 %vm140_vm4, %v10636_v44  ;;  %8380 = vmatmul.mubr.msk.bf16.vlgmr.msra.gmra.mrb[0].mxu1 %vm140_vm4, %v10636_v44 }
  0xe5   :  { %252 = vmatpush1.bf16.msra.mxu0 %v158_v33  ;;  %293 = vmatpush1.bf16.msra.mxu1 %v164_v34 }
  0xe6   :  { %283 = vmatprep.mubr.bf16.mxu0 %v10545_v28  ;;  %324 = vmatprep.mubr.bf16.mxu1 %v10545_v28 }
  0xe7   :  { %9025 = vmatprep.subr.bf16.mxu0 %v9828_v42  ;;  %9047 = vmatprep.subr.bf16.mxu1 %v9829_v43  ;;  %v9865_v42 = vld [vmem:[#allocation7 + $0x1c8] sm:$0xff]  }
  0xec   :  { %8382 = vmatmul.mubr.msk.bf16.vlgmr.msra.gmra.mrb[4].mxu0 %vm140_vm4, %v10636_v44  ;;  %8384 = vmatmul.mubr.msk.bf16.vlgmr.msra.gmra.mrb[4].mxu1 %vm140_vm4, %v10636_v44 }
  0xed   :  { %9026 = vmatpush3.bf16.msra.mxu0 %v9830_v45  ;;  %9048 = vmatpush3.bf16.msra.mxu1 %v9831_v46 }
  0xee   :  { %9027 = vmatprep.subr.bf16.mxu0 %v9832_v47  ;;  %9049 = vmatprep.subr.bf16.mxu1 %v9833_v48  ;;  %v9866_v48 = vld [vmem:[#allocation7 + $0x108] sm:$0xff]  }
  0xf1   :  { %9028 = vmatpush3.bf16.msra.mxu0 %v9834_v49  ;;  %9050 = vmatpush3.bf16.msra.mxu1 %v9835_v50  ;;  %v9867_v49 = vld [vmem:[#allocation7 + $0x188] sm:$0xff]   ;;  %v9868_v50 = vld [vmem:[#allocation7 + $0x150] sm:$0xff]  }
  0xf2   :  { %9029 = vmatprep.subr.bf16.mxu0 %v9836_v51  ;;  %9051 = vmatprep.subr.bf16.mxu1 %v9837_v52  ;;  %v9869_v51 = vld [vmem:[#allocation7 + $0x1d0] sm:$0xff]  }
  0xf5   :  { %9030 = vmatpush3.bf16.msra.mxu0 %v9838_v53  ;;  %9052 = vmatpush3.bf16.msra.mxu1 %v9839_v54 }
  0xf6   :  { %9031 = vmatprep.subr.bf16.mxu0 %v9840_v55  ;;  %9053 = vmatprep.subr.bf16.mxu1 %v9841_v56 }
  0xf9   :  { %9032 = vmatpush3.bf16.msra.mxu0 %v9842_v57  ;;  %9054 = vmatpush3.bf16.msra.mxu1 %v9843_v58 }
  0xfa   :  { %9033 = vmatprep.subr.bf16.mxu0 %v9844_v59  ;;  %9055 = vmatprep.subr.bf16.mxu1 %v9845_v60 }
  0xfd   :  { %9034 = vmatpush3.bf16.msra.mxu0 %v9846_v61  ;;  %9056 = vmatpush3.bf16.msra.mxu1 %v9847_v62  ;;  %v9870_v62 = vld [vmem:[#allocation7 + $0x110] sm:$0xff]  }
  0xfe   :  { %9035 = vmatprep.subr.bf16.mxu0 %v9848_v63  ;;  %9057 = vmatprep.subr.bf16.mxu1 %v9849_v0  ;;  %v9871_v63 = vld [vmem:[#allocation7 + $0x190] sm:$0xff]  }
 0x101   :  { %9036 = vmatpush3.bf16.msra.mxu0 %v9850_v1  ;;  %9058 = vmatpush3.bf16.msra.mxu1 %v9851_v2  ;;  %v9872_v2 = vld [vmem:[#allocation7 + $0x158] sm:$0xff]  }
 0x102   :  { %9037 = vmatprep.subr.bf16.mxu0 %v9852_v3  ;;  %9059 = vmatprep.subr.bf16.mxu1 %v9853_v4  ;;  %v9873_v3 = vld [vmem:[#allocation7 + $0x1d8] sm:$0xff]  }
 0x105   :  { %9038 = vmatpush3.bf16.msra.mxu0 %v9854_v5  ;;  %9060 = vmatpush3.bf16.msra.mxu1 %v9855_v6  ;;  %v9874_v6 = vld [vmem:[#allocation7 + $0x118] sm:$0xff]  }
 0x106   :  { %9039 = vmatprep.subr.bf16.mxu0 %v9856_v7  ;;  %9061 = vmatprep.subr.bf16.mxu1 %v9857_v8  ;;  %v9875_v7 = vld [vmem:[#allocation7 + $0x198] sm:$0xff]   ;;  %v9876_v8 = vld [vmem:[#allocation7 + $0x160] sm:$0xff]  }
 0x109   :  { %9040 = vmatpush3.bf16.msra.mxu0 %v9858_v9  ;;  %9062 = vmatpush3.bf16.msra.mxu1 %v9859_v10  ;;  %v9877_v9 = vld [vmem:[#allocation7 + $0x1e0] sm:$0xff]  }
 0x10a   :  { %9069 = vmatprep.subr.bf16.mxu0 %v9860_v11  ;;  %9091 = vmatprep.subr.bf16.mxu1 %v9861_v12  ;;  %v9878_v10 = vld [vmem:[#allocation7 + $0x120] sm:$0xff]   ;;  %v9880_v12 = vld [vmem:[#allocation7 + $0x168] sm:$0xff]  }
 0x10b   :  { %v9879_v11 = vld [vmem:[#allocation7 + $0x1a0] sm:$0xff]  }
 0x1b7   :  { %v203_v26 = vpop.f32.mrb[0].mxu0  ;;  %v244_v27 = vpop.f32.mrb[0].mxu1 }
 0x1b8   :  { %v333_v29 = vmax.f32 %v203_v26, 0.0  ;;  %v335_v30 = vmax.f32 %v244_v27, 0.0  ;;  %v205_v31 = vpop.f32.mrb[1].mxu0  ;;  %v246_v32 = vpop.f32.mrb[1].mxu1  ;;  %v9885_v26 = vld [vmem:[#allocation7 + $0x1f0] sm:$0xff]  }
 0x1b9   :  { %v334_v33 = vmax.f32 %v205_v31, 0.0  ;;  %v336_v34 = vmax.f32 %v246_v32, 0.0  ;;  %v207_v35 = vpop.f32.mrb[2].mxu0  ;;  %v248_v36 = vpop.f32.mrb[2].mxu1  ;;  %v9886_v27 = vld [vmem:[#allocation7 + $0x130] sm:$0xff]   ;;  %v9889_v31 = vld [vmem:[#allocation7 + $0x1f8] sm:$0xff]  }
 0x1ba   :  { %v208_v39 = vpop.f32.mrb[3].mxu0  ;;  %v249_v40 = vpop.f32.mrb[3].mxu1  ;;  %v341_v46 = vpack.c.bf16 %v333_v29, %v333_v29  ;;  %v343_v47 = vpack.c.bf16 %v335_v30, %v335_v30  ;;  %v9887_v29 = vld [vmem:[#allocation7 + $0x1b0] sm:$0xff]   ;;  %v9888_v30 = vld [vmem:[#allocation7 + $0x178] sm:$0xff]   ;;  %v1043_v35 = vcombine.high %v10656_v17, %v10656_v17  ;;  %v1060_v17 = vcombine.high %v10666_v23, %v10666_v23  ;;  %v9897_v23 = vld [vmem:[#allocation7 + $0x280] sm:$0xff]  }
 0x1bb   :  { %v342_v43 = vpack.c.bf16 %v334_v33, %v334_v33  ;;  %v344_v45 = vpack.c.bf16 %v336_v34, %v336_v34  ;;  %v9890_v32 = vld [vmem:[#allocation7 + $0x138] sm:$0xff]   ;;  %v1042_v34 = vcombine.high %v10649_v15, %v10649_v15  ;;  %v1059_v15 = vcombine.high %v10663_v22, %v10663_v22  ;;  %v9896_v22 = vld [vmem:[#allocation7 + $0x200] sm:$0xff]   ;;  %v9899_v39 = vld [vmem:[#allocation7 + $0x2c8] sm:$0xff]  }
 0x1bc   :  { %v9891_v33 = vld [vmem:[#allocation7 + $0x1b8] sm:$0xff]   ;;  %v9902_v40 = vld [vmem:[#allocation7 + $0x250] sm:$0xff]  }
 0x1bd   :  { %893 = vmatprep.mubr.bf16.mxu0 %v342_v43  ;;  %933 = vmatprep.mubr.bf16.mxu1 %v344_v45  ;;  %v9905_v43 = vld [vmem:[#allocation7 + $0x290] sm:$0xff]   ;;  %v9906_v45 = vld [vmem:[#allocation7 + $0x258] sm:$0xff]  }
 0x1be   :  { %894 = vmatmul.mubr.bf16.vlgmr.msra.gmra.mrb[8].mxu0 %v341_v46  ;;  %934 = vmatmul.mubr.bf16.vlgmr.msra.gmra.mrb[8].mxu1 %v343_v47  ;;  %v9907_v46 = vld [vmem:[#allocation7 + $0x2d8] sm:$0xff]  }
 0x1bf   :  { %9070 = vmatpush3.bf16.msra.mxu0 %v9862_v37  ;;  %9092 = vmatpush3.bf16.msra.mxu1 %v9863_v38  ;;  %v10676_v52 = vpop.f32.mrb[4].mxu0  ;;  %v10678_v53 = vpop.f32.mrb[4].mxu1  ;;  %v9898_v38 = vld [vmem:[#allocation7 + $0x248] sm:$0xff]   ;;  %v9908_v47 = vld [vmem:[#allocation7 + $0x218] sm:$0xff]  }
 0x1c0   :  { %v337_v54 = vmax.f32 %v10676_v52, 0.0  ;;  %v339_v55 = vmax.f32 %v10678_v53, 0.0  ;;  %v287_v56 = vpop.f32.mrb[5].mxu0  ;;  %v328_v57 = vpop.f32.mrb[5].mxu1  ;;  %9071 = vmatprep.subr.bf16.mxu0 %v9864_v41  ;;  %9093 = vmatprep.subr.bf16.mxu1 %v9865_v42  ;;  %v9903_v41 = vld [vmem:[#allocation7 + $0x2d0] sm:$0xff]   ;;  %v9913_v52 = vld [vmem:[#allocation7 + $0x2a0] sm:$0xff]  }
 0x1c1   :  { %v338_v58 = vmax.f32 %v287_v56, 0.0  ;;  %v340_v59 = vmax.f32 %v328_v57, 0.0  ;;  %v289_v60 = vpop.f32.mrb[6].mxu0  ;;  %v330_v61 = vpop.f32.mrb[6].mxu1  ;;  %v9904_v42 = vld [vmem:[#allocation7 + $0x210] sm:$0xff]   ;;  %v9914_v53 = vld [vmem:[#allocation7 + $0x268] sm:$0xff]  }
 0x1c2   :  { %v290_v0 = vpop.f32.mrb[7].mxu0  ;;  %v331_v1 = vpop.f32.mrb[7].mxu1  ;;  %v345_v36 = vpack.c.bf16 %v337_v54, %v337_v54  ;;  %v347_v37 = vpack.c.bf16 %v339_v55, %v339_v55  ;;  %v9915_v54 = vld [vmem:[#allocation7 + $0x2e8] sm:$0xff]   ;;  %v9918_v57 = vld [vmem:[#allocation7 + $0x270] sm:$0xff]   ;;  %v9922_v61 = vld [vmem:[#allocation7 + $0x278] sm:$0xff]  }
 0x1c3   :  { %v346_v4 = vpack.c.bf16 %v338_v58, %v338_v58  ;;  %v348_v5 = vpack.c.bf16 %v340_v59, %v340_v59  ;;  %9072 = vmatpush3.bf16.msra.mxu0 %v9866_v48  ;;  %9094 = vmatpush3.bf16.msra.mxu1 %v9867_v49  ;;  %v9909_v48 = vld [vmem:[#allocation7 + $0x298] sm:$0xff]   ;;  %v9910_v49 = vld [vmem:[#allocation7 + $0x260] sm:$0xff]   ;;  %v9916_v55 = vld [vmem:[#allocation7 + $0x228] sm:$0xff]  }
 0x1c4   :  { %9073 = vmatprep.subr.bf16.mxu0 %v9868_v50  ;;  %9095 = vmatprep.subr.bf16.mxu1 %v9869_v51  ;;  %v9911_v50 = vld [vmem:[#allocation7 + $0x2e0] sm:$0xff]   ;;  %v9917_v56 = vld [vmem:[#allocation7 + $0x2a8] sm:$0xff]   ;;  %v9919_v58 = vld [vmem:[#allocation7 + $0x2f0] sm:$0xff]  }
 0x1c5   :  { %973 = vmatprep.mubr.bf16.mxu0 %v346_v4  ;;  %1013 = vmatprep.mubr.bf16.mxu1 %v348_v5  ;;  %v9912_v51 = vld [vmem:[#allocation7 + $0x220] sm:$0xff]   ;;  %v9920_v59 = vld [vmem:[#allocation7 + $0x230] sm:$0xff]   ;;  %v9925_v0 = vld [vmem:[#allocation7 + $0x2b8] sm:$0xff]  }
 0x1c6   :  { %v9921_v60 = vld [vmem:[#allocation7 + $0x2b0] sm:$0xff]   ;;  %v9926_v1 = vld [vmem:[#allocation7 + $0x340] sm:$0xff]  }
 0x1c7   :  { %9074 = vmatpush3.bf16.msra.mxu0 %v9870_v62  ;;  %9096 = vmatpush3.bf16.msra.mxu1 %v9871_v63  ;;  %v9923_v62 = vld [vmem:[#allocation7 + $0x2f8] sm:$0xff]  }
 0x1c8   :  { %9075 = vmatprep.subr.bf16.mxu0 %v9872_v2  ;;  %9097 = vmatprep.subr.bf16.mxu1 %v9873_v3  ;;  %v9924_v63 = vld [vmem:[#allocation7 + $0x238] sm:$0xff]   ;;  %v9927_v2 = vld [vmem:[#allocation7 + $0x3c0] sm:$0xff]  }
 0x1cb   :  { %9076 = vmatpush3.bf16.msra.mxu0 %v9874_v6  ;;  %9098 = vmatpush3.bf16.msra.mxu1 %v9875_v7 }
 0x1cc   :  { %9077 = vmatprep.subr.bf16.mxu0 %v9876_v8  ;;  %9099 = vmatprep.subr.bf16.mxu1 %v9877_v9 }
 0x1cf   :  { %9078 = vmatpush3.bf16.msra.mxu0 %v9878_v10  ;;  %9100 = vmatpush3.bf16.msra.mxu1 %v9879_v11 }
 0x1d0   :  { %9079 = vmatprep.subr.bf16.mxu0 %v9880_v12  ;;  %9101 = vmatprep.subr.bf16.mxu1 %v9881_v13 }
 0x1d3   :  { %9080 = vmatpush3.bf16.msra.mxu0 %v9882_v14  ;;  %9102 = vmatpush3.bf16.msra.mxu1 %v9883_v20 }
 0x1d4   :  { %9081 = vmatprep.subr.bf16.mxu0 %v9884_v21  ;;  %9103 = vmatprep.subr.bf16.mxu1 %v9885_v26 }
 0x1d7   :  { %9082 = vmatpush3.bf16.msra.mxu0 %v9886_v27  ;;  %9104 = vmatpush3.bf16.msra.mxu1 %v9887_v29 }
 0x1d8   :  { %9083 = vmatprep.subr.bf16.mxu0 %v9888_v30  ;;  %9105 = vmatprep.subr.bf16.mxu1 %v9889_v31 }
 0x1db   :  { %9084 = vmatpush3.bf16.msra.mxu0 %v9890_v32  ;;  %9106 = vmatpush3.bf16.msra.mxu1 %v9891_v33 }
 0x1dc   :  { %8449 = vmatprep.subr.msk.bf16.mxu0 %vm144_vm0, %v1042_v34  ;;  %8451 = vmatprep.subr.msk.bf16.mxu1 %vm144_vm0, %v1043_v35 }
 0x1de   :  { %974 = vmatmul.mubr.bf16.vlgmr.msra.gmra.mrb[12].mxu0 %v345_v36  ;;  %1014 = vmatmul.mubr.bf16.vlgmr.msra.gmra.mrb[12].mxu1 %v347_v37 }
 0x1df   :  { %1086 = vmatpush1.bf16.msra.mxu0 %v10653_v16  ;;  %1127 = vmatpush1.bf16.msra.mxu1 %v10660_v19  ;;  %v9894_v16 = vld [vmem:[#allocation7 + $0x240] sm:$0xff]  }
 0x1e0   :  { %1117 = vmatprep.mubr.bf16.mxu0 %v10545_v28  ;;  %1158 = vmatprep.mubr.bf16.mxu1 %v10545_v28  ;;  %v9895_v19 = vld [vmem:[#allocation7 + $0x2c0] sm:$0xff]  }
 0x1e1   :  { %8453 = vmatprep.subr.msk.bf16.mxu0 %vm144_vm0, %v1059_v15  ;;  %8455 = vmatprep.subr.msk.bf16.mxu1 %vm144_vm0, %v1060_v17 }
 0x1e6   :  { %8450 = vmatmul.mubr.msk.bf16.vlgmr.msra.gmra.mrb[16].mxu0 %vm140_vm4, %v10636_v44  ;;  %8452 = vmatmul.mubr.msk.bf16.vlgmr.msra.gmra.mrb[16].mxu1 %vm140_vm4, %v10636_v44 }
 0x1e7   :  { %1168 = vmatpush1.bf16.msra.mxu0 %v10670_v24  ;;  %1209 = vmatpush1.bf16.msra.mxu1 %v10674_v25  ;;  %v9900_v24 = vld [vmem:[#allocation7 + $0x208] sm:$0xff]  }
 0x1e8   :  { %1199 = vmatprep.mubr.bf16.mxu0 %v10545_v28  ;;  %1240 = vmatprep.mubr.bf16.mxu1 %v10545_v28  ;;  %v9901_v25 = vld [vmem:[#allocation7 + $0x288] sm:$0xff]  }
 0x1e9   :  { %9113 = vmatprep.subr.bf16.mxu0 %v9894_v16  ;;  %9135 = vmatprep.subr.bf16.mxu1 %v9895_v19 }
 0x1ee   :  { %8454 = vmatmul.mubr.msk.bf16.vlgmr.msra.gmra.mrb[20].mxu0 %vm140_vm4, %v10636_v44  ;;  %8456 = vmatmul.mubr.msk.bf16.vlgmr.msra.gmra.mrb[20].mxu1 %vm140_vm4, %v10636_v44 }
 0x1ef   :  { %9114 = vmatpush3.bf16.msra.mxu0 %v9896_v22  ;;  %9136 = vmatpush3.bf16.msra.mxu1 %v9897_v23 }
 0x1f0   :  { %9115 = vmatprep.subr.bf16.mxu0 %v9898_v38  ;;  %9137 = vmatprep.subr.bf16.mxu1 %v9899_v39 }
 0x1f3   :  { %9116 = vmatpush3.bf16.msra.mxu0 %v9900_v24  ;;  %9138 = vmatpush3.bf16.msra.mxu1 %v9901_v25 }
 0x1f4   :  { %9117 = vmatprep.subr.bf16.mxu0 %v9902_v40  ;;  %9139 = vmatprep.subr.bf16.mxu1 %v9903_v41 }
 0x1f7   :  { %9118 = vmatpush3.bf16.msra.mxu0 %v9904_v42  ;;  %9140 = vmatpush3.bf16.msra.mxu1 %v9905_v43  ;;  %v9928_v42 = vld [vmem:[#allocation7 + $0x300] sm:$0xff]  }
 0x1f8   :  { %9119 = vmatprep.subr.bf16.mxu0 %v9906_v45  ;;  %9141 = vmatprep.subr.bf16.mxu1 %v9907_v46  ;;  %v9929_v43 = vld [vmem:[#allocation7 + $0x380] sm:$0xff]  }
 0x1fb   :  { %9120 = vmatpush3.bf16.msra.mxu0 %v9908_v47  ;;  %9142 = vmatpush3.bf16.msra.mxu1 %v9909_v48  ;;  %v9930_v47 = vld [vmem:[#allocation7 + $0x348] sm:$0xff]  }
 0x1fc   :  { %9121 = vmatprep.subr.bf16.mxu0 %v9910_v49  ;;  %9143 = vmatprep.subr.bf16.mxu1 %v9911_v50  ;;  %v9931_v48 = vld [vmem:[#allocation7 + $0x3c8] sm:$0xff]  }
 0x1ff   :  { %9122 = vmatpush3.bf16.msra.mxu0 %v9912_v51  ;;  %9144 = vmatpush3.bf16.msra.mxu1 %v9913_v52  ;;  %v9932_v51 = vld [vmem:[#allocation7 + $0x308] sm:$0xff]  }
 0x200   :  { %9123 = vmatprep.subr.bf16.mxu0 %v9914_v53  ;;  %9145 = vmatprep.subr.bf16.mxu1 %v9915_v54  ;;  %v9933_v52 = vld [vmem:[#allocation7 + $0x388] sm:$0xff]  }
 0x203   :  { %9124 = vmatpush3.bf16.msra.mxu0 %v9916_v55  ;;  %9146 = vmatpush3.bf16.msra.mxu1 %v9917_v56  ;;  %v9934_v55 = vld [vmem:[#allocation7 + $0x350] sm:$0xff]  }
 0x204   :  { %9125 = vmatprep.subr.bf16.mxu0 %v9918_v57  ;;  %9147 = vmatprep.subr.bf16.mxu1 %v9919_v58  ;;  %v9935_v56 = vld [vmem:[#allocation7 + $0x3d0] sm:$0xff]  }
 0x207   :  { %9126 = vmatpush3.bf16.msra.mxu0 %v9920_v59  ;;  %9148 = vmatpush3.bf16.msra.mxu1 %v9921_v60 }
 0x208   :  { %9127 = vmatprep.subr.bf16.mxu0 %v9922_v61  ;;  %9149 = vmatprep.subr.bf16.mxu1 %v9923_v62 }
 0x20b   :  { %9128 = vmatpush3.bf16.msra.mxu0 %v9924_v63  ;;  %9150 = vmatpush3.bf16.msra.mxu1 %v9925_v0 }
 0x20c   :  { %9157 = vmatprep.subr.bf16.mxu0 %v9926_v1  ;;  %9179 = vmatprep.subr.bf16.mxu1 %v9927_v2  ;;  %v9936_v1 = vld [vmem:[#allocation7 + $0x310] sm:$0xff]  }
 0x20d   :  { %v9937_v2 = vld [vmem:[#allocation7 + $0x390] sm:$0xff]  }
 0x291   :  { %v9041_v3 = vpop.f32.mrb[8].mxu0  ;;  %v9063_v4 = vpop.f32.mrb[8].mxu1 }
 0x292   :  { %v9042_v5 = vpop.f32.mrb[9].mxu0  ;;  %v9064_v6 = vpop.f32.mrb[9].mxu1 }
 0x293   :  { %v9043_v7 = vadd.f32 %v9042_v5, %v9041_v3  ;;  %v9065_v8 = vadd.f32 %v9064_v6, %v9063_v4  ;;  %v9044_v9 = vpop.f32.mrb[10].mxu0  ;;  %v9066_v10 = vpop.f32.mrb[10].mxu1  ;;  %v9938_v3 = vld [vmem:[#allocation7 + $0x358] sm:$0xff]  }
 0x294   :  { %v9045_v11 = vpop.f32.mrb[11].mxu0  ;;  %v9067_v12 = vpop.f32.mrb[11].mxu1  ;;  %v9939_v4 = vld [vmem:[#allocation7 + $0x3d8] sm:$0xff]   ;;  %v9944_v9 = vld [vmem:[#allocation7 + $0x320] sm:$0xff]  }
 0x295   :  { %v936_v13 = vadd.f32 %v9065_v8, %v9043_v7  ;;  %v9940_v5 = vld [vmem:[#allocation7 + $0x318] sm:$0xff]   ;;  %v9942_v7 = vld [vmem:[#allocation7 + $0x360] sm:$0xff]   ;;  %v9946_v11 = vld [vmem:[#allocation7 + $0x368] sm:$0xff]  }
 0x296   :  { %v9941_v6 = vld [vmem:[#allocation7 + $0x398] sm:$0xff]   ;;  %v9943_v8 = vld [vmem:[#allocation7 + $0x3e0] sm:$0xff]   ;;  %v9947_v12 = vld [vmem:[#allocation7 + $0x3e8] sm:$0xff]  }
 0x297   :  { %v9945_v10 = vld [vmem:[#allocation7 + $0x3a0] sm:$0xff]  }
 0x2b1   :  { %v9085_v14 = vpop.f32.mrb[12].mxu0  ;;  %v9107_v20 = vpop.f32.mrb[12].mxu1 }
 0x2b2   :  { %v9086_v21 = vpop.f32.mrb[13].mxu0  ;;  %v9108_v26 = vpop.f32.mrb[13].mxu1 }
 0x2b3   :  { %v9087_v27 = vadd.f32 %v9086_v21, %v9085_v14  ;;  %v9109_v29 = vadd.f32 %v9108_v26, %v9107_v20  ;;  %v9088_v30 = vpop.f32.mrb[14].mxu0  ;;  %v9110_v31 = vpop.f32.mrb[14].mxu1  ;;  %v9948_v14 = vld [vmem:[#allocation7 + $0x328] sm:$0xff]   ;;  %v9950_v21 = vld [vmem:[#allocation7 + $0x370] sm:$0xff]  }
 0x2b4   :  { %v9089_v32 = vpop.f32.mrb[15].mxu0  ;;  %v9111_v33 = vpop.f32.mrb[15].mxu1  ;;  %v9949_v20 = vld [vmem:[#allocation7 + $0x3a8] sm:$0xff]   ;;  %v9951_v26 = vld [vmem:[#allocation7 + $0x3f0] sm:$0xff]  }
 0x2b5   :  { %v976_v34 = vadd.f32 %v9087_v27, %v936_v13  ;;  %v1940_v13 = vld [vmem:[#allocation5 + $0x20] sm:$0xff]  ;;  %v9954_v32 = vld [vmem:[#allocation7 + $0x378] sm:$0xff]  }
 0x2b6   :  { %v1944_v27 = vcombine.high %v1940_v13, %v1940_v13  ;;  %v9952_v30 = vld [vmem:[#allocation7 + $0x330] sm:$0xff]   ;;  %v9955_v33 = vld [vmem:[#allocation7 + $0x3f8] sm:$0xff]  }
 0x2b7   :  { %v10716_v35 = vadd.f32 %v9109_v29, %v976_v34  ;;  %v1941_v29 = vld [vmem:[#allocation5 + $0x28] sm:$0xff]  ;;  %v9953_v31 = vld [vmem:[#allocation7 + $0x3b0] sm:$0xff]   ;;  %v1951_v34 = vrot.slane %v1940_v13, %v10620_v18 }
 0x2b8   :  { %v9990_v13 = vld [vmem:[#allocation7 + $0x438] sm:$0xff]  }
 0x2b9   :  { %v1119_v36 = vpop.f32.mrb[16].mxu0  ;;  %v1160_v37 = vpop.f32.mrb[16].mxu1 }
 0x2ba   :  { %v1249_v15 = vmax.f32 %v1119_v36, 0.0  ;;  %v1251_v17 = vmax.f32 %v1160_v37, 0.0  ;;  %v1121_v16 = vpop.f32.mrb[17].mxu0  ;;  %v1162_v19 = vpop.f32.mrb[17].mxu1  ;;  %v1958_v36 = vrot.slane %v1944_v27, %v10620_v18  ;;  %v1961_v37 = vcombine.high %v1941_v29, %v1941_v29 }
 0x2bb   :  { %v1250_v22 = vmax.f32 %v1121_v16, 0.0  ;;  %v1252_v23 = vmax.f32 %v1162_v19, 0.0  ;;  %v1123_v38 = vpop.f32.mrb[18].mxu0  ;;  %v1164_v39 = vpop.f32.mrb[18].mxu1 }
 0x2bc   :  { %v1124_v24 = vpop.f32.mrb[19].mxu0  ;;  %v1165_v25 = vpop.f32.mrb[19].mxu1  ;;  %v1257_v45 = vpack.c.bf16 %v1249_v15, %v1249_v15  ;;  %v1259_v46 = vpack.c.bf16 %v1251_v17, %v1251_v17  ;;  %v9956_v15 = vld [vmem:[#allocation7 + $0x338] sm:$0xff]   ;;  %v1968_v38 = vrot.slane %v1941_v29, %v10620_v18  ;;  %v1975_v39 = vrot.slane %v1961_v37, %v10620_v18 }
 0x2bd   :  { %v1258_v40 = vpack.c.bf16 %v1250_v22, %v1250_v22  ;;  %v1260_v41 = vpack.c.bf16 %v1252_v23, %v1252_v23  ;;  %v9957_v17 = vld [vmem:[#allocation7 + $0x3b8] sm:$0xff]   ;;  %v1959_v22 = vcombine.high %v1951_v34, %v1951_v34  ;;  %v1960_v23 = vcombine.high %v1958_v36, %v1958_v36 }
 0x2bf   :  { %1810 = vmatprep.mubr.bf16.mxu0 %v1258_v40  ;;  %1850 = vmatprep.mubr.bf16.mxu1 %v1260_v41  ;;  %v1979_v40 = vsel %vm144_vm0, %v1951_v34, 0  ;;  %v1985_v41 = vsel %vm144_vm0, %v1958_v36, 0 }
 0x2c0   :  { %1811 = vmatmul.mubr.bf16.vlgmr.msra.gmra.mrb[24].mxu0 %v1257_v45  ;;  %1851 = vmatmul.mubr.bf16.vlgmr.msra.gmra.mrb[24].mxu1 %v1259_v46  ;;  %v1991_v45 = vsel %vm144_vm0, %v1968_v38, 0  ;;  %v1997_v46 = vsel %vm144_vm0, %v1975_v39, 0 }
 0x2c1   :  { %9158 = vmatpush3.bf16.msra.mxu0 %v9928_v42  ;;  %9180 = vmatpush3.bf16.msra.mxu1 %v9929_v43  ;;  %v10718_v49 = vpop.f32.mrb[20].mxu0  ;;  %v10720_v50 = vpop.f32.mrb[20].mxu1  ;;  %v1976_v42 = vcombine.high %v1968_v38, %v1968_v38  ;;  %v1977_v43 = vcombine.high %v1975_v39, %v1975_v39 }
 0x2c2   :  { %v1203_v53 = vpop.f32.mrb[21].mxu0  ;;  %v1244_v54 = vpop.f32.mrb[21].mxu1  ;;  %9159 = vmatprep.subr.bf16.mxu0 %v9930_v47  ;;  %9181 = vmatprep.subr.bf16.mxu1 %v9931_v48  ;;  %v1253_v16 = vmax.f32 %v10718_v49, 0.0  ;;  %v1255_v19 = vmax.f32 %v10720_v50, 0.0  ;;  %v9960_v47 = vld [vmem:[#allocation7 + $0x440] sm:$0xff]  }
 0x2c3   :  { %v1254_v57 = vmax.f32 %v1203_v53, 0.0  ;;  %v1256_v58 = vmax.f32 %v1244_v54, 0.0  ;;  %v1205_v59 = vpop.f32.mrb[22].mxu0  ;;  %v1246_v60 = vpop.f32.mrb[22].mxu1  ;;  %v9961_v48 = vld [vmem:[#allocation7 + $0x4c0] sm:$0xff]   ;;  %v9966_v53 = vld [vmem:[#allocation7 + $0x408] sm:$0xff]  }
 0x2c4   :  { %v1206_v61 = vpop.f32.mrb[23].mxu0  ;;  %v1247_v62 = vpop.f32.mrb[23].mxu1  ;;  %v1261_v24 = vpack.c.bf16 %v1253_v16, %v1253_v16  ;;  %v1263_v25 = vpack.c.bf16 %v1255_v19, %v1255_v19  ;;  %v9962_v49 = vld [vmem:[#allocation7 + $0x400] sm:$0xff]   ;;  %v9967_v54 = vld [vmem:[#allocation7 + $0x488] sm:$0xff]   ;;  %v9972_v59 = vld [vmem:[#allocation7 + $0x458] sm:$0xff]  }
 0x2c5   :  { %v1262_v63 = vpack.c.bf16 %v1254_v57, %v1254_v57  ;;  %v1264_v0 = vpack.c.bf16 %v1256_v58, %v1256_v58  ;;  %9160 = vmatpush3.bf16.msra.mxu0 %v9932_v51  ;;  %9182 = vmatpush3.bf16.msra.mxu1 %v9933_v52  ;;  %v9963_v50 = vld [vmem:[#allocation7 + $0x480] sm:$0xff]   ;;  %v9964_v51 = vld [vmem:[#allocation7 + $0x448] sm:$0xff]   ;;  %v9970_v57 = vld [vmem:[#allocation7 + $0x410] sm:$0xff]  }
 0x2c6   :  { %9161 = vmatprep.subr.bf16.mxu0 %v9934_v55  ;;  %9183 = vmatprep.subr.bf16.mxu1 %v9935_v56  ;;  %v9965_v52 = vld [vmem:[#allocation7 + $0x4c8] sm:$0xff]   ;;  %v9968_v55 = vld [vmem:[#allocation7 + $0x450] sm:$0xff]   ;;  %v9973_v60 = vld [vmem:[#allocation7 + $0x4d8] sm:$0xff]  }
 0x2c7   :  { %1890 = vmatprep.mubr.bf16.mxu0 %v1262_v63  ;;  %1930 = vmatprep.mubr.bf16.mxu1 %v1264_v0  ;;  %v9969_v56 = vld [vmem:[#allocation7 + $0x4d0] sm:$0xff]   ;;  %v9974_v61 = vld [vmem:[#allocation7 + $0x418] sm:$0xff]   ;;  %v9976_v63 = vld [vmem:[#allocation7 + $0x460] sm:$0xff]  }
 0x2c8   :  { %v9971_v58 = vld [vmem:[#allocation7 + $0x490] sm:$0xff]   ;;  %v9975_v62 = vld [vmem:[#allocation7 + $0x498] sm:$0xff]   ;;  %v9977_v0 = vld [vmem:[#allocation7 + $0x4e0] sm:$0xff]  }
 0x2c9   :  { %9162 = vmatpush3.bf16.msra.mxu0 %v9936_v1  ;;  %9184 = vmatpush3.bf16.msra.mxu1 %v9937_v2  ;;  %v9978_v1 = vld [vmem:[#allocation7 + $0x420] sm:$0xff]  }
 0x2ca   :  { %9163 = vmatprep.subr.bf16.mxu0 %v9938_v3  ;;  %9185 = vmatprep.subr.bf16.mxu1 %v9939_v4  ;;  %v9979_v2 = vld [vmem:[#allocation7 + $0x4a0] sm:$0xff]   ;;  %v9980_v3 = vld [vmem:[#allocation7 + $0x468] sm:$0xff]  }
 0x2cb   :  { %v9981_v4 = vld [vmem:[#allocation7 + $0x4e8] sm:$0xff]  }
 0x2cd   :  { %9164 = vmatpush3.bf16.msra.mxu0 %v9940_v5  ;;  %9186 = vmatpush3.bf16.msra.mxu1 %v9941_v6  ;;  %v9982_v5 = vld [vmem:[#allocation7 + $0x428] sm:$0xff]  }
 0x2ce   :  { %9165 = vmatprep.subr.bf16.mxu0 %v9942_v7  ;;  %9187 = vmatprep.subr.bf16.mxu1 %v9943_v8  ;;  %v9983_v6 = vld [vmem:[#allocation7 + $0x4a8] sm:$0xff]   ;;  %v9984_v7 = vld [vmem:[#allocation7 + $0x470] sm:$0xff]  }
 0x2cf   :  { %v9985_v8 = vld [vmem:[#allocation7 + $0x4f0] sm:$0xff]  }
 0x2d1   :  { %9166 = vmatpush3.bf16.msra.mxu0 %v9944_v9  ;;  %9188 = vmatpush3.bf16.msra.mxu1 %v9945_v10  ;;  %v9986_v9 = vld [vmem:[#allocation7 + $0x430] sm:$0xff]  }
 0x2d2   :  { %9167 = vmatprep.subr.bf16.mxu0 %v9946_v11  ;;  %9189 = vmatprep.subr.bf16.mxu1 %v9947_v12  ;;  %v9987_v10 = vld [vmem:[#allocation7 + $0x4b0] sm:$0xff]   ;;  %v9988_v11 = vld [vmem:[#allocation7 + $0x478] sm:$0xff]  }
 0x2d3   :  { %v9989_v12 = vld [vmem:[#allocation7 + $0x4f8] sm:$0xff]  }
 0x2d5   :  { %9168 = vmatpush3.bf16.msra.mxu0 %v9948_v14  ;;  %9190 = vmatpush3.bf16.msra.mxu1 %v9949_v20  ;;  %v9991_v14 = vld [vmem:[#allocation7 + $0x4b8] sm:$0xff]   ;;  %v9992_v20 = vld [vmem:[#allocation7 + $0x540] sm:$0xff]  }
 0x2d6   :  { %9169 = vmatprep.subr.bf16.mxu0 %v9950_v21  ;;  %9191 = vmatprep.subr.bf16.mxu1 %v9951_v26  ;;  %v9993_v21 = vld [vmem:[#allocation7 + $0x5c0] sm:$0xff]  }
 0x2d9   :  { %9170 = vmatpush3.bf16.msra.mxu0 %v9952_v30  ;;  %9192 = vmatpush3.bf16.msra.mxu1 %v9953_v31 }
 0x2da   :  { %9171 = vmatprep.subr.bf16.mxu0 %v9954_v32  ;;  %9193 = vmatprep.subr.bf16.mxu1 %v9955_v33 }
 0x2dd   :  { %9172 = vmatpush3.bf16.msra.mxu0 %v9956_v15  ;;  %9194 = vmatpush3.bf16.msra.mxu1 %v9957_v17 }
 0x2de   :  { %8521 = vmatprep.subr.msk.bf16.mxu0 %vm144_vm0, %v1959_v22  ;;  %8523 = vmatprep.subr.msk.bf16.mxu1 %vm144_vm0, %v1960_v23 }
 0x2e0   :  { %1891 = vmatmul.mubr.bf16.vlgmr.msra.gmra.mrb[28].mxu0 %v1261_v24  ;;  %1931 = vmatmul.mubr.bf16.vlgmr.msra.gmra.mrb[28].mxu1 %v1263_v25  ;;  %v8376_v25 = vld [vmem:[#allocation8] ss:$0 sm:$0xff] }
 0x2e1   :  { %2003 = vmatpush1.bf16.msra.mxu0 %v1979_v40  ;;  %2044 = vmatpush1.bf16.msra.mxu1 %v1985_v41 }
 0x2e2   :  { %2034 = vmatprep.mubr.bf16.mxu0 %v10545_v28  ;;  %2075 = vmatprep.mubr.bf16.mxu1 %v10545_v28 }
 0x2e3   :  { %8525 = vmatprep.subr.msk.bf16.mxu0 %vm144_vm0, %v1976_v42  ;;  %8527 = vmatprep.subr.msk.bf16.mxu1 %vm144_vm0, %v1977_v43  ;;  %v1021_v43 = vadd.f32 %v8376_v25, %v10716_v35  ;;  %v2858_v25 = vld [vmem:[#allocation5 + $0x38] sm:$0xff] }
 0x2e8   :  { %8522 = vmatmul.mubr.msk.bf16.vlgmr.msra.gmra.mrb[32].mxu0 %vm140_vm4, %v10636_v44  ;;  %8524 = vmatmul.mubr.msk.bf16.vlgmr.msra.gmra.mrb[32].mxu1 %vm140_vm4, %v10636_v44 }
 0x2e9   :  { %2085 = vmatpush1.bf16.msra.mxu0 %v1991_v45  ;;  %2126 = vmatpush1.bf16.msra.mxu1 %v1997_v46 }
 0x2ea   :  { %2116 = vmatprep.mubr.bf16.mxu0 %v10545_v28  ;;  %2157 = vmatprep.mubr.bf16.mxu1 %v10545_v28 }
 0x2eb   :  { %9201 = vmatprep.subr.bf16.mxu0 %v9960_v47  ;;  %9223 = vmatprep.subr.bf16.mxu1 %v9961_v48 }
 0x2f0   :  { %8526 = vmatmul.mubr.msk.bf16.vlgmr.msra.gmra.mrb[36].mxu0 %vm140_vm4, %v10636_v44  ;;  %8528 = vmatmul.mubr.msk.bf16.vlgmr.msra.gmra.mrb[36].mxu1 %vm140_vm4, %v10636_v44 }
 0x2f1   :  { %9202 = vmatpush3.bf16.msra.mxu0 %v9962_v49  ;;  %9224 = vmatpush3.bf16.msra.mxu1 %v9963_v50 }
 0x2f2   :  { %9203 = vmatprep.subr.bf16.mxu0 %v9964_v51  ;;  %9225 = vmatprep.subr.bf16.mxu1 %v9965_v52 }
 0x2f5   :  { %9204 = vmatpush3.bf16.msra.mxu0 %v9966_v53  ;;  %9226 = vmatpush3.bf16.msra.mxu1 %v9967_v54 }
 0x2f6   :  { %9205 = vmatprep.subr.bf16.mxu0 %v9968_v55  ;;  %9227 = vmatprep.subr.bf16.mxu1 %v9969_v56 }
 0x2f9   :  { %9206 = vmatpush3.bf16.msra.mxu0 %v9970_v57  ;;  %9228 = vmatpush3.bf16.msra.mxu1 %v9971_v58 }
 0x2fa   :  { %9207 = vmatprep.subr.bf16.mxu0 %v9972_v59  ;;  %9229 = vmatprep.subr.bf16.mxu1 %v9973_v60 }
 0x2fd   :  { %9208 = vmatpush3.bf16.msra.mxu0 %v9974_v61  ;;  %9230 = vmatpush3.bf16.msra.mxu1 %v9975_v62  ;;  %v9994_v61 = vld [vmem:[#allocation7 + $0x500] sm:$0xff]  }
 0x2fe   :  { %9209 = vmatprep.subr.bf16.mxu0 %v9976_v63  ;;  %9231 = vmatprep.subr.bf16.mxu1 %v9977_v0  ;;  %v9995_v62 = vld [vmem:[#allocation7 + $0x580] sm:$0xff]   ;;  %v9996_v0 = vld [vmem:[#allocation7 + $0x548] sm:$0xff]  }
 0x301   :  { %9210 = vmatpush3.bf16.msra.mxu0 %v9978_v1  ;;  %9232 = vmatpush3.bf16.msra.mxu1 %v9979_v2  ;;  %v9997_v1 = vld [vmem:[#allocation7 + $0x5c8] sm:$0xff]  }
 0x302   :  { %9211 = vmatprep.subr.bf16.mxu0 %v9980_v3  ;;  %9233 = vmatprep.subr.bf16.mxu1 %v9981_v4  ;;  %v9998_v4 = vld [vmem:[#allocation7 + $0x508] sm:$0xff]  }
 0x305   :  { %9212 = vmatpush3.bf16.msra.mxu0 %v9982_v5  ;;  %9234 = vmatpush3.bf16.msra.mxu1 %v9983_v6  ;;  %v9999_v5 = vld [vmem:[#allocation7 + $0x588] sm:$0xff]  }
 0x306   :  { %9213 = vmatprep.subr.bf16.mxu0 %v9984_v7  ;;  %9235 = vmatprep.subr.bf16.mxu1 %v9985_v8  ;;  %v10000_v8 = vld [vmem:[#allocation7 + $0x550] sm:$0xff]  }
 0x309   :  { %9214 = vmatpush3.bf16.msra.mxu0 %v9986_v9  ;;  %9236 = vmatpush3.bf16.msra.mxu1 %v9987_v10  ;;  %v10001_v9 = vld [vmem:[#allocation7 + $0x5d0] sm:$0xff]  }
 0x30a   :  { %9215 = vmatprep.subr.bf16.mxu0 %v9988_v11  ;;  %9237 = vmatprep.subr.bf16.mxu1 %v9989_v12 }
 0x30d   :  { %9216 = vmatpush3.bf16.msra.mxu0 %v9990_v13  ;;  %9238 = vmatpush3.bf16.msra.mxu1 %v9991_v14 }
 0x30e   :  { %9245 = vmatprep.subr.bf16.mxu0 %v9992_v20  ;;  %9267 = vmatprep.subr.bf16.mxu1 %v9993_v21 }
 0x393   :  { %v9129_v26 = vpop.f32.mrb[24].mxu0  ;;  %v9151_v27 = vpop.f32.mrb[24].mxu1 }
 0x394   :  { %v9130_v29 = vpop.f32.mrb[25].mxu0  ;;  %v9152_v30 = vpop.f32.mrb[25].mxu1 }
 0x395   :  { %v9131_v31 = vadd.f32 %v9130_v29, %v9129_v26  ;;  %v9153_v32 = vadd.f32 %v9152_v30, %v9151_v27  ;;  %v9132_v33 = vpop.f32.mrb[26].mxu0  ;;  %v9154_v34 = vpop.f32.mrb[26].mxu1  ;;  %v10002_v27 = vld [vmem:[#allocation7 + $0x510] sm:$0xff]   ;;  %v10004_v30 = vld [vmem:[#allocation7 + $0x558] sm:$0xff]  }
 0x396   :  { %v9133_v36 = vpop.f32.mrb[27].mxu0  ;;  %v9155_v37 = vpop.f32.mrb[27].mxu1  ;;  %v10003_v29 = vld [vmem:[#allocation7 + $0x590] sm:$0xff]   ;;  %v10007_v33 = vld [vmem:[#allocation7 + $0x598] sm:$0xff]   ;;  %v10008_v34 = vld [vmem:[#allocation7 + $0x560] sm:$0xff]  }
 0x397   :  { %v1853_v15 = vadd.f32 %v9153_v32, %v9131_v31  ;;  %v10005_v31 = vld [vmem:[#allocation7 + $0x5d8] sm:$0xff]   ;;  %v10009_v36 = vld [vmem:[#allocation7 + $0x5e0] sm:$0xff]  }
 0x398   :  { %v10006_v32 = vld [vmem:[#allocation7 + $0x518] sm:$0xff]   ;;  %v10010_v37 = vld [vmem:[#allocation7 + $0x520] sm:$0xff]  }
 0x3b3   :  { %v9173_v17 = vpop.f32.mrb[28].mxu0  ;;  %v9195_v16 = vpop.f32.mrb[28].mxu1 }
 0x3b4   :  { %v9174_v19 = vpop.f32.mrb[29].mxu0  ;;  %v9196_v22 = vpop.f32.mrb[29].mxu1 }
 0x3b5   :  { %v9175_v23 = vadd.f32 %v9174_v19, %v9173_v17  ;;  %v9197_v38 = vadd.f32 %v9196_v22, %v9195_v16  ;;  %v9176_v39 = vpop.f32.mrb[30].mxu0  ;;  %v9198_v24 = vpop.f32.mrb[30].mxu1  ;;  %v10012_v17 = vld [vmem:[#allocation7 + $0x568] sm:$0xff]   ;;  %v2857_v19 = vld [vmem:[#allocation5 + $0x30] sm:$0xff] }
 0x3b6   :  { %v9177_v40 = vpop.f32.mrb[31].mxu0  ;;  %v9199_v41 = vpop.f32.mrb[31].mxu1  ;;  %v10013_v16 = vld [vmem:[#allocation7 + $0x5e8] sm:$0xff]   ;;  %v10017_v39 = vld [vmem:[#allocation7 + $0x5f0] sm:$0xff]   ;;  %v2861_v24 = vcombine.high %v2857_v19, %v2857_v19 }
 0x3b7   :  { %v1893_v42 = vadd.f32 %v9175_v23, %v1853_v15  ;;  %v10011_v15 = vld [vmem:[#allocation7 + $0x5a0] sm:$0xff]   ;;  %v10014_v22 = vld [vmem:[#allocation7 + $0x528] sm:$0xff]   ;;  %v10018_v40 = vld [vmem:[#allocation7 + $0x530] sm:$0xff]  }
 0x3b8   :  { %v10015_v23 = vld [vmem:[#allocation7 + $0x5a8] sm:$0xff]   ;;  %v10019_v41 = vld [vmem:[#allocation7 + $0x5b0] sm:$0xff]  }
 0x3b9   :  { %v1933_v45 = vadd.f32 %v9197_v38, %v1893_v42  ;;  %v10016_v38 = vld [vmem:[#allocation7 + $0x570] sm:$0xff]   ;;  %v10020_v42 = vld [vmem:[#allocation7 + $0x578] sm:$0xff]  }
 0x3bb   :  { %v10749_v46 = vadd.f32 %v1933_v45, %v1021_v43  ;;  %v2036_v47 = vpop.f32.mrb[32].mxu0  ;;  %v2077_v48 = vpop.f32.mrb[32].mxu1  ;;  %v10021_v43 = vld [vmem:[#allocation7 + $0x5f8] sm:$0xff]   ;;  %v2868_v45 = vrot.slane %v2857_v19, %v10620_v18 }
 0x3bc   :  { %v2166_v49 = vmax.f32 %v2036_v47, 0.0  ;;  %v2168_v50 = vmax.f32 %v2077_v48, 0.0  ;;  %v2038_v51 = vpop.f32.mrb[33].mxu0  ;;  %v2079_v52 = vpop.f32.mrb[33].mxu1  ;;  %v2875_v47 = vrot.slane %v2861_v24, %v10620_v18  ;;  %v2878_v48 = vcombine.high %v2858_v25, %v2858_v25  ;;  %v10056_v19 = vld [vmem:[#allocation7 + $0x638] sm:$0xff]  }
 0x3bd   :  { %v2167_v53 = vmax.f32 %v2038_v51, 0.0  ;;  %v2169_v54 = vmax.f32 %v2079_v52, 0.0  ;;  %v2040_v55 = vpop.f32.mrb[34].mxu0  ;;  %v2081_v56 = vpop.f32.mrb[34].mxu1 }
 0x3be   :  { %v2041_v57 = vpop.f32.mrb[35].mxu0  ;;  %v2082_v58 = vpop.f32.mrb[35].mxu1  ;;  %v2174_v35 = vpack.c.bf16 %v2166_v49, %v2166_v49  ;;  %v2176_v63 = vpack.c.bf16 %v2168_v50, %v2168_v50  ;;  %v10022_v49 = vld [vmem:[#allocation7 + $0x538] sm:$0xff]   ;;  %v2885_v55 = vrot.slane %v2858_v25, %v10620_v18  ;;  %v2892_v56 = vrot.slane %v2878_v48, %v10620_v18 }
 0x3bf   :  { %v2175_v59 = vpack.c.bf16 %v2167_v53, %v2167_v53  ;;  %v2177_v60 = vpack.c.bf16 %v2169_v54, %v2169_v54  ;;  %v10023_v50 = vld [vmem:[#allocation7 + $0x5b8] sm:$0xff]   ;;  %v2876_v53 = vcombine.high %v2868_v45, %v2868_v45  ;;  %v2877_v54 = vcombine.high %v2875_v47, %v2875_v47 }
 0x3c1   :  { %2727 = vmatprep.mubr.bf16.mxu0 %v2175_v59  ;;  %2767 = vmatprep.mubr.bf16.mxu1 %v2177_v60  ;;  %v2896_v59 = vsel %vm144_vm0, %v2868_v45, 0  ;;  %v2902_v60 = vsel %vm144_vm0, %v2875_v47, 0 }
 0x3c2   :  { %2728 = vmatmul.mubr.bf16.vlgmr.msra.gmra.mrb[40].mxu0 %v2174_v35  ;;  %2768 = vmatmul.mubr.bf16.vlgmr.msra.gmra.mrb[40].mxu1 %v2176_v63  ;;  %v2908_v35 = vsel %vm144_vm0, %v2885_v55, 0  ;;  %v2914_v63 = vsel %vm144_vm0, %v2892_v56, 0 }
 0x3c3   :  { %9246 = vmatpush3.bf16.msra.mxu0 %v9994_v61  ;;  %9268 = vmatpush3.bf16.msra.mxu1 %v9995_v62  ;;  %v10751_v2 = vpop.f32.mrb[36].mxu0  ;;  %v10753_v3 = vpop.f32.mrb[36].mxu1  ;;  %v2893_v61 = vcombine.high %v2885_v55, %v2885_v55  ;;  %v2894_v62 = vcombine.high %v2892_v56, %v2892_v56 }
 0x3c4   :  { %v2120_v6 = vpop.f32.mrb[37].mxu0  ;;  %v2161_v7 = vpop.f32.mrb[37].mxu1  ;;  %9247 = vmatprep.subr.bf16.mxu0 %v9996_v0  ;;  %9269 = vmatprep.subr.bf16.mxu1 %v9997_v1  ;;  %v2170_v51 = vmax.f32 %v10751_v2, 0.0  ;;  %v2172_v52 = vmax.f32 %v10753_v3, 0.0  ;;  %v10026_v0 = vld [vmem:[#allocation7 + $0x640] sm:$0xff]  }
 0x3c5   :  { %v2171_v10 = vmax.f32 %v2120_v6, 0.0  ;;  %v2173_v11 = vmax.f32 %v2161_v7, 0.0  ;;  %v2122_v12 = vpop.f32.mrb[38].mxu0  ;;  %v2163_v13 = vpop.f32.mrb[38].mxu1  ;;  %v10027_v1 = vld [vmem:[#allocation7 + $0x6c0] sm:$0xff]   ;;  %v10032_v6 = vld [vmem:[#allocation7 + $0x608] sm:$0xff]  }
 0x3c6   :  { %v2123_v14 = vpop.f32.mrb[39].mxu0  ;;  %v2164_v20 = vpop.f32.mrb[39].mxu1  ;;  %v2178_v57 = vpack.c.bf16 %v2170_v51, %v2170_v51  ;;  %v2180_v58 = vpack.c.bf16 %v2172_v52, %v2172_v52  ;;  %v10028_v2 = vld [vmem:[#allocation7 + $0x600] sm:$0xff]   ;;  %v10033_v7 = vld [vmem:[#allocation7 + $0x688] sm:$0xff]   ;;  %v10038_v12 = vld [vmem:[#allocation7 + $0x658] sm:$0xff]  }
 0x3c7   :  { %v2179_v21 = vpack.c.bf16 %v2171_v10, %v2171_v10  ;;  %v2181_v26 = vpack.c.bf16 %v2173_v11, %v2173_v11  ;;  %9248 = vmatpush3.bf16.msra.mxu0 %v9998_v4  ;;  %9270 = vmatpush3.bf16.msra.mxu1 %v9999_v5  ;;  %v10029_v3 = vld [vmem:[#allocation7 + $0x680] sm:$0xff]   ;;  %v10030_v4 = vld [vmem:[#allocation7 + $0x648] sm:$0xff]   ;;  %v10036_v10 = vld [vmem:[#allocation7 + $0x610] sm:$0xff]  }
 0x3c8   :  { %9249 = vmatprep.subr.bf16.mxu0 %v10000_v8  ;;  %9271 = vmatprep.subr.bf16.mxu1 %v10001_v9  ;;  %v10031_v5 = vld [vmem:[#allocation7 + $0x6c8] sm:$0xff]   ;;  %v10034_v8 = vld [vmem:[#allocation7 + $0x650] sm:$0xff]   ;;  %v10039_v13 = vld [vmem:[#allocation7 + $0x6d8] sm:$0xff]  }
 0x3c9   :  { %2807 = vmatprep.mubr.bf16.mxu0 %v2179_v21  ;;  %2847 = vmatprep.mubr.bf16.mxu1 %v2181_v26  ;;  %v10035_v9 = vld [vmem:[#allocation7 + $0x6d0] sm:$0xff]   ;;  %v10040_v14 = vld [vmem:[#allocation7 + $0x618] sm:$0xff]   ;;  %v10042_v21 = vld [vmem:[#allocation7 + $0x660] sm:$0xff]  }
 0x3ca   :  { %v10037_v11 = vld [vmem:[#allocation7 + $0x690] sm:$0xff]   ;;  %v10041_v20 = vld [vmem:[#allocation7 + $0x698] sm:$0xff]   ;;  %v10043_v26 = vld [vmem:[#allocation7 + $0x6e0] sm:$0xff]  }
 0x3cb   :  { %9250 = vmatpush3.bf16.msra.mxu0 %v10002_v27  ;;  %9272 = vmatpush3.bf16.msra.mxu1 %v10003_v29  ;;  %v10044_v27 = vld [vmem:[#allocation7 + $0x620] sm:$0xff]  }
 0x3cc   :  { %9251 = vmatprep.subr.bf16.mxu0 %v10004_v30  ;;  %9273 = vmatprep.subr.bf16.mxu1 %v10005_v31  ;;  %v10045_v29 = vld [vmem:[#allocation7 + $0x6a0] sm:$0xff]   ;;  %v10046_v30 = vld [vmem:[#allocation7 + $0x668] sm:$0xff]  }
 0x3cd   :  { %v10047_v31 = vld [vmem:[#allocation7 + $0x6e8] sm:$0xff]  }
 0x3cf   :  { %9252 = vmatpush3.bf16.msra.mxu0 %v10006_v32  ;;  %9274 = vmatpush3.bf16.msra.mxu1 %v10007_v33  ;;  %v10048_v32 = vld [vmem:[#allocation7 + $0x628] sm:$0xff]  }
 0x3d0   :  { %9253 = vmatprep.subr.bf16.mxu0 %v10008_v34  ;;  %9275 = vmatprep.subr.bf16.mxu1 %v10009_v36  ;;  %v10049_v33 = vld [vmem:[#allocation7 + $0x6a8] sm:$0xff]   ;;  %v10050_v34 = vld [vmem:[#allocation7 + $0x670] sm:$0xff]  }
 0x3d1   :  { %v10051_v36 = vld [vmem:[#allocation7 + $0x6f0] sm:$0xff]  }
 0x3d3   :  { %9254 = vmatpush3.bf16.msra.mxu0 %v10010_v37  ;;  %9276 = vmatpush3.bf16.msra.mxu1 %v10011_v15  ;;  %v10052_v37 = vld [vmem:[#allocation7 + $0x630] sm:$0xff]  }
 0x3d4   :  { %9255 = vmatprep.subr.bf16.mxu0 %v10012_v17  ;;  %9277 = vmatprep.subr.bf16.mxu1 %v10013_v16  ;;  %v10053_v15 = vld [vmem:[#allocation7 + $0x6b0] sm:$0xff]   ;;  %v10054_v17 = vld [vmem:[#allocation7 + $0x678] sm:$0xff]  }
 0x3d5   :  { %v10055_v16 = vld [vmem:[#allocation7 + $0x6f8] sm:$0xff]  }
 0x3d7   :  { %9256 = vmatpush3.bf16.msra.mxu0 %v10014_v22  ;;  %9278 = vmatpush3.bf16.msra.mxu1 %v10015_v23  ;;  %v10057_v22 = vld [vmem:[#allocation7 + $0x6b8] sm:$0xff]   ;;  %v10058_v23 = vld [vmem:[#allocation7 + $0x740] sm:$0xff]  }
 0x3d8   :  { %9257 = vmatprep.subr.bf16.mxu0 %v10016_v38  ;;  %9279 = vmatprep.subr.bf16.mxu1 %v10017_v39  ;;  %v10059_v38 = vld [vmem:[#allocation7 + $0x7c0] sm:$0xff]  }
 0x3db   :  { %9258 = vmatpush3.bf16.msra.mxu0 %v10018_v40  ;;  %9280 = vmatpush3.bf16.msra.mxu1 %v10019_v41 }
 0x3dc   :  { %9259 = vmatprep.subr.bf16.mxu0 %v10020_v42  ;;  %9281 = vmatprep.subr.bf16.mxu1 %v10021_v43 }
 0x3df   :  { %9260 = vmatpush3.bf16.msra.mxu0 %v10022_v49  ;;  %9282 = vmatpush3.bf16.msra.mxu1 %v10023_v50 }
 0x3e0   :  { %8593 = vmatprep.subr.msk.bf16.mxu0 %vm144_vm0, %v2876_v53  ;;  %8595 = vmatprep.subr.msk.bf16.mxu1 %vm144_vm0, %v2877_v54 }
 0x3e2   :  { %2808 = vmatmul.mubr.bf16.vlgmr.msra.gmra.mrb[44].mxu0 %v2178_v57  ;;  %2848 = vmatmul.mubr.bf16.vlgmr.msra.gmra.mrb[44].mxu1 %v2180_v58 }
 0x3e3   :  { %2920 = vmatpush1.bf16.msra.mxu0 %v2896_v59  ;;  %2961 = vmatpush1.bf16.msra.mxu1 %v2902_v60 }
 0x3e4   :  { %2951 = vmatprep.mubr.bf16.mxu0 %v10545_v28  ;;  %2992 = vmatprep.mubr.bf16.mxu1 %v10545_v28 }
 0x3e5   :  { %8597 = vmatprep.subr.msk.bf16.mxu0 %vm144_vm0, %v2893_v61  ;;  %8599 = vmatprep.subr.msk.bf16.mxu1 %vm144_vm0, %v2894_v62 }
 0x3ea   :  { %8594 = vmatmul.mubr.msk.bf16.vlgmr.msra.gmra.mrb[48].mxu0 %vm140_vm4, %v10636_v44  ;;  %8596 = vmatmul.mubr.msk.bf16.vlgmr.msra.gmra.mrb[48].mxu1 %vm140_vm4, %v10636_v44 }
 0x3eb   :  { %3002 = vmatpush1.bf16.msra.mxu0 %v2908_v35  ;;  %3043 = vmatpush1.bf16.msra.mxu1 %v2914_v63 }
 0x3ec   :  { %3033 = vmatprep.mubr.bf16.mxu0 %v10545_v28  ;;  %3074 = vmatprep.mubr.bf16.mxu1 %v10545_v28 }
 0x3ed   :  { %9289 = vmatprep.subr.bf16.mxu0 %v10026_v0  ;;  %9311 = vmatprep.subr.bf16.mxu1 %v10027_v1 }
 0x3f2   :  { %8598 = vmatmul.mubr.msk.bf16.vlgmr.msra.gmra.mrb[52].mxu0 %vm140_vm4, %v10636_v44  ;;  %8600 = vmatmul.mubr.msk.bf16.vlgmr.msra.gmra.mrb[52].mxu1 %vm140_vm4, %v10636_v44 }
 0x3f3   :  { %9290 = vmatpush3.bf16.msra.mxu0 %v10028_v2  ;;  %9312 = vmatpush3.bf16.msra.mxu1 %v10029_v3 }
 0x3f4   :  { %9291 = vmatprep.subr.bf16.mxu0 %v10030_v4  ;;  %9313 = vmatprep.subr.bf16.mxu1 %v10031_v5 }
 0x3f7   :  { %9292 = vmatpush3.bf16.msra.mxu0 %v10032_v6  ;;  %9314 = vmatpush3.bf16.msra.mxu1 %v10033_v7 }
 0x3f8   :  { %9293 = vmatprep.subr.bf16.mxu0 %v10034_v8  ;;  %9315 = vmatprep.subr.bf16.mxu1 %v10035_v9 }
 0x3fb   :  { %9294 = vmatpush3.bf16.msra.mxu0 %v10036_v10  ;;  %9316 = vmatpush3.bf16.msra.mxu1 %v10037_v11 }
 0x3fc   :  { %9295 = vmatprep.subr.bf16.mxu0 %v10038_v12  ;;  %9317 = vmatprep.subr.bf16.mxu1 %v10039_v13  ;;  %v10060_v12 = vld [vmem:[#allocation7 + $0x700] sm:$0xff]  }
 0x3fd   :  { %v10061_v13 = vld [vmem:[#allocation7 + $0x780] sm:$0xff]  }
 0x3ff   :  { %9296 = vmatpush3.bf16.msra.mxu0 %v10040_v14  ;;  %9318 = vmatpush3.bf16.msra.mxu1 %v10041_v20 }
 0x400   :  { %9297 = vmatprep.subr.bf16.mxu0 %v10042_v21  ;;  %9319 = vmatprep.subr.bf16.mxu1 %v10043_v26  ;;  %v10063_v21 = vld [vmem:[#allocation7 + $0x7c8] sm:$0xff]  }
 0x403   :  { %9298 = vmatpush3.bf16.msra.mxu0 %v10044_v27  ;;  %9320 = vmatpush3.bf16.msra.mxu1 %v10045_v29  ;;  %v10064_v29 = vld [vmem:[#allocation7 + $0x708] sm:$0xff]  }
 0x404   :  { %9299 = vmatprep.subr.bf16.mxu0 %v10046_v30  ;;  %9321 = vmatprep.subr.bf16.mxu1 %v10047_v31  ;;  %v10065_v30 = vld [vmem:[#allocation7 + $0x788] sm:$0xff]  }
 0x407   :  { %9300 = vmatpush3.bf16.msra.mxu0 %v10048_v32  ;;  %9322 = vmatpush3.bf16.msra.mxu1 %v10049_v33  ;;  %v10066_v33 = vld [vmem:[#allocation7 + $0x750] sm:$0xff]  }
 0x408   :  { %9301 = vmatprep.subr.bf16.mxu0 %v10050_v34  ;;  %9323 = vmatprep.subr.bf16.mxu1 %v10051_v36  ;;  %v10067_v34 = vld [vmem:[#allocation7 + $0x7d0] sm:$0xff]  }
 0x40b   :  { %9302 = vmatpush3.bf16.msra.mxu0 %v10052_v37  ;;  %9324 = vmatpush3.bf16.msra.mxu1 %v10053_v15 }
 0x40c   :  { %9303 = vmatprep.subr.bf16.mxu0 %v10054_v17  ;;  %9325 = vmatprep.subr.bf16.mxu1 %v10055_v16 }
 0x40f   :  { %9304 = vmatpush3.bf16.msra.mxu0 %v10056_v19  ;;  %9326 = vmatpush3.bf16.msra.mxu1 %v10057_v22 }
 0x410   :  { %9333 = vmatprep.subr.bf16.mxu0 %v10058_v23  ;;  %9355 = vmatprep.subr.bf16.mxu1 %v10059_v38  ;;  %v10068_v38 = vld [vmem:[#allocation7 + $0x710] sm:$0xff]  }
 0x495   :  { %v9217_v39 = vpop.f32.mrb[40].mxu0  ;;  %v9239_v24 = vpop.f32.mrb[40].mxu1 }
 0x496   :  { %v9218_v25 = vpop.f32.mrb[41].mxu0  ;;  %v9240_v40 = vpop.f32.mrb[41].mxu1 }
 0x497   :  { %v9219_v41 = vadd.f32 %v9218_v25, %v9217_v39  ;;  %v9241_v42 = vadd.f32 %v9240_v40, %v9239_v24  ;;  %v9220_v43 = vpop.f32.mrb[42].mxu0  ;;  %v9242_v45 = vpop.f32.mrb[42].mxu1  ;;  %v10069_v39 = vld [vmem:[#allocation7 + $0x790] sm:$0xff]   ;;  %v10070_v24 = vld [vmem:[#allocation7 + $0x758] sm:$0xff]  }
 0x498   :  { %v9221_v47 = vpop.f32.mrb[43].mxu0  ;;  %v9243_v48 = vpop.f32.mrb[43].mxu1  ;;  %v10071_v25 = vld [vmem:[#allocation7 + $0x7d8] sm:$0xff]   ;;  %v10075_v43 = vld [vmem:[#allocation7 + $0x7e0] sm:$0xff]  }
 0x499   :  { %v2770_v49 = vadd.f32 %v9241_v42, %v9219_v41  ;;  %v10072_v40 = vld [vmem:[#allocation7 + $0x718] sm:$0xff]   ;;  %v10074_v42 = vld [vmem:[#allocation7 + $0x760] sm:$0xff]   ;;  %v10078_v48 = vld [vmem:[#allocation7 + $0x768] sm:$0xff]  }
 0x49a   :  { %v10073_v41 = vld [vmem:[#allocation7 + $0x798] sm:$0xff]   ;;  %v10076_v45 = vld [vmem:[#allocation7 + $0x720] sm:$0xff]  }
 0x49b   :  { %v10077_v47 = vld [vmem:[#allocation7 + $0x7a0] sm:$0xff]  }
 0x4b5   :  { %v9261_v50 = vpop.f32.mrb[44].mxu0  ;;  %v9283_v51 = vpop.f32.mrb[44].mxu1 }
 0x4b6   :  { %v9262_v52 = vpop.f32.mrb[45].mxu0  ;;  %v9284_v53 = vpop.f32.mrb[45].mxu1 }
 0x4b7   :  { %v9263_v54 = vadd.f32 %v9262_v52, %v9261_v50  ;;  %v9285_v55 = vadd.f32 %v9284_v53, %v9283_v51  ;;  %v9264_v56 = vpop.f32.mrb[46].mxu0  ;;  %v9286_v57 = vpop.f32.mrb[46].mxu1  ;;  %v3774_v50 = vld [vmem:[#allocation5 + $0x40] sm:$0xff]  ;;  %v10080_v51 = vld [vmem:[#allocation7 + $0x728] sm:$0xff]  }
 0x4b8   :  { %v9265_v58 = vpop.f32.mrb[47].mxu0  ;;  %v9287_v59 = vpop.f32.mrb[47].mxu1  ;;  %v10081_v52 = vld [vmem:[#allocation7 + $0x7a8] sm:$0xff]   ;;  %v10082_v53 = vld [vmem:[#allocation7 + $0x770] sm:$0xff]   ;;  %v3775_v56 = vld [vmem:[#allocation5 + $0x48] sm:$0xff] }
 0x4b9   :  { %v2810_v60 = vadd.f32 %v9263_v54, %v2770_v49  ;;  %v10079_v49 = vld [vmem:[#allocation7 + $0x7e8] sm:$0xff]   ;;  %v10083_v54 = vld [vmem:[#allocation7 + $0x7f0] sm:$0xff]   ;;  %v10086_v59 = vld [vmem:[#allocation7 + $0x778] sm:$0xff]  }
 0x4ba   :  { %v10084_v57 = vld [vmem:[#allocation7 + $0x730] sm:$0xff]  }
 0x4bb   :  { %v2850_v61 = vadd.f32 %v9285_v55, %v2810_v60  ;;  %v3778_v55 = vcombine.high %v3774_v50, %v3774_v50  ;;  %v10085_v58 = vld [vmem:[#allocation7 + $0x7b0] sm:$0xff]   ;;  %v10087_v60 = vld [vmem:[#allocation7 + $0x7f8] sm:$0xff]  }
 0x4bd   :  { %v10782_v62 = vadd.f32 %v2850_v61, %v10749_v46  ;;  %v2953_v35 = vpop.f32.mrb[48].mxu0  ;;  %v2994_v63 = vpop.f32.mrb[48].mxu1  ;;  %v10062_v46 = vld [vmem:[#allocation7 + $0x748] sm:$0xff]   ;;  %v3785_v61 = vrot.slane %v3774_v50, %v10620_v18  ;;  %v10122_v50 = vld [vmem:[#allocation7 + $0x838] sm:$0xff]  }
 0x4be   :  { %v3083_v0 = vmax.f32 %v2953_v35, 0.0  ;;  %v3085_v1 = vmax.f32 %v2994_v63, 0.0  ;;  %v2955_v2 = vpop.f32.mrb[49].mxu0  ;;  %v2996_v3 = vpop.f32.mrb[49].mxu1  ;;  %v3792_v35 = vrot.slane %v3778_v55, %v10620_v18  ;;  %v3795_v63 = vcombine.high %v3775_v56, %v3775_v56 }
 0x4bf   :  { %v3084_v4 = vmax.f32 %v2955_v2, 0.0  ;;  %v3086_v5 = vmax.f32 %v2996_v3, 0.0  ;;  %v2957_v6 = vpop.f32.mrb[50].mxu0  ;;  %v2998_v7 = vpop.f32.mrb[50].mxu1 }
 0x4c0   :  { %v2958_v8 = vpop.f32.mrb[51].mxu0  ;;  %v2999_v9 = vpop.f32.mrb[51].mxu1  ;;  %v3091_v14 = vpack.c.bf16 %v3083_v0, %v3083_v0  ;;  %v3093_v20 = vpack.c.bf16 %v3085_v1, %v3085_v1  ;;  %v10088_v0 = vld [vmem:[#allocation7 + $0x738] sm:$0xff]   ;;  %v3802_v6 = vrot.slane %v3775_v56, %v10620_v18  ;;  %v3809_v7 = vrot.slane %v3795_v63, %v10620_v18 }
 0x4c1   :  { %v3092_v10 = vpack.c.bf16 %v3084_v4, %v3084_v4  ;;  %v3094_v11 = vpack.c.bf16 %v3086_v5, %v3086_v5  ;;  %v10089_v1 = vld [vmem:[#allocation7 + $0x7b8] sm:$0xff]   ;;  %v3793_v4 = vcombine.high %v3785_v61, %v3785_v61  ;;  %v3794_v5 = vcombine.high %v3792_v35, %v3792_v35 }
 0x4c3   :  { %3644 = vmatprep.mubr.bf16.mxu0 %v3092_v10  ;;  %3684 = vmatprep.mubr.bf16.mxu1 %v3094_v11  ;;  %v3813_v10 = vsel %vm144_vm0, %v3785_v61, 0  ;;  %v3819_v11 = vsel %vm144_vm0, %v3792_v35, 0 }
 0x4c4   :  { %3645 = vmatmul.mubr.bf16.vlgmr.msra.gmra.mrb[56].mxu0 %v3091_v14  ;;  %3685 = vmatmul.mubr.bf16.vlgmr.msra.gmra.mrb[56].mxu1 %v3093_v20  ;;  %v3825_v14 = vsel %vm144_vm0, %v3802_v6, 0  ;;  %v3831_v20 = vsel %vm144_vm0, %v3809_v7, 0 }
 0x4c5   :  { %9334 = vmatpush3.bf16.msra.mxu0 %v10060_v12  ;;  %9356 = vmatpush3.bf16.msra.mxu1 %v10061_v13  ;;  %v10784_v26 = vpop.f32.mrb[52].mxu0  ;;  %v10786_v27 = vpop.f32.mrb[52].mxu1  ;;  %v3810_v12 = vcombine.high %v3802_v6, %v3802_v6  ;;  %v3811_v13 = vcombine.high %v3809_v7, %v3809_v7 }
 0x4c6   :  { %v3037_v31 = vpop.f32.mrb[53].mxu0  ;;  %v3078_v32 = vpop.f32.mrb[53].mxu1  ;;  %9335 = vmatprep.subr.bf16.mxu0 %v10062_v46  ;;  %9357 = vmatprep.subr.bf16.mxu1 %v10063_v21  ;;  %v3087_v2 = vmax.f32 %v10784_v26, 0.0  ;;  %v3089_v3 = vmax.f32 %v10786_v27, 0.0  ;;  %v10092_v46 = vld [vmem:[#allocation7 + $0x840] sm:$0xff]  }
 0x4c7   :  { %v3088_v36 = vmax.f32 %v3037_v31, 0.0  ;;  %v3090_v37 = vmax.f32 %v3078_v32, 0.0  ;;  %v3039_v15 = vpop.f32.mrb[54].mxu0  ;;  %v3080_v17 = vpop.f32.mrb[54].mxu1  ;;  %v10093_v21 = vld [vmem:[#allocation7 + $0x8c0] sm:$0xff]   ;;  %v10098_v31 = vld [vmem:[#allocation7 + $0x808] sm:$0xff]  }
 0x4c8   :  { %v3040_v16 = vpop.f32.mrb[55].mxu0  ;;  %v3081_v19 = vpop.f32.mrb[55].mxu1  ;;  %v3095_v8 = vpack.c.bf16 %v3087_v2, %v3087_v2  ;;  %v3097_v9 = vpack.c.bf16 %v3089_v3, %v3089_v3  ;;  %v10094_v26 = vld [vmem:[#allocation7 + $0x800] sm:$0xff]   ;;  %v10099_v32 = vld [vmem:[#allocation7 + $0x888] sm:$0xff]   ;;  %v10104_v15 = vld [vmem:[#allocation7 + $0x858] sm:$0xff]  }
 0x4c9   :  { %v3096_v22 = vpack.c.bf16 %v3088_v36, %v3088_v36  ;;  %v3098_v23 = vpack.c.bf16 %v3090_v37, %v3090_v37  ;;  %9336 = vmatpush3.bf16.msra.mxu0 %v10064_v29  ;;  %9358 = vmatpush3.bf16.msra.mxu1 %v10065_v30  ;;  %v10095_v27 = vld [vmem:[#allocation7 + $0x880] sm:$0xff]   ;;  %v10096_v29 = vld [vmem:[#allocation7 + $0x848] sm:$0xff]   ;;  %v10102_v36 = vld [vmem:[#allocation7 + $0x810] sm:$0xff]  }
 0x4ca   :  { %9337 = vmatprep.subr.bf16.mxu0 %v10066_v33  ;;  %9359 = vmatprep.subr.bf16.mxu1 %v10067_v34  ;;  %v10097_v30 = vld [vmem:[#allocation7 + $0x8c8] sm:$0xff]   ;;  %v10100_v33 = vld [vmem:[#allocation7 + $0x850] sm:$0xff]   ;;  %v10105_v17 = vld [vmem:[#allocation7 + $0x8d8] sm:$0xff]  }
 0x4cb   :  { %3724 = vmatprep.mubr.bf16.mxu0 %v3096_v22  ;;  %3764 = vmatprep.mubr.bf16.mxu1 %v3098_v23  ;;  %v10101_v34 = vld [vmem:[#allocation7 + $0x8d0] sm:$0xff]   ;;  %v10106_v16 = vld [vmem:[#allocation7 + $0x818] sm:$0xff]   ;;  %v10108_v22 = vld [vmem:[#allocation7 + $0x860] sm:$0xff]  }
 0x4cc   :  { %v10103_v37 = vld [vmem:[#allocation7 + $0x890] sm:$0xff]   ;;  %v10107_v19 = vld [vmem:[#allocation7 + $0x898] sm:$0xff]   ;;  %v10109_v23 = vld [vmem:[#allocation7 + $0x8e0] sm:$0xff]  }
 0x4cd   :  { %9338 = vmatpush3.bf16.msra.mxu0 %v10068_v38  ;;  %9360 = vmatpush3.bf16.msra.mxu1 %v10069_v39  ;;  %v10110_v38 = vld [vmem:[#allocation7 + $0x820] sm:$0xff]  }
 0x4ce   :  { %9339 = vmatprep.subr.bf16.mxu0 %v10070_v24  ;;  %9361 = vmatprep.subr.bf16.mxu1 %v10071_v25  ;;  %v10111_v39 = vld [vmem:[#allocation7 + $0x8a0] sm:$0xff]   ;;  %v10112_v24 = vld [vmem:[#allocation7 + $0x868] sm:$0xff]  }
 0x4cf   :  { %v10113_v25 = vld [vmem:[#allocation7 + $0x8e8] sm:$0xff]  }
 0x4d1   :  { %9340 = vmatpush3.bf16.msra.mxu0 %v10072_v40  ;;  %9362 = vmatpush3.bf16.msra.mxu1 %v10073_v41  ;;  %v10114_v40 = vld [vmem:[#allocation7 + $0x828] sm:$0xff]  }
 0x4d2   :  { %9341 = vmatprep.subr.bf16.mxu0 %v10074_v42  ;;  %9363 = vmatprep.subr.bf16.mxu1 %v10075_v43  ;;  %v10115_v41 = vld [vmem:[#allocation7 + $0x8a8] sm:$0xff]   ;;  %v10116_v42 = vld [vmem:[#allocation7 + $0x870] sm:$0xff]  }
 0x4d3   :  { %v10117_v43 = vld [vmem:[#allocation7 + $0x8f0] sm:$0xff]  }
 0x4d5   :  { %9342 = vmatpush3.bf16.msra.mxu0 %v10076_v45  ;;  %9364 = vmatpush3.bf16.msra.mxu1 %v10077_v47  ;;  %v10118_v45 = vld [vmem:[#allocation7 + $0x830] sm:$0xff]  }
 0x4d6   :  { %9343 = vmatprep.subr.bf16.mxu0 %v10078_v48  ;;  %9365 = vmatprep.subr.bf16.mxu1 %v10079_v49  ;;  %v10119_v47 = vld [vmem:[#allocation7 + $0x8b0] sm:$0xff]   ;;  %v10120_v48 = vld [vmem:[#allocation7 + $0x878] sm:$0xff]  }
 0x4d7   :  { %v10121_v49 = vld [vmem:[#allocation7 + $0x8f8] sm:$0xff]  }
 0x4d9   :  { %9344 = vmatpush3.bf16.msra.mxu0 %v10080_v51  ;;  %9366 = vmatpush3.bf16.msra.mxu1 %v10081_v52  ;;  %v10123_v51 = vld [vmem:[#allocation7 + $0x8b8] sm:$0xff]   ;;  %v10124_v52 = vld [vmem:[#allocation7 + $0x940] sm:$0xff]  }
 0x4da   :  { %9345 = vmatprep.subr.bf16.mxu0 %v10082_v53  ;;  %9367 = vmatprep.subr.bf16.mxu1 %v10083_v54  ;;  %v10125_v53 = vld [vmem:[#allocation7 + $0x9c0] sm:$0xff]  }
 0x4dd   :  { %9346 = vmatpush3.bf16.msra.mxu0 %v10084_v57  ;;  %9368 = vmatpush3.bf16.msra.mxu1 %v10085_v58 }
 0x4de   :  { %9347 = vmatprep.subr.bf16.mxu0 %v10086_v59  ;;  %9369 = vmatprep.subr.bf16.mxu1 %v10087_v60 }
 0x4e1   :  { %9348 = vmatpush3.bf16.msra.mxu0 %v10088_v0  ;;  %9370 = vmatpush3.bf16.msra.mxu1 %v10089_v1 }
 0x4e2   :  { %8665 = vmatprep.subr.msk.bf16.mxu0 %vm144_vm0, %v3793_v4  ;;  %8667 = vmatprep.subr.msk.bf16.mxu1 %vm144_vm0, %v3794_v5 }
 0x4e4   :  { %3725 = vmatmul.mubr.bf16.vlgmr.msra.gmra.mrb[60].mxu0 %v3095_v8  ;;  %3765 = vmatmul.mubr.bf16.vlgmr.msra.gmra.mrb[60].mxu1 %v3097_v9 }
 0x4e5   :  { %3837 = vmatpush1.bf16.msra.mxu0 %v3813_v10  ;;  %3878 = vmatpush1.bf16.msra.mxu1 %v3819_v11 }
 0x4e6   :  { %3868 = vmatprep.mubr.bf16.mxu0 %v10545_v28  ;;  %3909 = vmatprep.mubr.bf16.mxu1 %v10545_v28 }
 0x4e7   :  { %8669 = vmatprep.subr.msk.bf16.mxu0 %vm144_vm0, %v3810_v12  ;;  %8671 = vmatprep.subr.msk.bf16.mxu1 %vm144_vm0, %v3811_v13 }
 0x4ec   :  { %8666 = vmatmul.mubr.msk.bf16.vlgmr.msra.gmra.mrb[64].mxu0 %vm140_vm4, %v10636_v44  ;;  %8668 = vmatmul.mubr.msk.bf16.vlgmr.msra.gmra.mrb[64].mxu1 %vm140_vm4, %v10636_v44 }
 0x4ed   :  { %3919 = vmatpush1.bf16.msra.mxu0 %v3825_v14  ;;  %3960 = vmatpush1.bf16.msra.mxu1 %v3831_v20 }
 0x4ee   :  { %3950 = vmatprep.mubr.bf16.mxu0 %v10545_v28  ;;  %3991 = vmatprep.mubr.bf16.mxu1 %v10545_v28 }
 0x4ef   :  { %9377 = vmatprep.subr.bf16.mxu0 %v10092_v46  ;;  %9399 = vmatprep.subr.bf16.mxu1 %v10093_v21 }
 0x4f4   :  { %8670 = vmatmul.mubr.msk.bf16.vlgmr.msra.gmra.mrb[68].mxu0 %vm140_vm4, %v10636_v44  ;;  %8672 = vmatmul.mubr.msk.bf16.vlgmr.msra.gmra.mrb[68].mxu1 %vm140_vm4, %v10636_v44 }
 0x4f5   :  { %9378 = vmatpush3.bf16.msra.mxu0 %v10094_v26  ;;  %9400 = vmatpush3.bf16.msra.mxu1 %v10095_v27 }
 0x4f6   :  { %9379 = vmatprep.subr.bf16.mxu0 %v10096_v29  ;;  %9401 = vmatprep.subr.bf16.mxu1 %v10097_v30 }
 0x4f9   :  { %9380 = vmatpush3.bf16.msra.mxu0 %v10098_v31  ;;  %9402 = vmatpush3.bf16.msra.mxu1 %v10099_v32 }
 0x4fa   :  { %9381 = vmatprep.subr.bf16.mxu0 %v10100_v33  ;;  %9403 = vmatprep.subr.bf16.mxu1 %v10101_v34 }
 0x4fd   :  { %9382 = vmatpush3.bf16.msra.mxu0 %v10102_v36  ;;  %9404 = vmatpush3.bf16.msra.mxu1 %v10103_v37 }
 0x4fe   :  { %9383 = vmatprep.subr.bf16.mxu0 %v10104_v15  ;;  %9405 = vmatprep.subr.bf16.mxu1 %v10105_v17  ;;  %v10126_v15 = vld [vmem:[#allocation7 + $0x900] sm:$0xff]  }
 0x4ff   :  { %v10127_v17 = vld [vmem:[#allocation7 + $0x980] sm:$0xff]  }
 0x501   :  { %9384 = vmatpush3.bf16.msra.mxu0 %v10106_v16  ;;  %9406 = vmatpush3.bf16.msra.mxu1 %v10107_v19 }
 0x502   :  { %9385 = vmatprep.subr.bf16.mxu0 %v10108_v22  ;;  %9407 = vmatprep.subr.bf16.mxu1 %v10109_v23  ;;  %v10129_v22 = vld [vmem:[#allocation7 + $0x9c8] sm:$0xff]  }
 0x505   :  { %9386 = vmatpush3.bf16.msra.mxu0 %v10110_v38  ;;  %9408 = vmatpush3.bf16.msra.mxu1 %v10111_v39  ;;  %v10130_v39 = vld [vmem:[#allocation7 + $0x908] sm:$0xff]  }
 0x506   :  { %9387 = vmatprep.subr.bf16.mxu0 %v10112_v24  ;;  %9409 = vmatprep.subr.bf16.mxu1 %v10113_v25  ;;  %v10131_v24 = vld [vmem:[#allocation7 + $0x988] sm:$0xff]  }
 0x509   :  { %9388 = vmatpush3.bf16.msra.mxu0 %v10114_v40  ;;  %9410 = vmatpush3.bf16.msra.mxu1 %v10115_v41  ;;  %v10132_v41 = vld [vmem:[#allocation7 + $0x950] sm:$0xff]  }
 0x50a   :  { %9389 = vmatprep.subr.bf16.mxu0 %v10116_v42  ;;  %9411 = vmatprep.subr.bf16.mxu1 %v10117_v43  ;;  %v10133_v42 = vld [vmem:[#allocation7 + $0x9d0] sm:$0xff]  }
 0x50d   :  { %9390 = vmatpush3.bf16.msra.mxu0 %v10118_v45  ;;  %9412 = vmatpush3.bf16.msra.mxu1 %v10119_v47 }
 0x50e   :  { %9391 = vmatprep.subr.bf16.mxu0 %v10120_v48  ;;  %9413 = vmatprep.subr.bf16.mxu1 %v10121_v49 }
 0x511   :  { %9392 = vmatpush3.bf16.msra.mxu0 %v10122_v50  ;;  %9414 = vmatpush3.bf16.msra.mxu1 %v10123_v51 }
 0x512   :  { %9421 = vmatprep.subr.bf16.mxu0 %v10124_v52  ;;  %9443 = vmatprep.subr.bf16.mxu1 %v10125_v53  ;;  %v10134_v53 = vld [vmem:[#allocation7 + $0x910] sm:$0xff]  }
 0x597   :  { %v9305_v54 = vpop.f32.mrb[56].mxu0  ;;  %v9327_v55 = vpop.f32.mrb[56].mxu1 }
 0x598   :  { %v9306_v56 = vpop.f32.mrb[57].mxu0  ;;  %v9328_v57 = vpop.f32.mrb[57].mxu1 }
 0x599   :  { %v9307_v58 = vadd.f32 %v9306_v56, %v9305_v54  ;;  %v9329_v59 = vadd.f32 %v9328_v57, %v9327_v55  ;;  %v9308_v60 = vpop.f32.mrb[58].mxu0  ;;  %v9330_v61 = vpop.f32.mrb[58].mxu1  ;;  %v10135_v54 = vld [vmem:[#allocation7 + $0x990] sm:$0xff]   ;;  %v10136_v55 = vld [vmem:[#allocation7 + $0x958] sm:$0xff]  }
 0x59a   :  { %v9309_v35 = vpop.f32.mrb[59].mxu0  ;;  %v9331_v63 = vpop.f32.mrb[59].mxu1  ;;  %v10137_v56 = vld [vmem:[#allocation7 + $0x9d8] sm:$0xff]   ;;  %v10141_v60 = vld [vmem:[#allocation7 + $0x9e0] sm:$0xff]  }
 0x59b   :  { %v3687_v0 = vadd.f32 %v9329_v59, %v9307_v58  ;;  %v10138_v57 = vld [vmem:[#allocation7 + $0x918] sm:$0xff]   ;;  %v10140_v59 = vld [vmem:[#allocation7 + $0x960] sm:$0xff]   ;;  %v10144_v63 = vld [vmem:[#allocation7 + $0x968] sm:$0xff]  }
 0x59c   :  { %v10139_v58 = vld [vmem:[#allocation7 + $0x998] sm:$0xff]   ;;  %v10142_v61 = vld [vmem:[#allocation7 + $0x920] sm:$0xff]  }
 0x59d   :  { %v10143_v35 = vld [vmem:[#allocation7 + $0x9a0] sm:$0xff]  }
 0x5b7   :  { %v9349_v1 = vpop.f32.mrb[60].mxu0  ;;  %v9371_v2 = vpop.f32.mrb[60].mxu1 }
 0x5b8   :  { %v9350_v3 = vpop.f32.mrb[61].mxu0  ;;  %v9372_v4 = vpop.f32.mrb[61].mxu1 }
 0x5b9   :  { %v9351_v5 = vadd.f32 %v9350_v3, %v9349_v1  ;;  %v9373_v6 = vadd.f32 %v9372_v4, %v9371_v2  ;;  %v9352_v7 = vpop.f32.mrb[62].mxu0  ;;  %v9374_v8 = vpop.f32.mrb[62].mxu1  ;;  %v4691_v1 = vld [vmem:[#allocation5 + $0x50] sm:$0xff]  ;;  %v10146_v2 = vld [vmem:[#allocation7 + $0x928] sm:$0xff]   ;;  %v10148_v4 = vld [vmem:[#allocation7 + $0x970] sm:$0xff]  }
 0x5ba   :  { %v9353_v9 = vpop.f32.mrb[63].mxu0  ;;  %v9375_v10 = vpop.f32.mrb[63].mxu1  ;;  %v10147_v3 = vld [vmem:[#allocation7 + $0x9a8] sm:$0xff]   ;;  %v10150_v8 = vld [vmem:[#allocation7 + $0x930] sm:$0xff]  }
 0x5bb   :  { %v3727_v11 = vadd.f32 %v9351_v5, %v3687_v0  ;;  %v10145_v0 = vld [vmem:[#allocation7 + $0x9e8] sm:$0xff]   ;;  %v10149_v5 = vld [vmem:[#allocation7 + $0x9f0] sm:$0xff]   ;;  %v10152_v10 = vld [vmem:[#allocation7 + $0x978] sm:$0xff]  }
 0x5bc   :  { %v4692_v7 = vld [vmem:[#allocation5 + $0x58] sm:$0xff]  ;;  %v10151_v9 = vld [vmem:[#allocation7 + $0x9b0] sm:$0xff]  }
 0x5bd   :  { %v3767_v12 = vadd.f32 %v9373_v6, %v3727_v11  ;;  %v4695_v6 = vcombine.high %v4691_v1, %v4691_v1  ;;  %v10153_v11 = vld [vmem:[#allocation7 + $0x9f8] sm:$0xff]  }
 0x5bf   :  { %v10815_v13 = vadd.f32 %v3767_v12, %v10782_v62  ;;  %v3870_v14 = vpop.f32.mrb[64].mxu0  ;;  %v3911_v20 = vpop.f32.mrb[64].mxu1  ;;  %v10128_v62 = vld [vmem:[#allocation7 + $0x948] sm:$0xff]   ;;  %v4702_v12 = vrot.slane %v4691_v1, %v10620_v18  ;;  %v10188_v1 = vld [vmem:[#allocation7 + $0xa38] sm:$0xff]  }
 0x5c0   :  { %v4000_v46 = vmax.f32 %v3870_v14, 0.0  ;;  %v4002_v21 = vmax.f32 %v3911_v20, 0.0  ;;  %v3872_v26 = vpop.f32.mrb[65].mxu0  ;;  %v3913_v27 = vpop.f32.mrb[65].mxu1  ;;  %v4709_v14 = vrot.slane %v4695_v6, %v10620_v18  ;;  %v4712_v20 = vcombine.high %v4692_v7, %v4692_v7 }
 0x5c1   :  { %v4001_v29 = vmax.f32 %v3872_v26, 0.0  ;;  %v4003_v30 = vmax.f32 %v3913_v27, 0.0  ;;  %v3874_v31 = vpop.f32.mrb[66].mxu0  ;;  %v3915_v32 = vpop.f32.mrb[66].mxu1 }
 0x5c2   :  { %v3875_v33 = vpop.f32.mrb[67].mxu0  ;;  %v3916_v34 = vpop.f32.mrb[67].mxu1  ;;  %v4008_v16 = vpack.c.bf16 %v4000_v46, %v4000_v46  ;;  %v4010_v19 = vpack.c.bf16 %v4002_v21, %v4002_v21  ;;  %v10154_v46 = vld [vmem:[#allocation7 + $0x938] sm:$0xff]   ;;  %v4719_v31 = vrot.slane %v4692_v7, %v10620_v18  ;;  %v4726_v32 = vrot.slane %v4712_v20, %v10620_v18 }
 0x5c3   :  { %v4009_v36 = vpack.c.bf16 %v4001_v29, %v4001_v29  ;;  %v4011_v37 = vpack.c.bf16 %v4003_v30, %v4003_v30  ;;  %v10155_v21 = vld [vmem:[#allocation7 + $0x9b8] sm:$0xff]   ;;  %v4710_v29 = vcombine.high %v4702_v12, %v4702_v12  ;;  %v4711_v30 = vcombine.high %v4709_v14, %v4709_v14 }
 0x5c5   :  { %4561 = vmatprep.mubr.bf16.mxu0 %v4009_v36  ;;  %4601 = vmatprep.mubr.bf16.mxu1 %v4011_v37  ;;  %v4730_v36 = vsel %vm144_vm0, %v4702_v12, 0  ;;  %v4736_v37 = vsel %vm144_vm0, %v4709_v14, 0 }
 0x5c6   :  { %4562 = vmatmul.mubr.bf16.vlgmr.msra.gmra.mrb[72].mxu0 %v4008_v16  ;;  %4602 = vmatmul.mubr.bf16.vlgmr.msra.gmra.mrb[72].mxu1 %v4010_v19  ;;  %v4742_v16 = vsel %vm144_vm0, %v4719_v31, 0  ;;  %v4748_v19 = vsel %vm144_vm0, %v4726_v32, 0 }
 0x5c7   :  { %9422 = vmatpush3.bf16.msra.mxu0 %v10126_v15  ;;  %9444 = vmatpush3.bf16.msra.mxu1 %v10127_v17  ;;  %v10817_v23 = vpop.f32.mrb[68].mxu0  ;;  %v10819_v38 = vpop.f32.mrb[68].mxu1  ;;  %v4727_v15 = vcombine.high %v4719_v31, %v4719_v31  ;;  %v4728_v17 = vcombine.high %v4726_v32, %v4726_v32 }
 0x5c8   :  { %v3954_v25 = vpop.f32.mrb[69].mxu0  ;;  %v3995_v40 = vpop.f32.mrb[69].mxu1  ;;  %9423 = vmatprep.subr.bf16.mxu0 %v10128_v62  ;;  %9445 = vmatprep.subr.bf16.mxu1 %v10129_v22  ;;  %v4004_v26 = vmax.f32 %v10817_v23, 0.0  ;;  %v4006_v27 = vmax.f32 %v10819_v38, 0.0  ;;  %v10158_v62 = vld [vmem:[#allocation7 + $0xa40] sm:$0xff]  }
 0x5c9   :  { %v4005_v43 = vmax.f32 %v3954_v25, 0.0  ;;  %v4007_v45 = vmax.f32 %v3995_v40, 0.0  ;;  %v3956_v47 = vpop.f32.mrb[70].mxu0  ;;  %v3997_v48 = vpop.f32.mrb[70].mxu1  ;;  %v10159_v22 = vld [vmem:[#allocation7 + $0xac0] sm:$0xff]   ;;  %v10164_v25 = vld [vmem:[#allocation7 + $0xa08] sm:$0xff]  }
 0x5ca   :  { %v3957_v49 = vpop.f32.mrb[71].mxu0  ;;  %v3998_v50 = vpop.f32.mrb[71].mxu1  ;;  %v4012_v33 = vpack.c.bf16 %v4004_v26, %v4004_v26  ;;  %v4014_v34 = vpack.c.bf16 %v4006_v27, %v4006_v27  ;;  %v10160_v23 = vld [vmem:[#allocation7 + $0xa00] sm:$0xff]   ;;  %v10165_v40 = vld [vmem:[#allocation7 + $0xa88] sm:$0xff]   ;;  %v10170_v47 = vld [vmem:[#allocation7 + $0xa58] sm:$0xff]  }
 0x5cb   :  { %v4013_v51 = vpack.c.bf16 %v4005_v43, %v4005_v43  ;;  %v4015_v52 = vpack.c.bf16 %v4007_v45, %v4007_v45  ;;  %9424 = vmatpush3.bf16.msra.mxu0 %v10130_v39  ;;  %9446 = vmatpush3.bf16.msra.mxu1 %v10131_v24  ;;  %v10161_v38 = vld [vmem:[#allocation7 + $0xa80] sm:$0xff]   ;;  %v10162_v39 = vld [vmem:[#allocation7 + $0xa48] sm:$0xff]   ;;  %v10168_v43 = vld [vmem:[#allocation7 + $0xa10] sm:$0xff]  }
 0x5cc   :  { %9425 = vmatprep.subr.bf16.mxu0 %v10132_v41  ;;  %9447 = vmatprep.subr.bf16.mxu1 %v10133_v42  ;;  %v10163_v24 = vld [vmem:[#allocation7 + $0xac8] sm:$0xff]   ;;  %v10166_v41 = vld [vmem:[#allocation7 + $0xa50] sm:$0xff]   ;;  %v10171_v48 = vld [vmem:[#allocation7 + $0xad8] sm:$0xff]  }
 0x5cd   :  { %4641 = vmatprep.mubr.bf16.mxu0 %v4013_v51  ;;  %4681 = vmatprep.mubr.bf16.mxu1 %v4015_v52  ;;  %v10167_v42 = vld [vmem:[#allocation7 + $0xad0] sm:$0xff]   ;;  %v10172_v49 = vld [vmem:[#allocation7 + $0xa18] sm:$0xff]   ;;  %v10174_v51 = vld [vmem:[#allocation7 + $0xa60] sm:$0xff]  }
 0x5ce   :  { %v10169_v45 = vld [vmem:[#allocation7 + $0xa90] sm:$0xff]   ;;  %v10173_v50 = vld [vmem:[#allocation7 + $0xa98] sm:$0xff]   ;;  %v10175_v52 = vld [vmem:[#allocation7 + $0xae0] sm:$0xff]  }
 0x5cf   :  { %9426 = vmatpush3.bf16.msra.mxu0 %v10134_v53  ;;  %9448 = vmatpush3.bf16.msra.mxu1 %v10135_v54  ;;  %v10176_v53 = vld [vmem:[#allocation7 + $0xa20] sm:$0xff]  }
 0x5d0   :  { %9427 = vmatprep.subr.bf16.mxu0 %v10136_v55  ;;  %9449 = vmatprep.subr.bf16.mxu1 %v10137_v56  ;;  %v10177_v54 = vld [vmem:[#allocation7 + $0xaa0] sm:$0xff]   ;;  %v10178_v55 = vld [vmem:[#allocation7 + $0xa68] sm:$0xff]  }
 0x5d1   :  { %v10179_v56 = vld [vmem:[#allocation7 + $0xae8] sm:$0xff]  }
 0x5d3   :  { %9428 = vmatpush3.bf16.msra.mxu0 %v10138_v57  ;;  %9450 = vmatpush3.bf16.msra.mxu1 %v10139_v58  ;;  %v10180_v57 = vld [vmem:[#allocation7 + $0xa28] sm:$0xff]  }
 0x5d4   :  { %9429 = vmatprep.subr.bf16.mxu0 %v10140_v59  ;;  %9451 = vmatprep.subr.bf16.mxu1 %v10141_v60  ;;  %v10181_v58 = vld [vmem:[#allocation7 + $0xaa8] sm:$0xff]   ;;  %v10182_v59 = vld [vmem:[#allocation7 + $0xa70] sm:$0xff]  }
 0x5d5   :  { %v10183_v60 = vld [vmem:[#allocation7 + $0xaf0] sm:$0xff]  }
 0x5d7   :  { %9430 = vmatpush3.bf16.msra.mxu0 %v10142_v61  ;;  %9452 = vmatpush3.bf16.msra.mxu1 %v10143_v35  ;;  %v10184_v61 = vld [vmem:[#allocation7 + $0xa30] sm:$0xff]  }
 0x5d8   :  { %9431 = vmatprep.subr.bf16.mxu0 %v10144_v63  ;;  %9453 = vmatprep.subr.bf16.mxu1 %v10145_v0  ;;  %v10185_v35 = vld [vmem:[#allocation7 + $0xab0] sm:$0xff]   ;;  %v10186_v63 = vld [vmem:[#allocation7 + $0xa78] sm:$0xff]  }
 0x5d9   :  { %v10187_v0 = vld [vmem:[#allocation7 + $0xaf8] sm:$0xff]  }
 0x5db   :  { %9432 = vmatpush3.bf16.msra.mxu0 %v10146_v2  ;;  %9454 = vmatpush3.bf16.msra.mxu1 %v10147_v3  ;;  %v10189_v2 = vld [vmem:[#allocation7 + $0xab8] sm:$0xff]   ;;  %v10190_v3 = vld [vmem:[#allocation7 + $0xb40] sm:$0xff]  }
 0x5dc   :  { %9433 = vmatprep.subr.bf16.mxu0 %v10148_v4  ;;  %9455 = vmatprep.subr.bf16.mxu1 %v10149_v5  ;;  %v10191_v4 = vld [vmem:[#allocation7 + $0xbc0] sm:$0xff]  }
 0x5df   :  { %9434 = vmatpush3.bf16.msra.mxu0 %v10150_v8  ;;  %9456 = vmatpush3.bf16.msra.mxu1 %v10151_v9 }
 0x5e0   :  { %9435 = vmatprep.subr.bf16.mxu0 %v10152_v10  ;;  %9457 = vmatprep.subr.bf16.mxu1 %v10153_v11 }
 0x5e3   :  { %9436 = vmatpush3.bf16.msra.mxu0 %v10154_v46  ;;  %9458 = vmatpush3.bf16.msra.mxu1 %v10155_v21 }
 0x5e4   :  { %8737 = vmatprep.subr.msk.bf16.mxu0 %vm144_vm0, %v4710_v29  ;;  %8739 = vmatprep.subr.msk.bf16.mxu1 %vm144_vm0, %v4711_v30 }
 0x5e6   :  { %4642 = vmatmul.mubr.bf16.vlgmr.msra.gmra.mrb[76].mxu0 %v4012_v33  ;;  %4682 = vmatmul.mubr.bf16.vlgmr.msra.gmra.mrb[76].mxu1 %v4014_v34 }
 0x5e7   :  { %4754 = vmatpush1.bf16.msra.mxu0 %v4730_v36  ;;  %4795 = vmatpush1.bf16.msra.mxu1 %v4736_v37 }
 0x5e8   :  { %4785 = vmatprep.mubr.bf16.mxu0 %v10545_v28  ;;  %4826 = vmatprep.mubr.bf16.mxu1 %v10545_v28 }
 0x5e9   :  { %8741 = vmatprep.subr.msk.bf16.mxu0 %vm144_vm0, %v4727_v15  ;;  %8743 = vmatprep.subr.msk.bf16.mxu1 %vm144_vm0, %v4728_v17 }
 0x5ee   :  { %8738 = vmatmul.mubr.msk.bf16.vlgmr.msra.gmra.mrb[80].mxu0 %vm140_vm4, %v10636_v44  ;;  %8740 = vmatmul.mubr.msk.bf16.vlgmr.msra.gmra.mrb[80].mxu1 %vm140_vm4, %v10636_v44 }
 0x5ef   :  { %4836 = vmatpush1.bf16.msra.mxu0 %v4742_v16  ;;  %4877 = vmatpush1.bf16.msra.mxu1 %v4748_v19 }
 0x5f0   :  { %4867 = vmatprep.mubr.bf16.mxu0 %v10545_v28  ;;  %4908 = vmatprep.mubr.bf16.mxu1 %v10545_v28 }
 0x5f1   :  { %9465 = vmatprep.subr.bf16.mxu0 %v10158_v62  ;;  %9487 = vmatprep.subr.bf16.mxu1 %v10159_v22 }
 0x5f6   :  { %8742 = vmatmul.mubr.msk.bf16.vlgmr.msra.gmra.mrb[84].mxu0 %vm140_vm4, %v10636_v44  ;;  %8744 = vmatmul.mubr.msk.bf16.vlgmr.msra.gmra.mrb[84].mxu1 %vm140_vm4, %v10636_v44 }
 0x5f7   :  { %9466 = vmatpush3.bf16.msra.mxu0 %v10160_v23  ;;  %9488 = vmatpush3.bf16.msra.mxu1 %v10161_v38 }
 0x5f8   :  { %9467 = vmatprep.subr.bf16.mxu0 %v10162_v39  ;;  %9489 = vmatprep.subr.bf16.mxu1 %v10163_v24 }
 0x5fb   :  { %9468 = vmatpush3.bf16.msra.mxu0 %v10164_v25  ;;  %9490 = vmatpush3.bf16.msra.mxu1 %v10165_v40 }
 0x5fc   :  { %9469 = vmatprep.subr.bf16.mxu0 %v10166_v41  ;;  %9491 = vmatprep.subr.bf16.mxu1 %v10167_v42 }
 0x5ff   :  { %9470 = vmatpush3.bf16.msra.mxu0 %v10168_v43  ;;  %9492 = vmatpush3.bf16.msra.mxu1 %v10169_v45 }
 0x600   :  { %9471 = vmatprep.subr.bf16.mxu0 %v10170_v47  ;;  %9493 = vmatprep.subr.bf16.mxu1 %v10171_v48  ;;  %v10192_v47 = vld [vmem:[#allocation7 + $0xb00] sm:$0xff]  }
 0x601   :  { %v10193_v48 = vld [vmem:[#allocation7 + $0xb80] sm:$0xff]  }
 0x603   :  { %9472 = vmatpush3.bf16.msra.mxu0 %v10172_v49  ;;  %9494 = vmatpush3.bf16.msra.mxu1 %v10173_v50 }
 0x604   :  { %9473 = vmatprep.subr.bf16.mxu0 %v10174_v51  ;;  %9495 = vmatprep.subr.bf16.mxu1 %v10175_v52  ;;  %v10195_v51 = vld [vmem:[#allocation7 + $0xbc8] sm:$0xff]  }
 0x607   :  { %9474 = vmatpush3.bf16.msra.mxu0 %v10176_v53  ;;  %9496 = vmatpush3.bf16.msra.mxu1 %v10177_v54  ;;  %v10196_v54 = vld [vmem:[#allocation7 + $0xb08] sm:$0xff]  }
 0x608   :  { %9475 = vmatprep.subr.bf16.mxu0 %v10178_v55  ;;  %9497 = vmatprep.subr.bf16.mxu1 %v10179_v56  ;;  %v10197_v55 = vld [vmem:[#allocation7 + $0xb88] sm:$0xff]  }
 0x60b   :  { %9476 = vmatpush3.bf16.msra.mxu0 %v10180_v57  ;;  %9498 = vmatpush3.bf16.msra.mxu1 %v10181_v58  ;;  %v10198_v58 = vld [vmem:[#allocation7 + $0xb50] sm:$0xff]  }
 0x60c   :  { %9477 = vmatprep.subr.bf16.mxu0 %v10182_v59  ;;  %9499 = vmatprep.subr.bf16.mxu1 %v10183_v60  ;;  %v10199_v59 = vld [vmem:[#allocation7 + $0xbd0] sm:$0xff]  }
 0x60f   :  { %9478 = vmatpush3.bf16.msra.mxu0 %v10184_v61  ;;  %9500 = vmatpush3.bf16.msra.mxu1 %v10185_v35 }
 0x610   :  { %9479 = vmatprep.subr.bf16.mxu0 %v10186_v63  ;;  %9501 = vmatprep.subr.bf16.mxu1 %v10187_v0 }
 0x613   :  { %9480 = vmatpush3.bf16.msra.mxu0 %v10188_v1  ;;  %9502 = vmatpush3.bf16.msra.mxu1 %v10189_v2 }
 0x614   :  { %9509 = vmatprep.subr.bf16.mxu0 %v10190_v3  ;;  %9531 = vmatprep.subr.bf16.mxu1 %v10191_v4  ;;  %v10200_v4 = vld [vmem:[#allocation7 + $0xb10] sm:$0xff]  }
 0x699   :  { %v9393_v5 = vpop.f32.mrb[72].mxu0  ;;  %v9415_v6 = vpop.f32.mrb[72].mxu1 }
 0x69a   :  { %v9394_v7 = vpop.f32.mrb[73].mxu0  ;;  %v9416_v8 = vpop.f32.mrb[73].mxu1 }
 0x69b   :  { %v9395_v9 = vadd.f32 %v9394_v7, %v9393_v5  ;;  %v9417_v10 = vadd.f32 %v9416_v8, %v9415_v6  ;;  %v9396_v11 = vpop.f32.mrb[74].mxu0  ;;  %v9418_v12 = vpop.f32.mrb[74].mxu1  ;;  %v10201_v5 = vld [vmem:[#allocation7 + $0xb90] sm:$0xff]   ;;  %v10202_v6 = vld [vmem:[#allocation7 + $0xb58] sm:$0xff]  }
 0x69c   :  { %v9397_v14 = vpop.f32.mrb[75].mxu0  ;;  %v9419_v20 = vpop.f32.mrb[75].mxu1  ;;  %v10203_v7 = vld [vmem:[#allocation7 + $0xbd8] sm:$0xff]   ;;  %v10207_v11 = vld [vmem:[#allocation7 + $0xbe0] sm:$0xff]  }
 0x69d   :  { %v4604_v46 = vadd.f32 %v9417_v10, %v9395_v9  ;;  %v10204_v8 = vld [vmem:[#allocation7 + $0xb18] sm:$0xff]   ;;  %v10206_v10 = vld [vmem:[#allocation7 + $0xb60] sm:$0xff]   ;;  %v10210_v20 = vld [vmem:[#allocation7 + $0xb68] sm:$0xff]  }
 0x69e   :  { %v10205_v9 = vld [vmem:[#allocation7 + $0xb98] sm:$0xff]   ;;  %v10208_v12 = vld [vmem:[#allocation7 + $0xb20] sm:$0xff]  }
 0x69f   :  { %v10209_v14 = vld [vmem:[#allocation7 + $0xba0] sm:$0xff]  }
 0x6b9   :  { %v9437_v21 = vpop.f32.mrb[76].mxu0  ;;  %v9459_v26 = vpop.f32.mrb[76].mxu1 }
 0x6ba   :  { %v9438_v27 = vpop.f32.mrb[77].mxu0  ;;  %v9460_v29 = vpop.f32.mrb[77].mxu1 }
 0x6bb   :  { %v9439_v30 = vadd.f32 %v9438_v27, %v9437_v21  ;;  %v9461_v31 = vadd.f32 %v9460_v29, %v9459_v26  ;;  %v9440_v32 = vpop.f32.mrb[78].mxu0  ;;  %v9462_v33 = vpop.f32.mrb[78].mxu1  ;;  %v5608_v21 = vld [vmem:[#allocation5 + $0x60] sm:$0xff]  ;;  %v10212_v26 = vld [vmem:[#allocation7 + $0xb28] sm:$0xff]  }
 0x6bc   :  { %v9441_v34 = vpop.f32.mrb[79].mxu0  ;;  %v9463_v36 = vpop.f32.mrb[79].mxu1  ;;  %v10213_v27 = vld [vmem:[#allocation7 + $0xba8] sm:$0xff]   ;;  %v10214_v29 = vld [vmem:[#allocation7 + $0xb70] sm:$0xff]   ;;  %v5609_v32 = vld [vmem:[#allocation5 + $0x68] sm:$0xff] }
 0x6bd   :  { %v4644_v37 = vadd.f32 %v9439_v30, %v4604_v46  ;;  %v10211_v46 = vld [vmem:[#allocation7 + $0xbe8] sm:$0xff]   ;;  %v10215_v30 = vld [vmem:[#allocation7 + $0xbf0] sm:$0xff]   ;;  %v10218_v36 = vld [vmem:[#allocation7 + $0xb78] sm:$0xff]  }
 0x6be   :  { %v10216_v33 = vld [vmem:[#allocation7 + $0xb30] sm:$0xff]  }
 0x6bf   :  { %v4684_v15 = vadd.f32 %v9461_v31, %v4644_v37  ;;  %v5612_v31 = vcombine.high %v5608_v21, %v5608_v21  ;;  %v10217_v34 = vld [vmem:[#allocation7 + $0xbb0] sm:$0xff]   ;;  %v10219_v37 = vld [vmem:[#allocation7 + $0xbf8] sm:$0xff]  }
 0x6c1   :  { %v10848_v17 = vadd.f32 %v4684_v15, %v10815_v13  ;;  %v4787_v16 = vpop.f32.mrb[80].mxu0  ;;  %v4828_v19 = vpop.f32.mrb[80].mxu1  ;;  %v10194_v13 = vld [vmem:[#allocation7 + $0xb48] sm:$0xff]   ;;  %v5619_v15 = vrot.slane %v5608_v21, %v10620_v18  ;;  %v10254_v21 = vld [vmem:[#allocation7 + $0xc38] sm:$0xff]  }
 0x6c2   :  { %v4917_v62 = vmax.f32 %v4787_v16, 0.0  ;;  %v4919_v22 = vmax.f32 %v4828_v19, 0.0  ;;  %v4789_v23 = vpop.f32.mrb[81].mxu0  ;;  %v4830_v38 = vpop.f32.mrb[81].mxu1  ;;  %v5626_v16 = vrot.slane %v5612_v31, %v10620_v18  ;;  %v5629_v19 = vcombine.high %v5609_v32, %v5609_v32 }
 0x6c3   :  { %v4918_v39 = vmax.f32 %v4789_v23, 0.0  ;;  %v4920_v24 = vmax.f32 %v4830_v38, 0.0  ;;  %v4791_v25 = vpop.f32.mrb[82].mxu0  ;;  %v4832_v40 = vpop.f32.mrb[82].mxu1 }
 0x6c4   :  { %v4792_v41 = vpop.f32.mrb[83].mxu0  ;;  %v4833_v42 = vpop.f32.mrb[83].mxu1  ;;  %v4925_v49 = vpack.c.bf16 %v4917_v62, %v4917_v62  ;;  %v4927_v50 = vpack.c.bf16 %v4919_v22, %v4919_v22  ;;  %v10220_v62 = vld [vmem:[#allocation7 + $0xb38] sm:$0xff]   ;;  %v5636_v25 = vrot.slane %v5609_v32, %v10620_v18  ;;  %v5643_v40 = vrot.slane %v5629_v19, %v10620_v18 }
 0x6c5   :  { %v4926_v43 = vpack.c.bf16 %v4918_v39, %v4918_v39  ;;  %v4928_v45 = vpack.c.bf16 %v4920_v24, %v4920_v24  ;;  %v10221_v22 = vld [vmem:[#allocation7 + $0xbb8] sm:$0xff]   ;;  %v5627_v39 = vcombine.high %v5619_v15, %v5619_v15  ;;  %v5628_v24 = vcombine.high %v5626_v16, %v5626_v16 }
 0x6c7   :  { %5478 = vmatprep.mubr.bf16.mxu0 %v4926_v43  ;;  %5518 = vmatprep.mubr.bf16.mxu1 %v4928_v45  ;;  %v5647_v43 = vsel %vm144_vm0, %v5619_v15, 0  ;;  %v5653_v45 = vsel %vm144_vm0, %v5626_v16, 0 }
 0x6c8   :  { %5479 = vmatmul.mubr.bf16.vlgmr.msra.gmra.mrb[88].mxu0 %v4925_v49  ;;  %5519 = vmatmul.mubr.bf16.vlgmr.msra.gmra.mrb[88].mxu1 %v4927_v50  ;;  %v5659_v49 = vsel %vm144_vm0, %v5636_v25, 0  ;;  %v5665_v50 = vsel %vm144_vm0, %v5643_v40, 0 }
 0x6c9   :  { %9510 = vmatpush3.bf16.msra.mxu0 %v10192_v47  ;;  %9532 = vmatpush3.bf16.msra.mxu1 %v10193_v48  ;;  %v10850_v52 = vpop.f32.mrb[84].mxu0  ;;  %v10852_v53 = vpop.f32.mrb[84].mxu1  ;;  %v5644_v47 = vcombine.high %v5636_v25, %v5636_v25  ;;  %v5645_v48 = vcombine.high %v5643_v40, %v5643_v40 }
 0x6ca   :  { %v4871_v56 = vpop.f32.mrb[85].mxu0  ;;  %v4912_v57 = vpop.f32.mrb[85].mxu1  ;;  %9511 = vmatprep.subr.bf16.mxu0 %v10194_v13  ;;  %9533 = vmatprep.subr.bf16.mxu1 %v10195_v51  ;;  %v4921_v23 = vmax.f32 %v10850_v52, 0.0  ;;  %v4923_v38 = vmax.f32 %v10852_v53, 0.0  ;;  %v10224_v13 = vld [vmem:[#allocation7 + $0xc40] sm:$0xff]  }
 0x6cb   :  { %v4922_v60 = vmax.f32 %v4871_v56, 0.0  ;;  %v4924_v61 = vmax.f32 %v4912_v57, 0.0  ;;  %v4873_v35 = vpop.f32.mrb[86].mxu0  ;;  %v4914_v63 = vpop.f32.mrb[86].mxu1  ;;  %v10225_v51 = vld [vmem:[#allocation7 + $0xcc0] sm:$0xff]   ;;  %v10230_v56 = vld [vmem:[#allocation7 + $0xc08] sm:$0xff]  }
 0x6cc   :  { %v4874_v0 = vpop.f32.mrb[87].mxu0  ;;  %v4915_v1 = vpop.f32.mrb[87].mxu1  ;;  %v4929_v41 = vpack.c.bf16 %v4921_v23, %v4921_v23  ;;  %v4931_v42 = vpack.c.bf16 %v4923_v38, %v4923_v38  ;;  %v10226_v52 = vld [vmem:[#allocation7 + $0xc00] sm:$0xff]   ;;  %v10231_v57 = vld [vmem:[#allocation7 + $0xc88] sm:$0xff]   ;;  %v10236_v35 = vld [vmem:[#allocation7 + $0xc58] sm:$0xff]  }
 0x6cd   :  { %v4930_v2 = vpack.c.bf16 %v4922_v60, %v4922_v60  ;;  %v4932_v3 = vpack.c.bf16 %v4924_v61, %v4924_v61  ;;  %9512 = vmatpush3.bf16.msra.mxu0 %v10196_v54  ;;  %9534 = vmatpush3.bf16.msra.mxu1 %v10197_v55  ;;  %v10227_v53 = vld [vmem:[#allocation7 + $0xc80] sm:$0xff]   ;;  %v10228_v54 = vld [vmem:[#allocation7 + $0xc48] sm:$0xff]   ;;  %v10234_v60 = vld [vmem:[#allocation7 + $0xc10] sm:$0xff]  }
 0x6ce   :  { %9513 = vmatprep.subr.bf16.mxu0 %v10198_v58  ;;  %9535 = vmatprep.subr.bf16.mxu1 %v10199_v59  ;;  %v10229_v55 = vld [vmem:[#allocation7 + $0xcc8] sm:$0xff]   ;;  %v10232_v58 = vld [vmem:[#allocation7 + $0xc50] sm:$0xff]   ;;  %v10237_v63 = vld [vmem:[#allocation7 + $0xcd8] sm:$0xff]  }
 0x6cf   :  { %5558 = vmatprep.mubr.bf16.mxu0 %v4930_v2  ;;  %5598 = vmatprep.mubr.bf16.mxu1 %v4932_v3  ;;  %v10233_v59 = vld [vmem:[#allocation7 + $0xcd0] sm:$0xff]   ;;  %v10238_v0 = vld [vmem:[#allocation7 + $0xc18] sm:$0xff]   ;;  %v10240_v2 = vld [vmem:[#allocation7 + $0xc60] sm:$0xff]  }
 0x6d0   :  { %v10235_v61 = vld [vmem:[#allocation7 + $0xc90] sm:$0xff]   ;;  %v10239_v1 = vld [vmem:[#allocation7 + $0xc98] sm:$0xff]   ;;  %v10241_v3 = vld [vmem:[#allocation7 + $0xce0] sm:$0xff]  }
 0x6d1   :  { %9514 = vmatpush3.bf16.msra.mxu0 %v10200_v4  ;;  %9536 = vmatpush3.bf16.msra.mxu1 %v10201_v5  ;;  %v10242_v4 = vld [vmem:[#allocation7 + $0xc20] sm:$0xff]  }
 0x6d2   :  { %9515 = vmatprep.subr.bf16.mxu0 %v10202_v6  ;;  %9537 = vmatprep.subr.bf16.mxu1 %v10203_v7  ;;  %v10243_v5 = vld [vmem:[#allocation7 + $0xca0] sm:$0xff]   ;;  %v10244_v6 = vld [vmem:[#allocation7 + $0xc68] sm:$0xff]  }
 0x6d3   :  { %v10245_v7 = vld [vmem:[#allocation7 + $0xce8] sm:$0xff]  }
 0x6d5   :  { %9516 = vmatpush3.bf16.msra.mxu0 %v10204_v8  ;;  %9538 = vmatpush3.bf16.msra.mxu1 %v10205_v9  ;;  %v10246_v8 = vld [vmem:[#allocation7 + $0xc28] sm:$0xff]  }
 0x6d6   :  { %9517 = vmatprep.subr.bf16.mxu0 %v10206_v10  ;;  %9539 = vmatprep.subr.bf16.mxu1 %v10207_v11  ;;  %v10247_v9 = vld [vmem:[#allocation7 + $0xca8] sm:$0xff]   ;;  %v10248_v10 = vld [vmem:[#allocation7 + $0xc70] sm:$0xff]  }
 0x6d7   :  { %v10249_v11 = vld [vmem:[#allocation7 + $0xcf0] sm:$0xff]  }
 0x6d9   :  { %9518 = vmatpush3.bf16.msra.mxu0 %v10208_v12  ;;  %9540 = vmatpush3.bf16.msra.mxu1 %v10209_v14  ;;  %v10250_v12 = vld [vmem:[#allocation7 + $0xc30] sm:$0xff]  }
 0x6da   :  { %9519 = vmatprep.subr.bf16.mxu0 %v10210_v20  ;;  %9541 = vmatprep.subr.bf16.mxu1 %v10211_v46  ;;  %v10251_v14 = vld [vmem:[#allocation7 + $0xcb0] sm:$0xff]   ;;  %v10252_v20 = vld [vmem:[#allocation7 + $0xc78] sm:$0xff]  }
 0x6db   :  { %v10253_v46 = vld [vmem:[#allocation7 + $0xcf8] sm:$0xff]  }
 0x6dd   :  { %9520 = vmatpush3.bf16.msra.mxu0 %v10212_v26  ;;  %9542 = vmatpush3.bf16.msra.mxu1 %v10213_v27  ;;  %v10255_v26 = vld [vmem:[#allocation7 + $0xcb8] sm:$0xff]   ;;  %v10256_v27 = vld [vmem:[#allocation7 + $0xd40] sm:$0xff]  }
 0x6de   :  { %9521 = vmatprep.subr.bf16.mxu0 %v10214_v29  ;;  %9543 = vmatprep.subr.bf16.mxu1 %v10215_v30  ;;  %v10257_v29 = vld [vmem:[#allocation7 + $0xdc0] sm:$0xff]  }
 0x6e1   :  { %9522 = vmatpush3.bf16.msra.mxu0 %v10216_v33  ;;  %9544 = vmatpush3.bf16.msra.mxu1 %v10217_v34 }
 0x6e2   :  { %9523 = vmatprep.subr.bf16.mxu0 %v10218_v36  ;;  %9545 = vmatprep.subr.bf16.mxu1 %v10219_v37 }
 0x6e5   :  { %9524 = vmatpush3.bf16.msra.mxu0 %v10220_v62  ;;  %9546 = vmatpush3.bf16.msra.mxu1 %v10221_v22 }
 0x6e6   :  { %8809 = vmatprep.subr.msk.bf16.mxu0 %vm144_vm0, %v5627_v39  ;;  %8811 = vmatprep.subr.msk.bf16.mxu1 %vm144_vm0, %v5628_v24 }
 0x6e8   :  { %5559 = vmatmul.mubr.bf16.vlgmr.msra.gmra.mrb[92].mxu0 %v4929_v41  ;;  %5599 = vmatmul.mubr.bf16.vlgmr.msra.gmra.mrb[92].mxu1 %v4931_v42 }
 0x6e9   :  { %5671 = vmatpush1.bf16.msra.mxu0 %v5647_v43  ;;  %5712 = vmatpush1.bf16.msra.mxu1 %v5653_v45 }
 0x6ea   :  { %5702 = vmatprep.mubr.bf16.mxu0 %v10545_v28  ;;  %5743 = vmatprep.mubr.bf16.mxu1 %v10545_v28 }
 0x6eb   :  { %8813 = vmatprep.subr.msk.bf16.mxu0 %vm144_vm0, %v5644_v47  ;;  %8815 = vmatprep.subr.msk.bf16.mxu1 %vm144_vm0, %v5645_v48 }
 0x6f0   :  { %8810 = vmatmul.mubr.msk.bf16.vlgmr.msra.gmra.mrb[96].mxu0 %vm140_vm4, %v10636_v44  ;;  %8812 = vmatmul.mubr.msk.bf16.vlgmr.msra.gmra.mrb[96].mxu1 %vm140_vm4, %v10636_v44 }
 0x6f1   :  { %5753 = vmatpush1.bf16.msra.mxu0 %v5659_v49  ;;  %5794 = vmatpush1.bf16.msra.mxu1 %v5665_v50 }
 0x6f2   :  { %5784 = vmatprep.mubr.bf16.mxu0 %v10545_v28  ;;  %5825 = vmatprep.mubr.bf16.mxu1 %v10545_v28 }
 0x6f3   :  { %9553 = vmatprep.subr.bf16.mxu0 %v10224_v13  ;;  %9575 = vmatprep.subr.bf16.mxu1 %v10225_v51 }
 0x6f8   :  { %8814 = vmatmul.mubr.msk.bf16.vlgmr.msra.gmra.mrb[100].mxu0 %vm140_vm4, %v10636_v44  ;;  %8816 = vmatmul.mubr.msk.bf16.vlgmr.msra.gmra.mrb[100].mxu1 %vm140_vm4, %v10636_v44 }
 0x6f9   :  { %9554 = vmatpush3.bf16.msra.mxu0 %v10226_v52  ;;  %9576 = vmatpush3.bf16.msra.mxu1 %v10227_v53 }
 0x6fa   :  { %9555 = vmatprep.subr.bf16.mxu0 %v10228_v54  ;;  %9577 = vmatprep.subr.bf16.mxu1 %v10229_v55 }
 0x6fd   :  { %9556 = vmatpush3.bf16.msra.mxu0 %v10230_v56  ;;  %9578 = vmatpush3.bf16.msra.mxu1 %v10231_v57 }
 0x6fe   :  { %9557 = vmatprep.subr.bf16.mxu0 %v10232_v58  ;;  %9579 = vmatprep.subr.bf16.mxu1 %v10233_v59 }
 0x701   :  { %9558 = vmatpush3.bf16.msra.mxu0 %v10234_v60  ;;  %9580 = vmatpush3.bf16.msra.mxu1 %v10235_v61 }
 0x702   :  { %9559 = vmatprep.subr.bf16.mxu0 %v10236_v35  ;;  %9581 = vmatprep.subr.bf16.mxu1 %v10237_v63  ;;  %v10258_v35 = vld [vmem:[#allocation7 + $0xd00] sm:$0xff]  }
 0x703   :  { %v10259_v63 = vld [vmem:[#allocation7 + $0xd80] sm:$0xff]  }
 0x705   :  { %9560 = vmatpush3.bf16.msra.mxu0 %v10238_v0  ;;  %9582 = vmatpush3.bf16.msra.mxu1 %v10239_v1 }
 0x706   :  { %9561 = vmatprep.subr.bf16.mxu0 %v10240_v2  ;;  %9583 = vmatprep.subr.bf16.mxu1 %v10241_v3  ;;  %v10261_v2 = vld [vmem:[#allocation7 + $0xdc8] sm:$0xff]  }
 0x709   :  { %9562 = vmatpush3.bf16.msra.mxu0 %v10242_v4  ;;  %9584 = vmatpush3.bf16.msra.mxu1 %v10243_v5  ;;  %v10262_v5 = vld [vmem:[#allocation7 + $0xd08] sm:$0xff]  }
 0x70a   :  { %9563 = vmatprep.subr.bf16.mxu0 %v10244_v6  ;;  %9585 = vmatprep.subr.bf16.mxu1 %v10245_v7  ;;  %v10263_v6 = vld [vmem:[#allocation7 + $0xd88] sm:$0xff]  }
 0x70d   :  { %9564 = vmatpush3.bf16.msra.mxu0 %v10246_v8  ;;  %9586 = vmatpush3.bf16.msra.mxu1 %v10247_v9  ;;  %v10264_v9 = vld [vmem:[#allocation7 + $0xd50] sm:$0xff]  }
 0x70e   :  { %9565 = vmatprep.subr.bf16.mxu0 %v10248_v10  ;;  %9587 = vmatprep.subr.bf16.mxu1 %v10249_v11  ;;  %v10265_v10 = vld [vmem:[#allocation7 + $0xdd0] sm:$0xff]  }
 0x711   :  { %9566 = vmatpush3.bf16.msra.mxu0 %v10250_v12  ;;  %9588 = vmatpush3.bf16.msra.mxu1 %v10251_v14 }
 0x712   :  { %9567 = vmatprep.subr.bf16.mxu0 %v10252_v20  ;;  %9589 = vmatprep.subr.bf16.mxu1 %v10253_v46 }
 0x715   :  { %9568 = vmatpush3.bf16.msra.mxu0 %v10254_v21  ;;  %9590 = vmatpush3.bf16.msra.mxu1 %v10255_v26 }
 0x716   :  { %9597 = vmatprep.subr.bf16.mxu0 %v10256_v27  ;;  %9619 = vmatprep.subr.bf16.mxu1 %v10257_v29  ;;  %v10266_v29 = vld [vmem:[#allocation7 + $0xd10] sm:$0xff]  }
 0x79b   :  { %v9481_v30 = vpop.f32.mrb[88].mxu0  ;;  %v9503_v31 = vpop.f32.mrb[88].mxu1 }
 0x79c   :  { %v9482_v32 = vpop.f32.mrb[89].mxu0  ;;  %v9504_v33 = vpop.f32.mrb[89].mxu1 }
 0x79d   :  { %v9483_v34 = vadd.f32 %v9482_v32, %v9481_v30  ;;  %v9505_v36 = vadd.f32 %v9504_v33, %v9503_v31  ;;  %v9484_v37 = vpop.f32.mrb[90].mxu0  ;;  %v9506_v15 = vpop.f32.mrb[90].mxu1  ;;  %v10267_v30 = vld [vmem:[#allocation7 + $0xd90] sm:$0xff]   ;;  %v10268_v31 = vld [vmem:[#allocation7 + $0xd58] sm:$0xff]  }
 0x79e   :  { %v9485_v16 = vpop.f32.mrb[91].mxu0  ;;  %v9507_v19 = vpop.f32.mrb[91].mxu1  ;;  %v10269_v32 = vld [vmem:[#allocation7 + $0xdd8] sm:$0xff]   ;;  %v10273_v37 = vld [vmem:[#allocation7 + $0xde0] sm:$0xff]  }
 0x79f   :  { %v5521_v62 = vadd.f32 %v9505_v36, %v9483_v34  ;;  %v10270_v33 = vld [vmem:[#allocation7 + $0xd18] sm:$0xff]   ;;  %v10272_v36 = vld [vmem:[#allocation7 + $0xd60] sm:$0xff]   ;;  %v10276_v19 = vld [vmem:[#allocation7 + $0xd68] sm:$0xff]  }
 0x7a0   :  { %v10271_v34 = vld [vmem:[#allocation7 + $0xd98] sm:$0xff]   ;;  %v10274_v15 = vld [vmem:[#allocation7 + $0xd20] sm:$0xff]  }
 0x7a1   :  { %v10275_v16 = vld [vmem:[#allocation7 + $0xda0] sm:$0xff]  }
 0x7bb   :  { %v9525_v22 = vpop.f32.mrb[92].mxu0  ;;  %v9547_v23 = vpop.f32.mrb[92].mxu1 }
 0x7bc   :  { %v9526_v38 = vpop.f32.mrb[93].mxu0  ;;  %v9548_v39 = vpop.f32.mrb[93].mxu1 }
 0x7bd   :  { %v9527_v24 = vadd.f32 %v9526_v38, %v9525_v22  ;;  %v9549_v25 = vadd.f32 %v9548_v39, %v9547_v23  ;;  %v9528_v40 = vpop.f32.mrb[94].mxu0  ;;  %v9550_v41 = vpop.f32.mrb[94].mxu1  ;;  %v6525_v22 = vld [vmem:[#allocation5 + $0x70] sm:$0xff]  ;;  %v10278_v23 = vld [vmem:[#allocation7 + $0xd28] sm:$0xff]   ;;  %v10280_v39 = vld [vmem:[#allocation7 + $0xd70] sm:$0xff]  }
 0x7be   :  { %v9529_v42 = vpop.f32.mrb[95].mxu0  ;;  %v9551_v43 = vpop.f32.mrb[95].mxu1  ;;  %v10279_v38 = vld [vmem:[#allocation7 + $0xda8] sm:$0xff]   ;;  %v10282_v41 = vld [vmem:[#allocation7 + $0xd30] sm:$0xff]  }
 0x7bf   :  { %v5561_v45 = vadd.f32 %v9527_v24, %v5521_v62  ;;  %v10277_v62 = vld [vmem:[#allocation7 + $0xde8] sm:$0xff]   ;;  %v10281_v24 = vld [vmem:[#allocation7 + $0xdf0] sm:$0xff]   ;;  %v10284_v43 = vld [vmem:[#allocation7 + $0xd78] sm:$0xff]  }
 0x7c0   :  { %v6526_v40 = vld [vmem:[#allocation5 + $0x78] sm:$0xff]  ;;  %v10283_v42 = vld [vmem:[#allocation7 + $0xdb0] sm:$0xff]  }
 0x7c1   :  { %v5601_v47 = vadd.f32 %v9549_v25, %v5561_v45  ;;  %v6529_v25 = vcombine.high %v6525_v22, %v6525_v22  ;;  %v10285_v45 = vld [vmem:[#allocation7 + $0xdf8] sm:$0xff]  }
 0x7c3   :  { %v10881_v48 = vadd.f32 %v5601_v47, %v10848_v17  ;;  %v5704_v49 = vpop.f32.mrb[96].mxu0  ;;  %v5745_v50 = vpop.f32.mrb[96].mxu1  ;;  %v10260_v17 = vld [vmem:[#allocation7 + $0xd48] sm:$0xff]   ;;  %v6536_v47 = vrot.slane %v6525_v22, %v10620_v18  ;;  %v10320_v22 = vld [vmem:[#allocation7 + $0xe38] sm:$0xff]  }
 0x7c4   :  { %v5834_v13 = vmax.f32 %v5704_v49, 0.0  ;;  %v5836_v51 = vmax.f32 %v5745_v50, 0.0  ;;  %v5706_v52 = vpop.f32.mrb[97].mxu0  ;;  %v5747_v53 = vpop.f32.mrb[97].mxu1  ;;  %v6543_v49 = vrot.slane %v6529_v25, %v10620_v18  ;;  %v6546_v50 = vcombine.high %v6526_v40, %v6526_v40 }
 0x7c5   :  { %v5835_v54 = vmax.f32 %v5706_v52, 0.0  ;;  %v5837_v55 = vmax.f32 %v5747_v53, 0.0  ;;  %v5708_v56 = vpop.f32.mrb[98].mxu0  ;;  %v5749_v57 = vpop.f32.mrb[98].mxu1 }
 0x7c6   :  { %v5709_v58 = vpop.f32.mrb[99].mxu0  ;;  %v5750_v59 = vpop.f32.mrb[99].mxu1  ;;  %v5842_v0 = vpack.c.bf16 %v5834_v13, %v5834_v13  ;;  %v5844_v1 = vpack.c.bf16 %v5836_v51, %v5836_v51  ;;  %v10286_v13 = vld [vmem:[#allocation7 + $0xd38] sm:$0xff]   ;;  %v6553_v56 = vrot.slane %v6526_v40, %v10620_v18  ;;  %v6560_v57 = vrot.slane %v6546_v50, %v10620_v18 }
 0x7c7   :  { %v5843_v60 = vpack.c.bf16 %v5835_v54, %v5835_v54  ;;  %v5845_v61 = vpack.c.bf16 %v5837_v55, %v5837_v55  ;;  %v10287_v51 = vld [vmem:[#allocation7 + $0xdb8] sm:$0xff]   ;;  %v6544_v54 = vcombine.high %v6536_v47, %v6536_v47  ;;  %v6545_v55 = vcombine.high %v6543_v49, %v6543_v49 }
 0x7c9   :  { %6395 = vmatprep.mubr.bf16.mxu0 %v5843_v60  ;;  %6435 = vmatprep.mubr.bf16.mxu1 %v5845_v61  ;;  %v6564_v60 = vsel %vm144_vm0, %v6536_v47, 0  ;;  %v6570_v61 = vsel %vm144_vm0, %v6543_v49, 0 }
 0x7ca   :  { %6396 = vmatmul.mubr.bf16.vlgmr.msra.gmra.mrb[104].mxu0 %v5842_v0  ;;  %6436 = vmatmul.mubr.bf16.vlgmr.msra.gmra.mrb[104].mxu1 %v5844_v1  ;;  %v6576_v0 = vsel %vm144_vm0, %v6553_v56, 0  ;;  %v6582_v1 = vsel %vm144_vm0, %v6560_v57, 0 }
 0x7cb   :  { %9598 = vmatpush3.bf16.msra.mxu0 %v10258_v35  ;;  %9620 = vmatpush3.bf16.msra.mxu1 %v10259_v63  ;;  %v10883_v3 = vpop.f32.mrb[100].mxu0  ;;  %v10885_v4 = vpop.f32.mrb[100].mxu1  ;;  %v6561_v35 = vcombine.high %v6553_v56, %v6553_v56  ;;  %v6562_v63 = vcombine.high %v6560_v57, %v6560_v57 }
 0x7cc   :  { %v5788_v7 = vpop.f32.mrb[101].mxu0  ;;  %v5829_v8 = vpop.f32.mrb[101].mxu1  ;;  %9599 = vmatprep.subr.bf16.mxu0 %v10260_v17  ;;  %9621 = vmatprep.subr.bf16.mxu1 %v10261_v2  ;;  %v5838_v52 = vmax.f32 %v10883_v3, 0.0  ;;  %v5840_v53 = vmax.f32 %v10885_v4, 0.0  ;;  %v10290_v17 = vld [vmem:[#allocation7 + $0xe40] sm:$0xff]  }
 0x7cd   :  { %v5839_v11 = vmax.f32 %v5788_v7, 0.0  ;;  %v5841_v12 = vmax.f32 %v5829_v8, 0.0  ;;  %v5790_v14 = vpop.f32.mrb[102].mxu0  ;;  %v5831_v20 = vpop.f32.mrb[102].mxu1  ;;  %v10291_v2 = vld [vmem:[#allocation7 + $0xec0] sm:$0xff]   ;;  %v10296_v7 = vld [vmem:[#allocation7 + $0xe08] sm:$0xff]  }
 0x7ce   :  { %v5791_v46 = vpop.f32.mrb[103].mxu0  ;;  %v5832_v21 = vpop.f32.mrb[103].mxu1  ;;  %v5846_v58 = vpack.c.bf16 %v5838_v52, %v5838_v52  ;;  %v5848_v59 = vpack.c.bf16 %v5840_v53, %v5840_v53  ;;  %v10292_v3 = vld [vmem:[#allocation7 + $0xe00] sm:$0xff]   ;;  %v10297_v8 = vld [vmem:[#allocation7 + $0xe88] sm:$0xff]   ;;  %v10302_v14 = vld [vmem:[#allocation7 + $0xe58] sm:$0xff]  }
 0x7cf   :  { %v5847_v26 = vpack.c.bf16 %v5839_v11, %v5839_v11  ;;  %v5849_v27 = vpack.c.bf16 %v5841_v12, %v5841_v12  ;;  %9600 = vmatpush3.bf16.msra.mxu0 %v10262_v5  ;;  %9622 = vmatpush3.bf16.msra.mxu1 %v10263_v6  ;;  %v10293_v4 = vld [vmem:[#allocation7 + $0xe80] sm:$0xff]   ;;  %v10294_v5 = vld [vmem:[#allocation7 + $0xe48] sm:$0xff]   ;;  %v10300_v11 = vld [vmem:[#allocation7 + $0xe10] sm:$0xff]  }
 0x7d0   :  { %9601 = vmatprep.subr.bf16.mxu0 %v10264_v9  ;;  %9623 = vmatprep.subr.bf16.mxu1 %v10265_v10  ;;  %v10295_v6 = vld [vmem:[#allocation7 + $0xec8] sm:$0xff]   ;;  %v10298_v9 = vld [vmem:[#allocation7 + $0xe50] sm:$0xff]   ;;  %v10303_v20 = vld [vmem:[#allocation7 + $0xed8] sm:$0xff]  }
 0x7d1   :  { %6475 = vmatprep.mubr.bf16.mxu0 %v5847_v26  ;;  %6515 = vmatprep.mubr.bf16.mxu1 %v5849_v27  ;;  %v10299_v10 = vld [vmem:[#allocation7 + $0xed0] sm:$0xff]   ;;  %v10304_v46 = vld [vmem:[#allocation7 + $0xe18] sm:$0xff]   ;;  %v10306_v26 = vld [vmem:[#allocation7 + $0xe60] sm:$0xff]  }
 0x7d2   :  { %v10301_v12 = vld [vmem:[#allocation7 + $0xe90] sm:$0xff]   ;;  %v10305_v21 = vld [vmem:[#allocation7 + $0xe98] sm:$0xff]   ;;  %v10307_v27 = vld [vmem:[#allocation7 + $0xee0] sm:$0xff]  }
 0x7d3   :  { %9602 = vmatpush3.bf16.msra.mxu0 %v10266_v29  ;;  %9624 = vmatpush3.bf16.msra.mxu1 %v10267_v30  ;;  %v10308_v29 = vld [vmem:[#allocation7 + $0xe20] sm:$0xff]  }
 0x7d4   :  { %9603 = vmatprep.subr.bf16.mxu0 %v10268_v31  ;;  %9625 = vmatprep.subr.bf16.mxu1 %v10269_v32  ;;  %v10309_v30 = vld [vmem:[#allocation7 + $0xea0] sm:$0xff]   ;;  %v10310_v31 = vld [vmem:[#allocation7 + $0xe68] sm:$0xff]  }
 0x7d5   :  { %v10311_v32 = vld [vmem:[#allocation7 + $0xee8] sm:$0xff]  }
 0x7d7   :  { %9604 = vmatpush3.bf16.msra.mxu0 %v10270_v33  ;;  %9626 = vmatpush3.bf16.msra.mxu1 %v10271_v34  ;;  %v10312_v33 = vld [vmem:[#allocation7 + $0xe28] sm:$0xff]  }
 0x7d8   :  { %9605 = vmatprep.subr.bf16.mxu0 %v10272_v36  ;;  %9627 = vmatprep.subr.bf16.mxu1 %v10273_v37  ;;  %v10313_v34 = vld [vmem:[#allocation7 + $0xea8] sm:$0xff]   ;;  %v10314_v36 = vld [vmem:[#allocation7 + $0xe70] sm:$0xff]  }
 0x7d9   :  { %v10315_v37 = vld [vmem:[#allocation7 + $0xef0] sm:$0xff]  }
 0x7db   :  { %9606 = vmatpush3.bf16.msra.mxu0 %v10274_v15  ;;  %9628 = vmatpush3.bf16.msra.mxu1 %v10275_v16  ;;  %v10316_v15 = vld [vmem:[#allocation7 + $0xe30] sm:$0xff]  }
 0x7dc   :  { %9607 = vmatprep.subr.bf16.mxu0 %v10276_v19  ;;  %9629 = vmatprep.subr.bf16.mxu1 %v10277_v62  ;;  %v10317_v16 = vld [vmem:[#allocation7 + $0xeb0] sm:$0xff]   ;;  %v10318_v19 = vld [vmem:[#allocation7 + $0xe78] sm:$0xff]  }
 0x7dd   :  { %v10319_v62 = vld [vmem:[#allocation7 + $0xef8] sm:$0xff]  }
 0x7df   :  { %9608 = vmatpush3.bf16.msra.mxu0 %v10278_v23  ;;  %9630 = vmatpush3.bf16.msra.mxu1 %v10279_v38  ;;  %v10321_v23 = vld [vmem:[#allocation7 + $0xeb8] sm:$0xff]   ;;  %v10322_v38 = vld [vmem:[#allocation7 + $0xf40] sm:$0xff]  }
 0x7e0   :  { %9609 = vmatprep.subr.bf16.mxu0 %v10280_v39  ;;  %9631 = vmatprep.subr.bf16.mxu1 %v10281_v24  ;;  %v10323_v39 = vld [vmem:[#allocation7 + $0xfc0] sm:$0xff]  }
 0x7e3   :  { %9610 = vmatpush3.bf16.msra.mxu0 %v10282_v41  ;;  %9632 = vmatpush3.bf16.msra.mxu1 %v10283_v42 }
 0x7e4   :  { %9611 = vmatprep.subr.bf16.mxu0 %v10284_v43  ;;  %9633 = vmatprep.subr.bf16.mxu1 %v10285_v45 }
 0x7e7   :  { %9612 = vmatpush3.bf16.msra.mxu0 %v10286_v13  ;;  %9634 = vmatpush3.bf16.msra.mxu1 %v10287_v51 }
 0x7e8   :  { %8881 = vmatprep.subr.msk.bf16.mxu0 %vm144_vm0, %v6544_v54  ;;  %8883 = vmatprep.subr.msk.bf16.mxu1 %vm144_vm0, %v6545_v55 }
 0x7ea   :  { %6476 = vmatmul.mubr.bf16.vlgmr.msra.gmra.mrb[108].mxu0 %v5846_v58  ;;  %6516 = vmatmul.mubr.bf16.vlgmr.msra.gmra.mrb[108].mxu1 %v5848_v59 }
 0x7eb   :  { %6588 = vmatpush1.bf16.msra.mxu0 %v6564_v60  ;;  %6629 = vmatpush1.bf16.msra.mxu1 %v6570_v61 }
 0x7ec   :  { %6619 = vmatprep.mubr.bf16.mxu0 %v10545_v28  ;;  %6660 = vmatprep.mubr.bf16.mxu1 %v10545_v28 }
 0x7ed   :  { %8885 = vmatprep.subr.msk.bf16.mxu0 %vm144_vm0, %v6561_v35  ;;  %8887 = vmatprep.subr.msk.bf16.mxu1 %vm144_vm0, %v6562_v63 }
 0x7f2   :  { %8882 = vmatmul.mubr.msk.bf16.vlgmr.msra.gmra.mrb[112].mxu0 %vm140_vm4, %v10636_v44  ;;  %8884 = vmatmul.mubr.msk.bf16.vlgmr.msra.gmra.mrb[112].mxu1 %vm140_vm4, %v10636_v44 }
 0x7f3   :  { %6670 = vmatpush1.bf16.msra.mxu0 %v6576_v0  ;;  %6711 = vmatpush1.bf16.msra.mxu1 %v6582_v1 }
 0x7f4   :  { %6701 = vmatprep.mubr.bf16.mxu0 %v10545_v28  ;;  %6742 = vmatprep.mubr.bf16.mxu1 %v10545_v28 }
 0x7f5   :  { %9641 = vmatprep.subr.bf16.mxu0 %v10290_v17  ;;  %9663 = vmatprep.subr.bf16.mxu1 %v10291_v2 }
 0x7fa   :  { %8886 = vmatmul.mubr.msk.bf16.vlgmr.msra.gmra.mrb[116].mxu0 %vm140_vm4, %v10636_v44  ;;  %8888 = vmatmul.mubr.msk.bf16.vlgmr.msra.gmra.mrb[116].mxu1 %vm140_vm4, %v10636_v44 }
 0x7fb   :  { %9642 = vmatpush3.bf16.msra.mxu0 %v10292_v3  ;;  %9664 = vmatpush3.bf16.msra.mxu1 %v10293_v4 }
 0x7fc   :  { %9643 = vmatprep.subr.bf16.mxu0 %v10294_v5  ;;  %9665 = vmatprep.subr.bf16.mxu1 %v10295_v6 }
 0x7ff   :  { %9644 = vmatpush3.bf16.msra.mxu0 %v10296_v7  ;;  %9666 = vmatpush3.bf16.msra.mxu1 %v10297_v8 }
 0x800   :  { %9645 = vmatprep.subr.bf16.mxu0 %v10298_v9  ;;  %9667 = vmatprep.subr.bf16.mxu1 %v10299_v10 }
 0x803   :  { %9646 = vmatpush3.bf16.msra.mxu0 %v10300_v11  ;;  %9668 = vmatpush3.bf16.msra.mxu1 %v10301_v12 }
 0x804   :  { %9647 = vmatprep.subr.bf16.mxu0 %v10302_v14  ;;  %9669 = vmatprep.subr.bf16.mxu1 %v10303_v20  ;;  %v10324_v14 = vld [vmem:[#allocation7 + $0xf00] sm:$0xff]  }
 0x805   :  { %v10325_v20 = vld [vmem:[#allocation7 + $0xf80] sm:$0xff]  }
 0x807   :  { %9648 = vmatpush3.bf16.msra.mxu0 %v10304_v46  ;;  %9670 = vmatpush3.bf16.msra.mxu1 %v10305_v21 }
 0x808   :  { %9649 = vmatprep.subr.bf16.mxu0 %v10306_v26  ;;  %9671 = vmatprep.subr.bf16.mxu1 %v10307_v27  ;;  %v10327_v26 = vld [vmem:[#allocation7 + $0xfc8] sm:$0xff]  }
 0x80b   :  { %9650 = vmatpush3.bf16.msra.mxu0 %v10308_v29  ;;  %9672 = vmatpush3.bf16.msra.mxu1 %v10309_v30  ;;  %v10328_v30 = vld [vmem:[#allocation7 + $0xf08] sm:$0xff]  }
 0x80c   :  { %9651 = vmatprep.subr.bf16.mxu0 %v10310_v31  ;;  %9673 = vmatprep.subr.bf16.mxu1 %v10311_v32  ;;  %v10329_v31 = vld [vmem:[#allocation7 + $0xf88] sm:$0xff]  }
 0x80f   :  { %9652 = vmatpush3.bf16.msra.mxu0 %v10312_v33  ;;  %9674 = vmatpush3.bf16.msra.mxu1 %v10313_v34  ;;  %v10330_v34 = vld [vmem:[#allocation7 + $0xf50] sm:$0xff]  }
 0x810   :  { %9653 = vmatprep.subr.bf16.mxu0 %v10314_v36  ;;  %9675 = vmatprep.subr.bf16.mxu1 %v10315_v37  ;;  %v10331_v36 = vld [vmem:[#allocation7 + $0xfd0] sm:$0xff]  }
 0x813   :  { %9654 = vmatpush3.bf16.msra.mxu0 %v10316_v15  ;;  %9676 = vmatpush3.bf16.msra.mxu1 %v10317_v16 }
 0x814   :  { %9655 = vmatprep.subr.bf16.mxu0 %v10318_v19  ;;  %9677 = vmatprep.subr.bf16.mxu1 %v10319_v62 }
 0x817   :  { %9656 = vmatpush3.bf16.msra.mxu0 %v10320_v22  ;;  %9678 = vmatpush3.bf16.msra.mxu1 %v10321_v23 }
 0x818   :  { %9685 = vmatprep.subr.bf16.mxu0 %v10322_v38  ;;  %9707 = vmatprep.subr.bf16.mxu1 %v10323_v39  ;;  %v10332_v39 = vld [vmem:[#allocation7 + $0xf10] sm:$0xff]  }
 0x89d   :  { %v9569_v24 = vpop.f32.mrb[104].mxu0  ;;  %v9591_v25 = vpop.f32.mrb[104].mxu1 }
 0x89e   :  { %v9570_v40 = vpop.f32.mrb[105].mxu0  ;;  %v9592_v41 = vpop.f32.mrb[105].mxu1 }
 0x89f   :  { %v9571_v42 = vadd.f32 %v9570_v40, %v9569_v24  ;;  %v9593_v43 = vadd.f32 %v9592_v41, %v9591_v25  ;;  %v9572_v45 = vpop.f32.mrb[106].mxu0  ;;  %v9594_v47 = vpop.f32.mrb[106].mxu1  ;;  %v10333_v24 = vld [vmem:[#allocation7 + $0xf90] sm:$0xff]   ;;  %v10334_v25 = vld [vmem:[#allocation7 + $0xf58] sm:$0xff]  }
 0x8a0   :  { %v9573_v49 = vpop.f32.mrb[107].mxu0  ;;  %v9595_v50 = vpop.f32.mrb[107].mxu1  ;;  %v10335_v40 = vld [vmem:[#allocation7 + $0xfd8] sm:$0xff]   ;;  %v10339_v45 = vld [vmem:[#allocation7 + $0xfe0] sm:$0xff]  }
 0x8a1   :  { %v6438_v13 = vadd.f32 %v9593_v43, %v9571_v42  ;;  %v10336_v41 = vld [vmem:[#allocation7 + $0xf18] sm:$0xff]   ;;  %v10338_v43 = vld [vmem:[#allocation7 + $0xf60] sm:$0xff]   ;;  %v10342_v50 = vld [vmem:[#allocation7 + $0xf68] sm:$0xff]  }
 0x8a2   :  { %v10337_v42 = vld [vmem:[#allocation7 + $0xf98] sm:$0xff]   ;;  %v10340_v47 = vld [vmem:[#allocation7 + $0xf20] sm:$0xff]  }
 0x8a3   :  { %v10341_v49 = vld [vmem:[#allocation7 + $0xfa0] sm:$0xff]  }
 0x8bd   :  { %v9613_v51 = vpop.f32.mrb[108].mxu0  ;;  %v9635_v52 = vpop.f32.mrb[108].mxu1 }
 0x8be   :  { %v9614_v53 = vpop.f32.mrb[109].mxu0  ;;  %v9636_v54 = vpop.f32.mrb[109].mxu1 }
 0x8bf   :  { %v9615_v55 = vadd.f32 %v9614_v53, %v9613_v51  ;;  %v9637_v56 = vadd.f32 %v9636_v54, %v9635_v52  ;;  %v9616_v57 = vpop.f32.mrb[110].mxu0  ;;  %v9638_v58 = vpop.f32.mrb[110].mxu1  ;;  %v7442_v51 = vld [vmem:[#allocation5 + $0x80] sm:$0xff]  ;;  %v10344_v52 = vld [vmem:[#allocation7 + $0xf28] sm:$0xff]  }
 0x8c0   :  { %v9617_v59 = vpop.f32.mrb[111].mxu0  ;;  %v9639_v60 = vpop.f32.mrb[111].mxu1  ;;  %v10345_v53 = vld [vmem:[#allocation7 + $0xfa8] sm:$0xff]   ;;  %v10346_v54 = vld [vmem:[#allocation7 + $0xf70] sm:$0xff]   ;;  %v7443_v57 = vld [vmem:[#allocation5 + $0x88] sm:$0xff] }
 0x8c1   :  { %v6478_v61 = vadd.f32 %v9615_v55, %v6438_v13  ;;  %v10343_v13 = vld [vmem:[#allocation7 + $0xfe8] sm:$0xff]   ;;  %v10347_v55 = vld [vmem:[#allocation7 + $0xff0] sm:$0xff]   ;;  %v10350_v60 = vld [vmem:[#allocation7 + $0xf78] sm:$0xff]  }
 0x8c2   :  { %v10348_v58 = vld [vmem:[#allocation7 + $0xf30] sm:$0xff]  }
 0x8c3   :  { %v6518_v35 = vadd.f32 %v9637_v56, %v6478_v61  ;;  %v7446_v56 = vcombine.high %v7442_v51, %v7442_v51  ;;  %v10349_v59 = vld [vmem:[#allocation7 + $0xfb0] sm:$0xff]   ;;  %v10351_v61 = vld [vmem:[#allocation7 + $0xff8] sm:$0xff]  }
 0x8c5   :  { %v10914_v63 = vadd.f32 %v6518_v35, %v10881_v48  ;;  %v6621_v0 = vpop.f32.mrb[112].mxu0  ;;  %v6662_v1 = vpop.f32.mrb[112].mxu1  ;;  %v10326_v48 = vld [vmem:[#allocation7 + $0xf48] sm:$0xff]   ;;  %v7453_v35 = vrot.slane %v7442_v51, %v10620_v18  ;;  %v10389_v51 = vld [vmem:[#allocation7 + $0x11c0] sm:$0xff]  }
 0x8c6   :  { %v6751_v17 = vmax.f32 %v6621_v0, 0.0  ;;  %v6753_v2 = vmax.f32 %v6662_v1, 0.0  ;;  %v6623_v3 = vpop.f32.mrb[113].mxu0  ;;  %v6664_v4 = vpop.f32.mrb[113].mxu1  ;;  %v7460_v0 = vrot.slane %v7446_v56, %v10620_v18  ;;  %v7463_v1 = vcombine.high %v7443_v57, %v7443_v57 }
 0x8c7   :  { %v6752_v5 = vmax.f32 %v6623_v3, 0.0  ;;  %v6754_v6 = vmax.f32 %v6664_v4, 0.0  ;;  %v6625_v7 = vpop.f32.mrb[114].mxu0  ;;  %v6666_v8 = vpop.f32.mrb[114].mxu1 }
 0x8c8   :  { %v6626_v9 = vpop.f32.mrb[115].mxu0  ;;  %v6667_v10 = vpop.f32.mrb[115].mxu1  ;;  %v6759_v46 = vpack.c.bf16 %v6751_v17, %v6751_v17  ;;  %v6761_v21 = vpack.c.bf16 %v6753_v2, %v6753_v2  ;;  %v10352_v17 = vld [vmem:[#allocation7 + $0xf38] sm:$0xff]   ;;  %v7470_v7 = vrot.slane %v7443_v57, %v10620_v18  ;;  %v7477_v8 = vrot.slane %v7463_v1, %v10620_v18 }
 0x8c9   :  { %v6760_v11 = vpack.c.bf16 %v6752_v5, %v6752_v5  ;;  %v6762_v12 = vpack.c.bf16 %v6754_v6, %v6754_v6  ;;  %v10353_v2 = vld [vmem:[#allocation7 + $0xfb8] sm:$0xff]   ;;  %v7461_v5 = vcombine.high %v7453_v35, %v7453_v35  ;;  %v7462_v6 = vcombine.high %v7460_v0, %v7460_v0 }
 0x8ca   :  { %v7493_v18 = vsel %vm144_vm0, %v7470_v7, 0 }
 0x8cb   :  { %7312 = vmatprep.mubr.bf16.mxu0 %v6760_v11  ;;  %7352 = vmatprep.mubr.bf16.mxu1 %v6762_v12  ;;  %v7481_v11 = vsel %vm144_vm0, %v7453_v35, 0  ;;  %v7487_v12 = vsel %vm144_vm0, %v7460_v0, 0 }
 0x8cc   :  { %7313 = vmatmul.mubr.bf16.vlgmr.msra.gmra.mrb[120].mxu0 %v6759_v46  ;;  %7353 = vmatmul.mubr.bf16.vlgmr.msra.gmra.mrb[120].mxu1 %v6761_v21  ;;  %v7499_v46 = vsel %vm144_vm0, %v7477_v8, 0  ;;  %v10356_v21 = vld [vmem:[#allocation7 + $0x1040] sm:$0xff]  }
 0x8cd   :  { %9686 = vmatpush3.bf16.msra.mxu0 %v10324_v14  ;;  %9708 = vmatpush3.bf16.msra.mxu1 %v10325_v20  ;;  %v10916_v27 = vpop.f32.mrb[116].mxu0  ;;  %v10918_v29 = vpop.f32.mrb[116].mxu1  ;;  %v7478_v14 = vcombine.high %v7470_v7, %v7470_v7  ;;  %v7479_v20 = vcombine.high %v7477_v8, %v7477_v8 }
 0x8ce   :  { %v6705_v32 = vpop.f32.mrb[117].mxu0  ;;  %v6746_v33 = vpop.f32.mrb[117].mxu1  ;;  %9687 = vmatprep.subr.bf16.mxu0 %v10326_v48  ;;  %9709 = vmatprep.subr.bf16.mxu1 %v10327_v26  ;;  %v6755_v3 = vmax.f32 %v10916_v27, 0.0  ;;  %v6757_v4 = vmax.f32 %v10918_v29, 0.0  ;;  %v10357_v48 = vld [vmem:[#allocation7 + $0x10c0] sm:$0xff]   ;;  %v10360_v29 = vld [vmem:[#allocation7 + $0x1048] sm:$0xff]  }
 0x8cf   :  { %v6756_v37 = vmax.f32 %v6705_v32, 0.0  ;;  %v6758_v15 = vmax.f32 %v6746_v33, 0.0  ;;  %v6707_v16 = vpop.f32.mrb[118].mxu0  ;;  %v6748_v19 = vpop.f32.mrb[118].mxu1  ;;  %v10358_v26 = vld [vmem:[#allocation7 + $0x1000] sm:$0xff]   ;;  %v10363_v32 = vld [vmem:[#allocation7 + $0x1088] sm:$0xff]  }
 0x8d0   :  { %v6708_v62 = vpop.f32.mrb[119].mxu0  ;;  %v6749_v22 = vpop.f32.mrb[119].mxu1  ;;  %v6763_v9 = vpack.c.bf16 %v6755_v3, %v6755_v3  ;;  %v6765_v10 = vpack.c.bf16 %v6757_v4, %v6757_v4  ;;  %v10359_v27 = vld [vmem:[#allocation7 + $0x1080] sm:$0xff]   ;;  %v10365_v33 = vld [vmem:[#allocation7 + $0x10d0] sm:$0xff]   ;;  %v10371_v16 = vld [vmem:[#allocation7 + $0x1098] sm:$0xff]  }
 0x8d1   :  { %v6764_v23 = vpack.c.bf16 %v6756_v37, %v6756_v37  ;;  %v6766_v38 = vpack.c.bf16 %v6758_v15, %v6758_v15  ;;  %9688 = vmatpush3.bf16.msra.mxu0 %v10328_v30  ;;  %9710 = vmatpush3.bf16.msra.mxu1 %v10329_v31  ;;  %v10361_v30 = vld [vmem:[#allocation7 + $0x10c8] sm:$0xff]   ;;  %v10369_v37 = vld [vmem:[#allocation7 + $0x10d8] sm:$0xff]   ;;  %v10372_v19 = vld [vmem:[#allocation7 + $0x1060] sm:$0xff]  }
 0x8d2   :  { %9689 = vmatprep.subr.bf16.mxu0 %v10330_v34  ;;  %9711 = vmatprep.subr.bf16.mxu1 %v10331_v36  ;;  %v10362_v31 = vld [vmem:[#allocation7 + $0x1008] sm:$0xff]   ;;  %v10366_v34 = vld [vmem:[#allocation7 + $0x1010] sm:$0xff]   ;;  %v10368_v36 = vld [vmem:[#allocation7 + $0x1058] sm:$0xff]  }
 0x8d3   :  { %7392 = vmatprep.mubr.bf16.mxu0 %v6764_v23  ;;  %7432 = vmatprep.mubr.bf16.mxu1 %v6766_v38  ;;  %v10370_v15 = vld [vmem:[#allocation7 + $0x1018] sm:$0xff]   ;;  %v10373_v62 = vld [vmem:[#allocation7 + $0x10e0] sm:$0xff]   ;;  %v10376_v38 = vld [vmem:[#allocation7 + $0x1068] sm:$0xff]  }
 0x8d4   :  { %v10374_v22 = vld [vmem:[#allocation7 + $0x1020] sm:$0xff]  }
 0x8d5   :  { %9690 = vmatpush3.bf16.msra.mxu0 %v10332_v39  ;;  %9712 = vmatpush3.bf16.msra.mxu1 %v10333_v24  ;;  %v10375_v23 = vld [vmem:[#allocation7 + $0x10a0] sm:$0xff]   ;;  %v10377_v39 = vld [vmem:[#allocation7 + $0x10e8] sm:$0xff]  }
 0x8d6   :  { %9691 = vmatprep.subr.bf16.mxu0 %v10334_v25  ;;  %9713 = vmatprep.subr.bf16.mxu1 %v10335_v40  ;;  %v10378_v24 = vld [vmem:[#allocation7 + $0x1028] sm:$0xff]   ;;  %v10380_v40 = vld [vmem:[#allocation7 + $0x1070] sm:$0xff]  }
 0x8d7   :  { %v10379_v25 = vld [vmem:[#allocation7 + $0x10a8] sm:$0xff]  }
 0x8d9   :  { %9692 = vmatpush3.bf16.msra.mxu0 %v10336_v41  ;;  %9714 = vmatpush3.bf16.msra.mxu1 %v10337_v42  ;;  %v10381_v41 = vld [vmem:[#allocation7 + $0x10f0] sm:$0xff]  }
 0x8da   :  { %9693 = vmatprep.subr.bf16.mxu0 %v10338_v43  ;;  %9715 = vmatprep.subr.bf16.mxu1 %v10339_v45  ;;  %v10382_v42 = vld [vmem:[#allocation7 + $0x1030] sm:$0xff]   ;;  %v10384_v45 = vld [vmem:[#allocation7 + $0x1078] sm:$0xff]  }
 0x8db   :  { %v10383_v43 = vld [vmem:[#allocation7 + $0x10b0] sm:$0xff]  }
 0x8dd   :  { %9694 = vmatpush3.bf16.msra.mxu0 %v10340_v47  ;;  %9716 = vmatpush3.bf16.msra.mxu1 %v10341_v49  ;;  %v10385_v47 = vld [vmem:[#allocation7 + $0x10f8] sm:$0xff]  }
 0x8de   :  { %9695 = vmatprep.subr.bf16.mxu0 %v10342_v50  ;;  %9717 = vmatprep.subr.bf16.mxu1 %v10343_v13  ;;  %v10386_v49 = vld [vmem:[#allocation7 + $0x1038] sm:$0xff]   ;;  %v10388_v13 = vld [vmem:[#allocation7 + $0x1140] sm:$0xff]  }
 0x8df   :  { %v10387_v50 = vld [vmem:[#allocation7 + $0x10b8] sm:$0xff]  }
 0x8e1   :  { %9696 = vmatpush3.bf16.msra.mxu0 %v10344_v52  ;;  %9718 = vmatpush3.bf16.msra.mxu1 %v10345_v53 }
 0x8e2   :  { %9697 = vmatprep.subr.bf16.mxu0 %v10346_v54  ;;  %9719 = vmatprep.subr.bf16.mxu1 %v10347_v55 }
 0x8e5   :  { %9698 = vmatpush3.bf16.msra.mxu0 %v10348_v58  ;;  %9720 = vmatpush3.bf16.msra.mxu1 %v10349_v59 }
 0x8e6   :  { %9699 = vmatprep.subr.bf16.mxu0 %v10350_v60  ;;  %9721 = vmatprep.subr.bf16.mxu1 %v10351_v61 }
 0x8e9   :  { %9700 = vmatpush3.bf16.msra.mxu0 %v10352_v17  ;;  %9722 = vmatpush3.bf16.msra.mxu1 %v10353_v2 }
 0x8ea   :  { %8953 = vmatprep.subr.msk.bf16.mxu0 %vm144_vm0, %v7461_v5  ;;  %8955 = vmatprep.subr.msk.bf16.mxu1 %vm144_vm0, %v7462_v6 }
 0x8ec   :  { %7393 = vmatmul.mubr.bf16.vlgmr.msra.gmra.mrb[124].mxu0 %v6763_v9  ;;  %7433 = vmatmul.mubr.bf16.vlgmr.msra.gmra.mrb[124].mxu1 %v6765_v10 }
 0x8ed   :  { %7505 = vmatpush1.bf16.msra.mxu0 %v7481_v11  ;;  %7546 = vmatpush1.bf16.msra.mxu1 %v7487_v12 }
 0x8ee   :  { %7536 = vmatprep.mubr.bf16.mxu0 %v10545_v28  ;;  %7577 = vmatprep.mubr.bf16.mxu1 %v10545_v28 }
 0x8ef   :  { %8957 = vmatprep.subr.msk.bf16.mxu0 %vm144_vm0, %v7478_v14  ;;  %8959 = vmatprep.subr.msk.bf16.mxu1 %vm144_vm0, %v7479_v20 }
 0x8f4   :  { %8954 = vmatmul.mubr.msk.bf16.vlgmr.msra.gmra.mrb[128].mxu0 %vm140_vm4, %v10636_v44  ;;  %8956 = vmatmul.mubr.msk.bf16.vlgmr.msra.gmra.mrb[128].mxu1 %vm140_vm4, %v10636_v44 }
 0x8f5   :  { %7587 = vmatpush1.bf16.msra.mxu0 %v7493_v18  ;;  %7628 = vmatpush1.bf16.msra.mxu1 %v7499_v46 }
 0x8f6   :  { %7618 = vmatprep.mubr.bf16.mxu0 %v10545_v28  ;;  %7659 = vmatprep.mubr.bf16.mxu1 %v10545_v28  ;;  %v10364_v28 = vld [vmem:[#allocation7 + $0x1050] sm:$0xff]  }
 0x8f7   :  { %9729 = vmatprep.subr.bf16.mxu0 %v10356_v21  ;;  %9751 = vmatprep.subr.bf16.mxu1 %v10357_v48 }
 0x8fc   :  { %8958 = vmatmul.mubr.msk.bf16.vlgmr.msra.gmra.mrb[132].mxu0 %vm140_vm4, %v10636_v44  ;;  %8960 = vmatmul.mubr.msk.bf16.vlgmr.msra.gmra.mrb[132].mxu1 %vm140_vm4, %v10636_v44  ;;  %v10367_v44 = vld [vmem:[#allocation7 + $0x1090] sm:$0xff]  }
 0x8fd   :  { %9730 = vmatpush3.bf16.msra.mxu0 %v10358_v26  ;;  %9752 = vmatpush3.bf16.msra.mxu1 %v10359_v27 }
 0x8fe   :  { %9731 = vmatprep.subr.bf16.mxu0 %v10360_v29  ;;  %9753 = vmatprep.subr.bf16.mxu1 %v10361_v30 }
 0x901   :  { %9732 = vmatpush3.bf16.msra.mxu0 %v10362_v31  ;;  %9754 = vmatpush3.bf16.msra.mxu1 %v10363_v32 }
 0x902   :  { %9733 = vmatprep.subr.bf16.mxu0 %v10364_v28  ;;  %9755 = vmatprep.subr.bf16.mxu1 %v10365_v33  ;;  %v10390_v33 = vld [vmem:[#allocation7 + $0x1100] sm:$0xff]  }
 0x905   :  { %9734 = vmatpush3.bf16.msra.mxu0 %v10366_v34  ;;  %9756 = vmatpush3.bf16.msra.mxu1 %v10367_v44  ;;  %v10391_v34 = vld [vmem:[#allocation7 + $0x1180] sm:$0xff]  }
 0x906   :  { %9735 = vmatprep.subr.bf16.mxu0 %v10368_v36  ;;  %9757 = vmatprep.subr.bf16.mxu1 %v10369_v37  ;;  %v10393_v37 = vld [vmem:[#allocation7 + $0x11c8] sm:$0xff]  }
 0x909   :  { %9736 = vmatpush3.bf16.msra.mxu0 %v10370_v15  ;;  %9758 = vmatpush3.bf16.msra.mxu1 %v10371_v16 }
 0x90a   :  { %9737 = vmatprep.subr.bf16.mxu0 %v10372_v19  ;;  %9759 = vmatprep.subr.bf16.mxu1 %v10373_v62  ;;  %v10394_v19 = vld [vmem:[#allocation7 + $0x1108] sm:$0xff]  }
 0x90b   :  { %v10395_v62 = vld [vmem:[#allocation7 + $0x1188] sm:$0xff]  }
 0x90d   :  { %9738 = vmatpush3.bf16.msra.mxu0 %v10374_v22  ;;  %9760 = vmatpush3.bf16.msra.mxu1 %v10375_v23 }
 0x90e   :  { %9739 = vmatprep.subr.bf16.mxu0 %v10376_v38  ;;  %9761 = vmatprep.subr.bf16.mxu1 %v10377_v39  ;;  %v10396_v38 = vld [vmem:[#allocation7 + $0x1150] sm:$0xff]  }
 0x90f   :  { %v10397_v39 = vld [vmem:[#allocation7 + $0x11d0] sm:$0xff]  }
 0x911   :  { %9740 = vmatpush3.bf16.msra.mxu0 %v10378_v24  ;;  %9762 = vmatpush3.bf16.msra.mxu1 %v10379_v25 }
 0x912   :  { %9741 = vmatprep.subr.bf16.mxu0 %v10380_v40  ;;  %9763 = vmatprep.subr.bf16.mxu1 %v10381_v41 }
 0x915   :  { %9742 = vmatpush3.bf16.msra.mxu0 %v10382_v42  ;;  %9764 = vmatpush3.bf16.msra.mxu1 %v10383_v43 }
 0x916   :  { %9743 = vmatprep.subr.bf16.mxu0 %v10384_v45  ;;  %9765 = vmatprep.subr.bf16.mxu1 %v10385_v47 }
 0x919   :  { %9744 = vmatpush3.bf16.msra.mxu0 %v10386_v49  ;;  %9766 = vmatpush3.bf16.msra.mxu1 %v10387_v50  ;;  %v10398_v49 = vld [vmem:[#allocation7 + $0x1110] sm:$0xff]  }
 0x91a   :  { %9773 = vmatprep.subr.bf16.mxu0 %v10388_v13  ;;  %9795 = vmatprep.subr.bf16.mxu1 %v10389_v51  ;;  %v10399_v50 = vld [vmem:[#allocation7 + $0x1190] sm:$0xff]   ;;  %v10400_v13 = vld [vmem:[#allocation7 + $0x1158] sm:$0xff]  }
 0x91b   :  { %v10401_v51 = vld [vmem:[#allocation7 + $0x11d8] sm:$0xff]  }
 0x99f   :  { %v9657_v52 = vpop.f32.mrb[120].mxu0  ;;  %v9679_v53 = vpop.f32.mrb[120].mxu1 }
 0x9a0   :  { %v9658_v54 = vpop.f32.mrb[121].mxu0  ;;  %v9680_v55 = vpop.f32.mrb[121].mxu1 }
 0x9a1   :  { %v9659_v56 = vadd.f32 %v9658_v54, %v9657_v52  ;;  %v9681_v57 = vadd.f32 %v9680_v55, %v9679_v53  ;;  %v9660_v58 = vpop.f32.mrb[122].mxu0  ;;  %v9682_v59 = vpop.f32.mrb[122].mxu1  ;;  %v10402_v52 = vld [vmem:[#allocation7 + $0x1118] sm:$0xff]   ;;  %v10404_v54 = vld [vmem:[#allocation7 + $0x1160] sm:$0xff]  }
 0x9a2   :  { %v9661_v60 = vpop.f32.mrb[123].mxu0  ;;  %v9683_v61 = vpop.f32.mrb[123].mxu1  ;;  %v10403_v53 = vld [vmem:[#allocation7 + $0x1198] sm:$0xff]   ;;  %v10405_v55 = vld [vmem:[#allocation7 + $0x11e0] sm:$0xff]   ;;  %v10408_v58 = vld [vmem:[#allocation7 + $0x1168] sm:$0xff]  }
 0x9a3   :  { %v7355_v35 = vadd.f32 %v9681_v57, %v9659_v56  ;;  %v10406_v56 = vld [vmem:[#allocation7 + $0x1120] sm:$0xff]   ;;  %v10409_v59 = vld [vmem:[#allocation7 + $0x11e8] sm:$0xff]  }
 0x9a4   :  { %v10407_v57 = vld [vmem:[#allocation7 + $0x11a0] sm:$0xff]   ;;  %v10410_v60 = vld [vmem:[#allocation7 + $0x1128] sm:$0xff]  }
 0x9a5   :  { %v10411_v61 = vld [vmem:[#allocation7 + $0x11a8] sm:$0xff]  }
 0x9bf   :  { %v9701_v0 = vpop.f32.mrb[124].mxu0  ;;  %v9723_v1 = vpop.f32.mrb[124].mxu1 }
 0x9c0   :  { %v9702_v17 = vpop.f32.mrb[125].mxu0  ;;  %v9724_v2 = vpop.f32.mrb[125].mxu1 }
 0x9c1   :  { %v9703_v3 = vadd.f32 %v9702_v17, %v9701_v0  ;;  %v9725_v4 = vadd.f32 %v9724_v2, %v9723_v1  ;;  %v9704_v5 = vpop.f32.mrb[126].mxu0  ;;  %v9726_v6 = vpop.f32.mrb[126].mxu1  ;;  %v10413_v0 = vld [vmem:[#allocation7 + $0x11f0] sm:$0xff]   ;;  %v10416_v2 = vld [vmem:[#allocation7 + $0x1178] sm:$0xff]  }
 0x9c2   :  { %v9705_v7 = vpop.f32.mrb[127].mxu0  ;;  %v9727_v8 = vpop.f32.mrb[127].mxu1  ;;  %v10414_v1 = vld [vmem:[#allocation7 + $0x1130] sm:$0xff]   ;;  %v10419_v5 = vld [vmem:[#allocation7 + $0x11b8] sm:$0xff]  }
 0x9c3   :  { %v7395_v9 = vadd.f32 %v9703_v3, %v7355_v35  ;;  %v10412_v35 = vld [vmem:[#allocation7 + $0x1170] sm:$0xff]   ;;  %v10417_v3 = vld [vmem:[#allocation7 + $0x11f8] sm:$0xff]  }
 0x9c4   :  { %v10415_v17 = vld [vmem:[#allocation7 + $0x11b0] sm:$0xff]  }
 0x9c5   :  { %v7435_v10 = vadd.f32 %v9725_v4, %v7395_v9  ;;  %v10418_v4 = vld [vmem:[#allocation7 + $0x1138] sm:$0xff]  }
 0x9c7   :  { %v10947_v11 = vadd.f32 %v7435_v10, %v10914_v63  ;;  %v7538_v12 = vpop.f32.mrb[128].mxu0  ;;  %v7579_v14 = vpop.f32.mrb[128].mxu1  ;;  %v10392_v63 = vld [vmem:[#allocation7 + $0x1148] sm:$0xff]  }
 0x9c8   :  { %v7668_v20 = vmax.f32 %v7538_v12, 0.0  ;;  %v7670_v18 = vmax.f32 %v7579_v14, 0.0  ;;  %v7540_v46 = vpop.f32.mrb[129].mxu0  ;;  %v7581_v21 = vpop.f32.mrb[129].mxu1 }
 0x9c9   :  { %v7669_v48 = vmax.f32 %v7540_v46, 0.0  ;;  %v7671_v26 = vmax.f32 %v7581_v21, 0.0  ;;  %v7542_v27 = vpop.f32.mrb[130].mxu0  ;;  %v7583_v29 = vpop.f32.mrb[130].mxu1 }
 0x9ca   :  { %v7543_v30 = vpop.f32.mrb[131].mxu0  ;;  %v7584_v31 = vpop.f32.mrb[131].mxu1  ;;  %v7676_v44 = vpack.c.bf16 %v7668_v20, %v7668_v20  ;;  %v7678_v36 = vpack.c.bf16 %v7670_v18, %v7670_v18 }
 0x9cb   :  { %v7677_v32 = vpack.c.bf16 %v7669_v48, %v7669_v48  ;;  %v7679_v28 = vpack.c.bf16 %v7671_v26, %v7671_v26 }
 0x9cd   :  { %8229 = vmatprep.mubr.bf16.mxu0 %v7677_v32  ;;  %8269 = vmatprep.mubr.bf16.mxu1 %v7679_v28 }
 0x9ce   :  { %8230 = vmatmul.mubr.bf16.vlgmr.msra.gmra.mrb[136].mxu0 %v7676_v44  ;;  %8270 = vmatmul.mubr.bf16.vlgmr.msra.gmra.mrb[136].mxu1 %v7678_v36 }
 0x9cf   :  { %9774 = vmatpush3.bf16.msra.mxu0 %v10390_v33  ;;  %9796 = vmatpush3.bf16.msra.mxu1 %v10391_v34  ;;  %v10949_v15 = vpop.f32.mrb[132].mxu0  ;;  %v10951_v16 = vpop.f32.mrb[132].mxu1 }
 0x9d0   :  { %v7622_v22 = vpop.f32.mrb[133].mxu0  ;;  %v7663_v23 = vpop.f32.mrb[133].mxu1  ;;  %9775 = vmatprep.subr.bf16.mxu0 %v10392_v63  ;;  %9797 = vmatprep.subr.bf16.mxu1 %v10393_v37  ;;  %v7672_v6 = vmax.f32 %v10949_v15, 0.0  ;;  %v7674_v7 = vmax.f32 %v10951_v16, 0.0 }
 0x9d1   :  { %v7673_v24 = vmax.f32 %v7622_v22, 0.0  ;;  %v7675_v25 = vmax.f32 %v7663_v23, 0.0  ;;  %v7624_v40 = vpop.f32.mrb[134].mxu0  ;;  %v7665_v41 = vpop.f32.mrb[134].mxu1 }
 0x9d2   :  { %v7625_v42 = vpop.f32.mrb[135].mxu0  ;;  %v7666_v43 = vpop.f32.mrb[135].mxu1  ;;  %v7680_v8 = vpack.c.bf16 %v7672_v6, %v7672_v6  ;;  %v7682_v9 = vpack.c.bf16 %v7674_v7, %v7674_v7 }
 0x9d3   :  { %v7681_v45 = vpack.c.bf16 %v7673_v24, %v7673_v24  ;;  %v7683_v47 = vpack.c.bf16 %v7675_v25, %v7675_v25  ;;  %9776 = vmatpush3.bf16.msra.mxu0 %v10394_v19  ;;  %9798 = vmatpush3.bf16.msra.mxu1 %v10395_v62 }
 0x9d4   :  { %9777 = vmatprep.subr.bf16.mxu0 %v10396_v38  ;;  %9799 = vmatprep.subr.bf16.mxu1 %v10397_v39 }
 0x9d5   :  { %8309 = vmatprep.mubr.bf16.mxu0 %v7681_v45  ;;  %8349 = vmatprep.mubr.bf16.mxu1 %v7683_v47 }
 0x9d7   :  { %9778 = vmatpush3.bf16.msra.mxu0 %v10398_v49  ;;  %9800 = vmatpush3.bf16.msra.mxu1 %v10399_v50 }
 0x9d8   :  { %9779 = vmatprep.subr.bf16.mxu0 %v10400_v13  ;;  %9801 = vmatprep.subr.bf16.mxu1 %v10401_v51 }
 0x9db   :  { %9780 = vmatpush3.bf16.msra.mxu0 %v10402_v52  ;;  %9802 = vmatpush3.bf16.msra.mxu1 %v10403_v53 }
 0x9dc   :  { %9781 = vmatprep.subr.bf16.mxu0 %v10404_v54  ;;  %9803 = vmatprep.subr.bf16.mxu1 %v10405_v55 }
 0x9df   :  { %9782 = vmatpush3.bf16.msra.mxu0 %v10406_v56  ;;  %9804 = vmatpush3.bf16.msra.mxu1 %v10407_v57 }
 0x9e0   :  { %9783 = vmatprep.subr.bf16.mxu0 %v10408_v58  ;;  %9805 = vmatprep.subr.bf16.mxu1 %v10409_v59 }
 0x9e3   :  { %9784 = vmatpush3.bf16.msra.mxu0 %v10410_v60  ;;  %9806 = vmatpush3.bf16.msra.mxu1 %v10411_v61 }
 0x9e4   :  { %9785 = vmatprep.subr.bf16.mxu0 %v10412_v35  ;;  %9807 = vmatprep.subr.bf16.mxu1 %v10413_v0 }
 0x9e7   :  { %9786 = vmatpush3.bf16.msra.mxu0 %v10414_v1  ;;  %9808 = vmatpush3.bf16.msra.mxu1 %v10415_v17 }
 0x9e8   :  { %9787 = vmatprep.subr.bf16.mxu0 %v10416_v2  ;;  %9809 = vmatprep.subr.bf16.mxu1 %v10417_v3 }
 0x9eb   :  { %9788 = vmatpush3.bf16.msra.mxu0 %v10418_v4  ;;  %9810 = vmatpush3.bf16.msra.mxu1 %v10419_v5 }
 0x9ee   :  { %8310 = vmatmul.mubr.bf16.vlgmr.msra.gmra.mrb[140].mxu0 %v7680_v8  ;;  %8350 = vmatmul.mubr.bf16.vlgmr.msra.gmra.mrb[140].mxu1 %v7682_v9 }
 0xaa1   :  { %v9745_v10 = vpop.f32.mrb[136].mxu0  ;;  %v9767_v12 = vpop.f32.mrb[136].mxu1 }
 0xaa2   :  { %v9746_v14 = vpop.f32.mrb[137].mxu0  ;;  %v9768_v20 = vpop.f32.mrb[137].mxu1 }
 0xaa3   :  { %v9747_v18 = vadd.f32 %v9746_v14, %v9745_v10  ;;  %v9769_v46 = vadd.f32 %v9768_v20, %v9767_v12  ;;  %v9748_v21 = vpop.f32.mrb[138].mxu0  ;;  %v9770_v48 = vpop.f32.mrb[138].mxu1 }
 0xaa4   :  { %v9749_v26 = vpop.f32.mrb[139].mxu0  ;;  %v9771_v27 = vpop.f32.mrb[139].mxu1 }
 0xaa5   :  { %v8272_v29 = vadd.f32 %v9769_v46, %v9747_v18 }
 0xac1   :  { %v9789_v30 = vpop.f32.mrb[140].mxu0  ;;  %v9811_v31 = vpop.f32.mrb[140].mxu1 }
 0xac2   :  { %v9790_v32 = vpop.f32.mrb[141].mxu0  ;;  %v9812_v28 = vpop.f32.mrb[141].mxu1 }
 0xac3   :  { %v9791_v33 = vadd.f32 %v9790_v32, %v9789_v30  ;;  %v9813_v34 = vadd.f32 %v9812_v28, %v9811_v31  ;;  %v9792_v44 = vpop.f32.mrb[142].mxu0  ;;  %v9814_v36 = vpop.f32.mrb[142].mxu1 }
 0xac4   :  { %v9793_v63 = vpop.f32.mrb[143].mxu0  ;;  %v9815_v37 = vpop.f32.mrb[143].mxu1 }
 0xac5   :  { %v8312_v15 = vadd.f32 %v9791_v33, %v8272_v29 }
 0xac7   :  { %v8352_v16 = vadd.f32 %v9813_v34, %v8312_v15 }
 0xac9   :  { %v8357_v19 = vadd.f32 %v8352_v16, %v10947_v11 }
 0xacb   :  { %8358 = vst [vmem:[#allocation10] sm:$0xff] %v8357_v19 }
 0xacc   :  { %10519 = shalt.err (!%p10516_p8)
}
 0xacd   :  { %s10520_s14 = scalar_lea.hbm %s10972_s4, 128 }
 0xace   :  { %p10521_p9 = scmp.ne.s32.totalorder %s10972_s4, %s10520_s14  ;;  %p10524_p10 = scmp.lt.u32.totalorder %s10520_s14, %s10972_s4 }
 0xad0   :  { %p10526_p11 = pnand %p10524_p10, %p10521_p9 }
 0xad2   :  { %10529 = shalt.err (!%p10526_p11)
}
 0xad3   :  { %8368 = dma.vmem_to_hbm [thread:$0]  %s8366_s1, 128, %s10972_s4, [#allocation4]  }
 0xad4   :  { %10536 = dma.done.wait [#allocation4], 128  }
 0xad5   :  { %10537 = vsyncadd [#allocation4], 4294967168 }
 0xad6   :  { %8372 = vsyncpa [#allocation3], 1 }
 0xad7   :  { %8373 = vsyncpa [#allocation6], 1 }
 0xad8   :  { %8374 = vsyncpa [#allocation9], 1 }
 0xad9   :  { %8375 = vsyncpa [#allocation4], 1 }

</bundles_post_ra>
